<compile_context>
chip_gen: v5e
topology: v5e:2x2
jax: 0.10.0
libtpu: 0.0.40
codegen_flags: <defaults>
</compile_context>

<pallas_src>
import jax
import jax.numpy as jnp
from jax.experimental import pallas as pl
from jax.experimental.pallas import tpu as pltpu


def _round_up(x, m):
    return ((x + m - 1) // m) * m


def scalenet_kernel(wf_ref, xT_ref, bf_ref, w1_ref, b1_ref, w2_ref, b2_ref,
                    o_ref, acc_ref):
    k = pl.program_id(1)

    @pl.when(k == 0)
    def _():
        # Fold the feature-extractor bias into the accumulator init.
        acc_ref[...] = jnp.broadcast_to(bf_ref[...], acc_ref.shape)

    # feature_extractor stand-in: (512, TK)bf16 @ (TK, TB)bf16 -> f32 acc (MXU).
    acc_ref[...] += jnp.dot(wf_ref[...], xT_ref[...],
                            preferred_element_type=jnp.float32)

    @pl.when(k == pl.num_programs(1) - 1)
    def _():
        feats_t = acc_ref[...]                                    # (512, TB) f32
        # l1: (256, 512) @ (512, TB) + b1, then ReLU (f32 on the VPU).
        h = jnp.dot(w1_ref[...], feats_t.astype(jnp.bfloat16),
                    preferred_element_type=jnp.float32) + b1_ref[...]
        h = jnp.maximum(h, 0.0)                                   # (256, TB)
        # l2 (out_features == 1): VPU multiply + XLU sublane reduction instead
        # of a lane-sparse N=1 MXU matmul.
        y = jnp.sum(h * w2_ref[...], axis=0, keepdims=True) + b2_ref[...]
        o_ref[...] = jax.nn.sigmoid(y)                            # (1, TB)


def scalenet_forward(x_nchw, params, *, tb=128, tk=2048):
    """ScaleNet forward. All weights are in native PyTorch (out, in) layout."""
    wf, bf, w1, b1, w2, b2 = params
    B = x_nchw.shape[0]
    d_in = x_nchw.shape[1] * x_nchw.shape[2] * x_nchw.shape[3]

    # Tile sizes: TB fills MXU rows / output lanes; TK tiles the d_in stream
    # (double-buffered (512,TK)+(TK,TB) bf16 tiles stay well under the 32 MiB
    # scoped-VMEM default on every generation, incl. v7x's 64 MiB total VMEM).
    tb = max(128, _round_up(tb, 128))
    tk = max(128, min(_round_up(tk, 128), _round_up(d_in, 128)))
    b_pad = _round_up(B, tb)
    d_pad = _round_up(d_in, tk)

    # Batch onto the lane axis: (B, d_in) -> (d_in, B), zero-pad, bf16 MXU feed.
    x_t = jnp.transpose(x_nchw.reshape(B, d_in).astype(jnp.float32))
    x_t = jnp.pad(x_t, ((0, d_pad - d_in), (0, b_pad - B))).astype(jnp.bfloat16)

    wf_p = jnp.pad(wf, ((0, 0), (0, d_pad - d_in))).astype(jnp.bfloat16)
    w1_b = w1.astype(jnp.bfloat16)
    bf_c = bf.reshape(512, 1).astype(jnp.float32)
    b1_c = b1.reshape(256, 1).astype(jnp.float32)
    w2_c = w2.reshape(256, 1).astype(jnp.float32)
    b2_c = b2.reshape(1, 1).astype(jnp.float32)

    nb, nk = b_pad // tb, d_pad // tk

    cost = pl.CostEstimate(
        flops=2 * b_pad * d_pad * 512 + 2 * b_pad * 512 * 256 + 2 * b_pad * 256,
        transcendentals=b_pad,
        bytes_accessed=(wf_p.size + x_t.size + w1_b.size) * 2
        + (bf_c.size + b1_c.size + w2_c.size + b2_c.size) * 4
        + b_pad * 4,
    )

    out = pl.pallas_call(
        scalenet_kernel,
        out_shape=jax.ShapeDtypeStruct((1, b_pad), jnp.float32),
        grid_spec=pltpu.PrefetchScalarGridSpec(
            num_scalar_prefetch=0,
            grid=(nb, nk),
            in_specs=[
                pl.BlockSpec((512, tk), lambda b, k: (0, k)),    # Wf tile (streamed)
                pl.BlockSpec((tk, tb), lambda b, k: (k, b)),     # x^T tile
                pl.BlockSpec((512, 1), lambda b, k: (0, 0)),     # bf   (resident)
                pl.BlockSpec((256, 512), lambda b, k: (0, 0)),   # W1   (resident)
                pl.BlockSpec((256, 1), lambda b, k: (0, 0)),     # b1   (resident)
                pl.BlockSpec((256, 1), lambda b, k: (0, 0)),     # W2^T (resident)
                pl.BlockSpec((1, 1), lambda b, k: (0, 0)),       # b2   (resident)
            ],
            out_specs=pl.BlockSpec((1, tb), lambda b, k: (0, b)),
            scratch_shapes=[pltpu.VMEM((512, tb), jnp.float32)],
        ),
        compiler_params=pltpu.CompilerParams(
            dimension_semantics=("parallel", "arbitrary")),
        cost_estimate=cost,
    )(wf_p, x_t, bf_c, w1_b, b1_c, w2_c, b2_c)

    # x.flatten() in the PyTorch module: (1, B_pad) -> (B,)
    return out.reshape(-1)[:B]


def init_params(key, d_in):
    kf, kbf, k1, kb1, k2, kb2 = jax.random.split(key, 6)
    # Deterministic, small-magnitude init (stand-in for trained weights),
    # stored in PyTorch nn.Linear (out_features, in_features) layout.
    wf = jax.random.normal(kf, (512, d_in), jnp.float32) * 0.02   # feature extractor stand-in
    bf = jax.random.normal(kbf, (512,), jnp.float32) * 0.01
    w1 = jax.random.normal(k1, (256, 512), jnp.float32) * 0.05    # l1.weight
    b1 = jax.random.normal(kb1, (256,), jnp.float32) * 0.01       # l1.bias
    w2 = jax.random.normal(k2, (1, 256), jnp.float32) * 0.05      # l2.weight
    b2 = jax.random.normal(kb2, (1,), jnp.float32) * 0.01         # l2.bias
    return wf, bf, w1, b1, w2, b2


if __name__ == "__main__":
    key = jax.random.PRNGKey(0)
    kx, kp = jax.random.split(key)

    B, C, H, W = 8, 4, 16, 16
    x = jax.random.normal(kx, (B, C, H, W), jnp.float32)

    d_in = C * H * W
    params = init_params(kp, d_in)

    # tk=512 -> two K steps at this toy size, exercising the accumulator path.
    out = scalenet_forward(x, params, tb=128, tk=512)
    out = jax.block_until_ready(out)

    # Pure-JAX reference (weights in PyTorch layout: y = x @ W^T + b).
    wf, bf, w1, b1, w2, b2 = params
    x_flat = x.reshape(B, d_in)

    # f32 reference for the functional spec.
    feats = x_flat @ wf.T + bf
    h = jnp.maximum(feats @ w1.T + b1, 0.0)
    ref_f32 = jax.nn.sigmoid(h @ w2.T + b2).reshape(-1)

    # bf16-matched reference (same MXU input precision as the kernel) for a
    # tight numerical check.
    feats_b = (x_flat.astype(jnp.bfloat16) @ wf.astype(jnp.bfloat16).T
               ).astype(jnp.float32) + bf
    h_b = jnp.maximum(
        (feats_b.astype(jnp.bfloat16) @ w1.astype(jnp.bfloat16).T
         ).astype(jnp.float32) + b1, 0.0)
    ref_bf16 = jax.nn.sigmoid(h_b @ w2.T + b2).reshape(-1)

    assert out.shape == (B,)
    assert bool(jnp.all(jnp.isfinite(out)))
    assert jnp.allclose(out, ref_bf16, atol=5e-3, rtol=5e-3), (out, ref_bf16)
    # bf16 MXU inputs with f32 accumulation -> relaxed tolerance vs f32 ref.
    assert jnp.allclose(out, ref_f32, atol=3e-2, rtol=3e-2), (out, ref_f32)

    print("KERNEL_OK")
</pallas_src>

<mosaic_0001>
module attributes {stable_mosaic.version = 11 : i64} {
  func.func @scalenet_kernel(%arg0: i32, %arg1: i32, %arg2: memref<512x512xbf16, #tpu.memory_space<vmem>>, %arg3: memref<512x128xbf16, #tpu.memory_space<vmem>>, %arg4: memref<512x1xf32, #tpu.memory_space<vmem>>, %arg5: memref<256x512xbf16, #tpu.memory_space<vmem>>, %arg6: memref<256x1xf32, #tpu.memory_space<vmem>>, %arg7: memref<256x1xf32, #tpu.memory_space<vmem>>, %arg8: memref<1x1xf32, #tpu.memory_space<vmem>>, %arg9: memref<1x128xf32, #tpu.memory_space<vmem>>, %arg10: memref<512x128xf32, #tpu.memory_space<vmem>>) attributes {dimension_semantics = [#tpu.dimension_semantics<parallel>, #tpu.dimension_semantics<arbitrary>], iteration_bounds = array<i64: 1, 2>, scalar_prefetch = 0 : i64, scratch_operands = 1 : i64, tpu.core_type = #tpu.core_type<tc>, window_params = [{transform_indices = @transform_0, window_bounds = array<i64: 512, 512>}, {transform_indices = @transform_1, window_bounds = array<i64: 512, 128>}, {pipeline_mode = #tpu.pipeline_mode<synchronous>, transform_indices = @transform_2, window_bounds = array<i64: 512, 1>}, {pipeline_mode = #tpu.pipeline_mode<synchronous>, transform_indices = @transform_3, window_bounds = array<i64: 256, 512>}, {pipeline_mode = #tpu.pipeline_mode<synchronous>, transform_indices = @transform_4, window_bounds = array<i64: 256, 1>}, {pipeline_mode = #tpu.pipeline_mode<synchronous>, transform_indices = @transform_5, window_bounds = array<i64: 256, 1>}, {pipeline_mode = #tpu.pipeline_mode<synchronous>, transform_indices = @transform_6, window_bounds = array<i64: 1, 1>}, {transform_indices = @transform_7, window_bounds = array<i64: 1, 128>}]} {
    %c0_i32 = arith.constant 0 : i32
    %0 = arith.cmpi eq, %arg1, %c0_i32 : i32
    %1 = arith.extui %0 : i1 to i32
    %c0_i32_0 = arith.constant 0 : i32
    %2 = arith.cmpi ne, %1, %c0_i32_0 : i32
    scf.if %2 {
      %c0_9 = arith.constant 0 : index
      %c0_10 = arith.constant 0 : index
      %12 = vector.load %arg4[%c0_9, %c0_10] : memref<512x1xf32, #tpu.memory_space<vmem>>, vector<512x1xf32>
      %13 = vector.shape_cast %12 : vector<512x1xf32> to vector<512x1xf32>
      %14 = vector.broadcast %13 : vector<512x1xf32> to vector<512x128xf32>
      %c0_11 = arith.constant 0 : index
      %c0_12 = arith.constant 0 : index
      %15 = vector.load %arg10[%c0_11, %c0_12] : memref<512x128xf32, #tpu.memory_space<vmem>>, vector<512x128xf32>
      tpu.vector_store %arg10[%c0_11, %c0_12], %14 {strides = array<i32>} : memref<512x128xf32, #tpu.memory_space<vmem>>, vector<512x128xf32>,
    } else {
    }
    %c0 = arith.constant 0 : index
    %c0_1 = arith.constant 0 : index
    %3 = vector.load %arg10[%c0, %c0_1] : memref<512x128xf32, #tpu.memory_space<vmem>>, vector<512x128xf32>
    %c0_2 = arith.constant 0 : index
    %c0_3 = arith.constant 0 : index
    %4 = vector.load %arg2[%c0_2, %c0_3] : memref<512x512xbf16, #tpu.memory_space<vmem>>, vector<512x512xbf16>
    %c0_4 = arith.constant 0 : index
    %c0_5 = arith.constant 0 : index
    %5 = vector.load %arg3[%c0_4, %c0_5] : memref<512x128xbf16, #tpu.memory_space<vmem>>, vector<512x128xbf16>
    %cst = arith.constant dense<0.000000e+00> : vector<512x128xf32>
    %6 = tpu.matmul %4, %5, %cst {dimension_numbers = #tpu.dot_dimension_numbers<[1], [0], [0], [1], [0, 0, 1, 1], [], []>} : vector<512x512xbf16>, vector<512x128xbf16>, vector<512x128xf32> -> vector<512x128xf32>
    %7 = arith.addf %3, %6 : vector<512x128xf32>
    %c0_6 = arith.constant 0 : index
    %c0_7 = arith.constant 0 : index
    %8 = vector.load %arg10[%c0_6, %c0_7] : memref<512x128xf32, #tpu.memory_space<vmem>>, vector<512x128xf32>
    tpu.vector_store %arg10[%c0_6, %c0_7], %7 {strides = array<i32>} : memref<512x128xf32, #tpu.memory_space<vmem>>, vector<512x128xf32>,
    %c1_i32 = arith.constant 1 : i32
    %9 = arith.cmpi eq, %arg1, %c1_i32 : i32
    %10 = arith.extui %9 : i1 to i32
    %c0_i32_8 = arith.constant 0 : i32
    %11 = arith.cmpi ne, %10, %c0_i32_8 : i32
    scf.if %11 {
      %c0_9 = arith.constant 0 : index
      %c0_10 = arith.constant 0 : index
      %12 = vector.load %arg10[%c0_9, %c0_10] : memref<512x128xf32, #tpu.memory_space<vmem>>, vector<512x128xf32>
      %c0_11 = arith.constant 0 : index
      %c0_12 = arith.constant 0 : index
      %13 = vector.load %arg5[%c0_11, %c0_12] : memref<256x512xbf16, #tpu.memory_space<vmem>>, vector<256x512xbf16>
      %14 = arith.truncf %12 : vector<512x128xf32> to vector<512x128xbf16>
      %cst_13 = arith.constant dense<0.000000e+00> : vector<256x128xf32>
      %15 = tpu.matmul %13, %14, %cst_13 {dimension_numbers = #tpu.dot_dimension_numbers<[1], [0], [0], [1], [0, 0, 1, 1], [], []>} : vector<256x512xbf16>, vector<512x128xbf16>, vector<256x128xf32> -> vector<256x128xf32>
      %c0_14 = arith.constant 0 : index
      %c0_15 = arith.constant 0 : index
      %16 = vector.load %arg6[%c0_14, %c0_15] : memref<256x1xf32, #tpu.memory_space<vmem>>, vector<256x1xf32>
      %17 = vector.broadcast %16 : vector<256x1xf32> to vector<256x128xf32>
      %18 = arith.addf %15, %17 : vector<256x128xf32>
      %cst_16 = arith.constant 0.000000e+00 : f32
      %19 = vector.broadcast %cst_16 : f32 to vector<256x128xf32>
      %20 = arith.maximumf %18, %19 : vector<256x128xf32>
      %c0_17 = arith.constant 0 : index
      %c0_18 = arith.constant 0 : index
      %21 = vector.load %arg7[%c0_17, %c0_18] : memref<256x1xf32, #tpu.memory_space<vmem>>, vector<256x1xf32>
      %22 = vector.broadcast %21 : vector<256x1xf32> to vector<256x128xf32>
      %23 = arith.mulf %20, %22 : vector<256x128xf32>
      %cst_19 = arith.constant dense<0.000000e+00> : vector<128xf32>
      %24 = vector.multi_reduction <add>, %23, %cst_19 [0] : vector<256x128xf32> to vector<128xf32>
      %25 = vector.shape_cast %24 : vector<128xf32> to vector<1x128xf32>
      %c0_20 = arith.constant 0 : index
      %c0_21 = arith.constant 0 : index
      %26 = vector.load %arg8[%c0_20, %c0_21] : memref<1x1xf32, #tpu.memory_space<vmem>>, vector<1x1xf32>
      %27 = vector.broadcast %26 : vector<1x1xf32> to vector<1x128xf32>
      %28 = arith.addf %25, %27 : vector<1x128xf32>
      %29 = arith.negf %28 : vector<1x128xf32>
      %30 = math.exp %29 : vector<1x128xf32>
      %cst_22 = arith.constant 1.000000e+00 : f32
      %31 = vector.broadcast %cst_22 : f32 to vector<1x128xf32>
      %32 = arith.addf %31, %30 : vector<1x128xf32>
      %33 = arith.divf %31, %32 : vector<1x128xf32>
      %c0_23 = arith.constant 0 : index
      %c0_24 = arith.constant 0 : index
      %34 = vector.load %arg9[%c0_23, %c0_24] : memref<1x128xf32, #tpu.memory_space<vmem>>, vector<1x128xf32>
      tpu.vector_store %arg9[%c0_23, %c0_24], %33 {strides = array<i32>} : memref<1x128xf32, #tpu.memory_space<vmem>>, vector<1x128xf32>,
    } else {
    }
    return
  }
  func.func @transform_0(%arg0: i32, %arg1: i32) -> (i32, i32) {
    %c0_i32 = arith.constant 0 : i32
    %c0_i32_0 = arith.constant 0 : i32
    return %c0_i32, %arg1 : i32, i32
  }
  func.func @transform_1(%arg0: i32, %arg1: i32) -> (i32, i32) {
    %c0_i32 = arith.constant 0 : i32
    return %arg1, %arg0 : i32, i32
  }
  func.func @transform_2(%arg0: i32, %arg1: i32) -> (i32, i32) {
    %c0_i32 = arith.constant 0 : i32
    %c0_i32_0 = arith.constant 0 : i32
    %c0_i32_1 = arith.constant 0 : i32
    return %c0_i32, %c0_i32_0 : i32, i32
  }
  func.func @transform_3(%arg0: i32, %arg1: i32) -> (i32, i32) {
    %c0_i32 = arith.constant 0 : i32
    %c0_i32_0 = arith.constant 0 : i32
    %c0_i32_1 = arith.constant 0 : i32
    return %c0_i32, %c0_i32_0 : i32, i32
  }
  func.func @transform_4(%arg0: i32, %arg1: i32) -> (i32, i32) {
    %c0_i32 = arith.constant 0 : i32
    %c0_i32_0 = arith.constant 0 : i32
    %c0_i32_1 = arith.constant 0 : i32
    return %c0_i32, %c0_i32_0 : i32, i32
  }
  func.func @transform_5(%arg0: i32, %arg1: i32) -> (i32, i32) {
    %c0_i32 = arith.constant 0 : i32
    %c0_i32_0 = arith.constant 0 : i32
    %c0_i32_1 = arith.constant 0 : i32
    return %c0_i32, %c0_i32_0 : i32, i32
  }
  func.func @transform_6(%arg0: i32, %arg1: i32) -> (i32, i32) {
    %c0_i32 = arith.constant 0 : i32
    %c0_i32_0 = arith.constant 0 : i32
    %c0_i32_1 = arith.constant 0 : i32
    return %c0_i32, %c0_i32_0 : i32, i32
  }
  func.func @transform_7(%arg0: i32, %arg1: i32) -> (i32, i32) {
    %c0_i32 = arith.constant 0 : i32
    %c0_i32_0 = arith.constant 0 : i32
    return %c0_i32, %arg0 : i32, i32
  }
}

</mosaic_0001>

<bundles_post_ra>
// kernel: tpu_custom_call.1
= control target key start
LH: loop header
LB: loop body
LE: loop exit
PB: predicated region body
PF: predicated region fallthrough
CT: control target
= control target key end

     0   :  { %s6761_s0 = inlined_call_operand.hbm [shape: bf16[512,1024], index: 0, kind: input, shape index: {}]   ;;  %s6762_s1 = inlined_call_operand.vmem [shape: bf16[1024,128], index: 1, kind: input, shape index: {}]   ;;  %s6763_s2 = inlined_call_operand.vmem [shape: f32[512,1], index: 2, kind: input, shape index: {}]   ;;  %s6764_s3 = inlined_call_operand.vmem [shape: bf16[256,512], index: 3, kind: input, shape index: {}]   ;;  %s6765_s4 = inlined_call_operand.vmem [shape: f32[256,1], index: 4, kind: input, shape index: {}]   ;;  %s6766_s5 = inlined_call_operand.vmem [shape: f32[256,1], index: 5, kind: input, shape index: {}]   ;;  %s6767_s6 = inlined_call_operand.<no memory space> [shape: f32[1,1], index: 6, kind: input, shape index: {}]   ;;  %s6768_s7 = inlined_call_operand.hbm [shape: f32[1,128], index: 7, kind: output, shape index: {}]  }
   0x1   :  { %v12_v0 = vstv %s6767_s6 }
   0x2   :  { %13 = vst [vmem:[#allocation3] sm:$0x1] %v12_v0 }
   0x3   :  { %14 = vsyncpa [#allocation5], 0 }
   0x4   :  { %16 = vsyncpa [#allocation5 + $0x1], 0 }
   0x5   :  { %17 = vsyncpa [#allocation6], 0  ;;  %s5500_s26 = smov 0   ;;  %s5502_s27 = smov 0  }
   0x6   :  { %s5504_s28 = smov 0   ;;  %s5506_s29 = smov 0  }
   0x7   :  { %s5508_s30 = smov 0   ;;  %s5510_s8 = smov 0  }
   0x8 LB: > { %s4122_s6 = sadd.s32 4294967295, %s5449_s8   ;;  %s32_s9 = sadd.s32 1, %s5445_s30  ;;  %s5449_s8 = sphi %s5510_s8, %s23_s8   ;;  %s5445_s30 = sphi %s5508_s30, %s6775_s30   ;;  %s5441_s29 = sphi %s5506_s29, %s6774_s29   ;;  %s5437_s28 = sphi %s5504_s28, %s6773_s28   ;;  %s5433_s27 = sphi %s5502_s27, %s6772_s27   ;;  %s5429_s26 = sphi %s5500_s26, %s6771_s26  }
   0x9   : > { %p33_p0 = scmp.ge.s32.totalorder %s32_s9, 2  ;;  %s42_s10 = sadd.s32 1, %s5437_s28 }
   0xa   : > { %p49_p1 = scmp.ne.s32.totalorder %s5437_s28, %s5433_s27  ;;  %p50_p2 = scmp.eq.s32.totalorder %s5449_s8, 0 }
   0xb   : > { %s6777_s9 = smov (%p33_p0, %s32_s9), 0  ;;  %p55_p4 = scmp.ne.s32.totalorder %s5433_s27, %s5429_s26 }
   0xc   : > { %p5536_p3 = por %p50_p2, %p49_p1  ;;  %s39_s12 = ssub.s32 %s5445_s30, %s6777_s9 }
   0xd   : > { %p56_p5 = scmp.eq.s32.totalorder %s4122_s6, 0  ;;  %p40_p6 = scmp.eq.s32.totalorder %s39_s12, 0 }
   0xe   : > { %p5270_p8 = scmp.lt.s32.totalorder %s5449_s8, 2  ;;  %s253_s15 = sand.u32 1, %s5437_s28  }
   0xf   : > { %p5545_p7 = por %p56_p5, %p55_p4  ;;  %s5035_s16 = sshll.u32 %s5445_s30, 4 }
  0x10   : > { %s5551_s14 = scalar_select %p40_p6, %s5437_s28, %s42_s10  }
  0x11   : > { %s4125_s17 = sshll.u32 %s253_s15, 10  ;;  %s262_s20 = scalar_lea.hbm %s6761_s0, %s5035_s16 }
  0x12   : > { %s263_s21 = sshll.u32 %s262_s20, 4  ;;  %s257_s22 = scalar_lea.vmem [#allocation4], %s4125_s17  ;;  %s264_s21 = int_to_ptr.hbm [resolvable:$true] %s263_s21 }
  0x13   : > { %s265_s23 = sshll.u32 %s257_s22, 4  ;;  %p5267_p9 = pnand %p5270_p8, %p5536_p3  ;;  %s266_s23 = int_to_ptr.vmem [resolvable:$true] %s265_s23 }
  0x14   : > { %p4128_p10 = scmp.ge.s32.totalorder %s5449_s8, 1  ;;  %s254_s24 = scalar_lea.sflag [#allocation5], %s253_s15 }
  0x15   : > { %s5451_s25 = smov 512   ;;  %s5452_s26 = smov 256  }
  0x16   : > { %s5453_s10 = smov 16   ;;  %p285_p11 = scmp.lt.s32.totalorder %s5449_s8, 3 }
  0x17   : > { %5269 = dma.hbm_to_vmem [thread:$0]  (!%p5267_p9), %s264_s21, 16384, %s266_s23, %s254_s24, %s5451_s25, %s5452_s26, %s5453_s10  }
  0x18   : > { %p286_p12 = pnand %p4128_p10, %p285_p11 }
  0x19   : > { %s291_s12 = sand.u32 (!%p286_p12), 1, %s5433_s27  }
  0x1a   : > { %289 = sbr.rel (%p286_p12) target bundleno = 1480 (0x5c8), region = 48  ;;  %s4129_s16 = sshll.u32 (!%p286_p12), %s291_s12, 10 }
  0x1b   : > { %s292_s18 = scalar_lea.sflag (!%p286_p12), [#allocation5], %s291_s12  ;;  %s5563_s17 = scalar_lea.vmem (!%p286_p12), [#allocation4], %s4129_s16 }
  0x1f   : > { %5420 = dma.done.wait (%p5545_p7), %s292_s18, 16384  }
  0x20   : > { %5422 = vsyncadd (%p5545_p7), %s292_s18, 4294950912  ;;  %s4130_s11 = sshll.u32 %s5441_s29, 6  ;;  %p4132_p0 = scmp.ne.s32.totalorder %s5441_s29, 0 }
  0x21   : > { %p332_p13 = scmp.lt.s32.totalorder %s4130_s11, 127 }
  0x22   : > { %343 = sbr.rel (%p4132_p0) target bundleno = 326 (0x146), region = 56 }
  0x23   : > { %s6779_s11 = smov (!%p332_p13, %s4130_s11), 127 }
  0x24   : > { %s4131_s15 = sshll.u32 %s6779_s11, 2 }
  0x25   : > { %s5573_s21 = scalar_lea.vmem %s6762_s1, %s4131_s15 }
  0x27   : > { %v348_v1 = vld [vmem:[%s6763_s2 + $0x20] sm:$0xff]  ;;  %v346_v2 = vld [vmem:[%s6763_s2 + $0x10] sm:$0xff]  ;;  %v5454_v4 = vmov 0   ;;  %v349_v5 = vld [vmem:[%s6763_s2 + $0x28] sm:$0xff] }
  0x28   : > { %v344_v3 = vld [vmem:[%s6763_s2] sm:$0xff]  ;;  %5329 = vset.pattern.permute.xlu2 %v5454_v4  ;;  %5328 = vset.pattern.permute.xlu1 %v5454_v4  ;;  %v347_v6 = vld [vmem:[%s6763_s2 + $0x18] sm:$0xff]  ;;  %v345_v7 = vld [vmem:[%s6763_s2 + $0x8] sm:$0xff] }
  0x29   : > { %5327 = vset.pattern.permute.xlu0 %v5454_v4  ;;  %430 = vperm.xlu2 %5329, %v348_v1   ;;  %v352_v8 = vld [vmem:[%s6763_s2 + $0x40] sm:$0xff]  ;;  %v351_v9 = vld [vmem:[%s6763_s2 + $0x38] sm:$0xff]  ;;  %v350_v10 = vld [vmem:[%s6763_s2 + $0x30] sm:$0xff] }
  0x2a   : > { %420 = vperm.xlu1 %5328, %v346_v2   ;;  %410 = vperm.xlu0 %5327, %v344_v3   ;;  %v355_v11 = vld [vmem:[%s6763_s2 + $0x58] sm:$0xff]  ;;  %v354_v12 = vld [vmem:[%s6763_s2 + $0x50] sm:$0xff]  ;;  %v353_v13 = vld [vmem:[%s6763_s2 + $0x48] sm:$0xff] }
  0x2b   : > { %v358_v14 = vld [vmem:[%s6763_s2 + $0x70] sm:$0xff]  ;;  %v357_v15 = vld [vmem:[%s6763_s2 + $0x68] sm:$0xff]  ;;  %v356_v16 = vld [vmem:[%s6763_s2 + $0x60] sm:$0xff] }
  0x2c   : > { %v361_v17 = vld [vmem:[%s6763_s2 + $0x88] sm:$0xff]  ;;  %v360_v18 = vld [vmem:[%s6763_s2 + $0x80] sm:$0xff]  ;;  %v359_v19 = vld [vmem:[%s6763_s2 + $0x78] sm:$0xff] }
  0x2d   : > { %v364_v20 = vld [vmem:[%s6763_s2 + $0xa0] sm:$0xff]  ;;  %v363_v21 = vld [vmem:[%s6763_s2 + $0x98] sm:$0xff]  ;;  %v362_v22 = vld [vmem:[%s6763_s2 + $0x90] sm:$0xff] }
  0x2e   : > { %v367_v23 = vld [vmem:[%s6763_s2 + $0xb8] sm:$0xff]  ;;  %v366_v24 = vld [vmem:[%s6763_s2 + $0xb0] sm:$0xff]  ;;  %v365_v25 = vld [vmem:[%s6763_s2 + $0xa8] sm:$0xff] }
  0x2f   : > { %v370_v26 = vld [vmem:[%s6763_s2 + $0xd0] sm:$0xff]  ;;  %v369_v27 = vld [vmem:[%s6763_s2 + $0xc8] sm:$0xff]  ;;  %v368_v28 = vld [vmem:[%s6763_s2 + $0xc0] sm:$0xff] }
  0x30   : > { %v373_v29 = vld [vmem:[%s6763_s2 + $0xe8] sm:$0xff]  ;;  %v372_v30 = vld [vmem:[%s6763_s2 + $0xe0] sm:$0xff]  ;;  %v371_v31 = vld [vmem:[%s6763_s2 + $0xd8] sm:$0xff] }
  0x31   : > { %435 = vperm.xlu2 %5329, %v349_v5   ;;  %v376_v32 = vld [vmem:[%s6763_s2 + $0x100] sm:$0xff]  ;;  %v375_v33 = vld [vmem:[%s6763_s2 + $0xf8] sm:$0xff]  ;;  %v374_v34 = vld [vmem:[%s6763_s2 + $0xf0] sm:$0xff] }
  0x32   : > { %425 = vperm.xlu1 %5328, %v347_v6   ;;  %415 = vperm.xlu0 %5327, %v345_v7   ;;  %v379_v35 = vld [vmem:[%s6763_s2 + $0x118] sm:$0xff]  ;;  %v378_v36 = vld [vmem:[%s6763_s2 + $0x110] sm:$0xff]  ;;  %v377_v37 = vld [vmem:[%s6763_s2 + $0x108] sm:$0xff] }
  0x33   : > { %v382_v39 = vld [vmem:[%s6763_s2 + $0x130] sm:$0xff]  ;;  %v381_v40 = vld [vmem:[%s6763_s2 + $0x128] sm:$0xff]  ;;  %v380_v41 = vld [vmem:[%s6763_s2 + $0x120] sm:$0xff] }
  0x34   : > { %v385_v43 = vld [vmem:[%s6763_s2 + $0x148] sm:$0xff]  ;;  %v384_v44 = vld [vmem:[%s6763_s2 + $0x140] sm:$0xff]  ;;  %v383_v45 = vld [vmem:[%s6763_s2 + $0x138] sm:$0xff] }
  0x35   : > { %v388_v47 = vld [vmem:[%s6763_s2 + $0x160] sm:$0xff]  ;;  %v387_v48 = vld [vmem:[%s6763_s2 + $0x158] sm:$0xff]  ;;  %v386_v49 = vld [vmem:[%s6763_s2 + $0x150] sm:$0xff] }
  0x36   : > { %v391_v53 = vld [vmem:[%s6763_s2 + $0x178] sm:$0xff]  ;;  %v390_v54 = vld [vmem:[%s6763_s2 + $0x170] sm:$0xff]  ;;  %v389_v55 = vld [vmem:[%s6763_s2 + $0x168] sm:$0xff] }
  0x37   : > { %v394_v59 = vld [vmem:[%s6763_s2 + $0x190] sm:$0xff]  ;;  %v393_v60 = vld [vmem:[%s6763_s2 + $0x188] sm:$0xff]  ;;  %v392_v61 = vld [vmem:[%s6763_s2 + $0x180] sm:$0xff] }
  0x38   : > { %v397_v1 = vld [vmem:[%s6763_s2 + $0x1a8] sm:$0xff]  ;;  %v396_v2 = vld [vmem:[%s6763_s2 + $0x1a0] sm:$0xff]  ;;  %v395_v3 = vld [vmem:[%s6763_s2 + $0x198] sm:$0xff] }
  0x39   : > { %450 = vperm.xlu2 %5329, %v352_v8   ;;  %v400_v7 = vld [vmem:[%s6763_s2 + $0x1c0] sm:$0xff]  ;;  %v399_v8 = vld [vmem:[%s6763_s2 + $0x1b8] sm:$0xff] }
  0x3a   : > { %445 = vperm.xlu1 %5328, %v351_v9   ;;  %440 = vperm.xlu0 %5327, %v350_v10   ;;  %v398_v9 = vld [vmem:[%s6763_s2 + $0x1b0] sm:$0xff] }
  0x41   : > { %465 = vperm.xlu2 %5329, %v355_v11  }
  0x42   : > { %460 = vperm.xlu1 %5328, %v354_v12   ;;  %455 = vperm.xlu0 %5327, %v353_v13   ;;  %v403_v13 = vld [vmem:[%s6763_s2 + $0x1d8] sm:$0xff] }
  0x49   : > { %480 = vperm.xlu2 %5329, %v358_v14   ;;  %v402_v14 = vld [vmem:[%s6763_s2 + $0x1d0] sm:$0xff] }
  0x4a   : > { %475 = vperm.xlu1 %5328, %v357_v15   ;;  %470 = vperm.xlu0 %5327, %v356_v16   ;;  %v401_v15 = vld [vmem:[%s6763_s2 + $0x1c8] sm:$0xff] }
  0x51   : > { %495 = vperm.xlu2 %5329, %v361_v17  }
  0x52   : > { %490 = vperm.xlu1 %5328, %v360_v18   ;;  %485 = vperm.xlu0 %5327, %v359_v19   ;;  %v406_v19 = vld [vmem:[%s6763_s2 + $0x1f0] sm:$0xff] }
  0x59   : > { %510 = vperm.xlu2 %5329, %v364_v20   ;;  %v405_v20 = vld [vmem:[%s6763_s2 + $0x1e8] sm:$0xff] }
  0x5a   : > { %505 = vperm.xlu1 %5328, %v363_v21   ;;  %500 = vperm.xlu0 %5327, %v362_v22   ;;  %v404_v21 = vld [vmem:[%s6763_s2 + $0x1e0] sm:$0xff] }
  0x61   : > { %525 = vperm.xlu2 %5329, %v367_v23  }
  0x62   : > { %520 = vperm.xlu1 %5328, %v366_v24   ;;  %515 = vperm.xlu0 %5327, %v365_v25   ;;  %v407_v25 = vld [vmem:[%s6763_s2 + $0x1f8] sm:$0xff] }
  0x69   : > { %540 = vperm.xlu2 %5329, %v370_v26  }
  0x6a   : > { %535 = vperm.xlu1 %5328, %v369_v27   ;;  %530 = vperm.xlu0 %5327, %v368_v28  }
  0x71   : > { %555 = vperm.xlu2 %5329, %v373_v29  }
  0x72   : > { %550 = vperm.xlu1 %5328, %v372_v30   ;;  %545 = vperm.xlu0 %5327, %v371_v31  }
  0x79   : > { %570 = vperm.xlu2 %5329, %v376_v32  }
  0x7a   : > { %565 = vperm.xlu1 %5328, %v375_v33   ;;  %560 = vperm.xlu0 %5327, %v374_v34  }
  0x81   : > { %585 = vperm.xlu2 %5329, %v379_v35  }
  0x82   : > { %580 = vperm.xlu1 %5328, %v378_v36   ;;  %575 = vperm.xlu0 %5327, %v377_v37  }
  0x83   : > { %v431_v38 = vpop.permute.xlu2 %430 }
  0x84   : > { %732 = vst [vmem:[#allocation2 + $0x50] sm:$0xff] %v431_v38 }
  0x89   : > { %600 = vperm.xlu2 %5329, %v382_v39  }
  0x8a   : > { %595 = vperm.xlu1 %5328, %v381_v40   ;;  %590 = vperm.xlu0 %5327, %v380_v41  }
  0x8b   : > { %v436_v42 = vpop.permute.xlu2 %435 }
  0x8c   : > { %733 = vst [vmem:[#allocation2 + $0x168] sm:$0xff] %v436_v42 }
  0x91   : > { %615 = vperm.xlu2 %5329, %v385_v43  }
  0x92   : > { %610 = vperm.xlu1 %5328, %v384_v44   ;;  %605 = vperm.xlu0 %5327, %v383_v45  }
  0x93   : > { %v451_v46 = vpop.permute.xlu2 %450 }
  0x94   : > { %736 = vst [vmem:[#allocation2 + $0x180] sm:$0xff] %v451_v46 }
  0x99   : > { %630 = vperm.xlu2 %5329, %v388_v47  }
  0x9a   : > { %625 = vperm.xlu1 %5328, %v387_v48   ;;  %620 = vperm.xlu0 %5327, %v386_v49  }
  0x9b   : > { %v466_v50 = vpop.permute.xlu2 %465 }
  0x9c   : > { %739 = vst [vmem:[#allocation2 + $0x98] sm:$0xff] %v466_v50  ;;  %v421_v51 = vpop.permute.xlu1 %420  ;;  %v411_v52 = vpop.permute.xlu0 %410 }
  0x9d   : > { %730 = vst [vmem:[#allocation2 + $0xd8] sm:$0xff] %v421_v51 }
  0x9e   : > { %728 = vst [vmem:[#allocation2 + $0xb0] sm:$0xff] %v411_v52 }
  0xa1   : > { %645 = vperm.xlu2 %5329, %v391_v53  }
  0xa2   : > { %640 = vperm.xlu1 %5328, %v390_v54   ;;  %635 = vperm.xlu0 %5327, %v389_v55  }
  0xa3   : > { %v481_v56 = vpop.permute.xlu2 %480 }
  0xa4   : > { %742 = vst [vmem:[#allocation2 + $0x108] sm:$0xff] %v481_v56  ;;  %v426_v57 = vpop.permute.xlu1 %425  ;;  %v416_v58 = vpop.permute.xlu0 %415 }
  0xa5   : > { %731 = vst [vmem:[#allocation2 + $0x18] sm:$0xff] %v426_v57 }
  0xa6   : > { %729 = vst [vmem:[#allocation2 + $0x1b0] sm:$0xff] %v416_v58 }
  0xa9   : > { %660 = vperm.xlu2 %5329, %v394_v59  }
  0xaa   : > { %655 = vperm.xlu1 %5328, %v393_v60   ;;  %650 = vperm.xlu0 %5327, %v392_v61  }
  0xab   : > { %v496_v62 = vpop.permute.xlu2 %495 }
  0xac   : > { %745 = vst [vmem:[#allocation2 + $0x188] sm:$0xff] %v496_v62  ;;  %v446_v63 = vpop.permute.xlu1 %445  ;;  %v441_v0 = vpop.permute.xlu0 %440 }
  0xad   : > { %735 = vst [vmem:[#allocation2 + $0x48] sm:$0xff] %v446_v63 }
  0xae   : > { %734 = vst [vmem:[#allocation2 + $0x130] sm:$0xff] %v441_v0 }
  0xb1   : > { %675 = vperm.xlu2 %5329, %v397_v1  }
  0xb2   : > { %670 = vperm.xlu1 %5328, %v396_v2   ;;  %665 = vperm.xlu0 %5327, %v395_v3  }
  0xb3   : > { %v511_v4 = vpop.permute.xlu2 %510 }
  0xb4   : > { %748 = vst [vmem:[#allocation2 + $0x80] sm:$0xff] %v511_v4  ;;  %v461_v5 = vpop.permute.xlu1 %460  ;;  %v456_v6 = vpop.permute.xlu0 %455 }
  0xb5   : > { %738 = vst [vmem:[#allocation2 + $0x118] sm:$0xff] %v461_v5 }
  0xb6   : > { %737 = vst [vmem:[#allocation2 + $0x110] sm:$0xff] %v456_v6 }
  0xb9   : > { %690 = vperm.xlu2 %5329, %v400_v7  }
  0xba   : > { %685 = vperm.xlu1 %5328, %v399_v8   ;;  %680 = vperm.xlu0 %5327, %v398_v9  }
  0xbb   : > { %v526_v10 = vpop.permute.xlu2 %525 }
  0xbc   : > { %751 = vst [vmem:[#allocation2 + $0x28] sm:$0xff] %v526_v10  ;;  %v476_v11 = vpop.permute.xlu1 %475  ;;  %v471_v12 = vpop.permute.xlu0 %470 }
  0xbd   : > { %741 = vst [vmem:[#allocation2 + $0x150] sm:$0xff] %v476_v11 }
  0xbe   : > { %740 = vst [vmem:[#allocation2 + $0x120] sm:$0xff] %v471_v12 }
  0xc1   : > { %705 = vperm.xlu2 %5329, %v403_v13  }
  0xc2   : > { %700 = vperm.xlu1 %5328, %v402_v14   ;;  %695 = vperm.xlu0 %5327, %v401_v15  }
  0xc3   : > { %v541_v16 = vpop.permute.xlu2 %540 }
  0xc4   : > { %754 = vst [vmem:[#allocation2 + $0x160] sm:$0xff] %v541_v16  ;;  %v491_v17 = vpop.permute.xlu1 %490  ;;  %v486_v18 = vpop.permute.xlu0 %485 }
  0xc5   : > { %744 = vst [vmem:[#allocation2 + $0xe0] sm:$0xff] %v491_v17 }
  0xc6   : > { %743 = vst [vmem:[#allocation2 + $0x60] sm:$0xff] %v486_v18 }
  0xc9   : > { %720 = vperm.xlu2 %5329, %v406_v19  }
  0xca   : > { %715 = vperm.xlu1 %5328, %v405_v20   ;;  %710 = vperm.xlu0 %5327, %v404_v21  }
  0xcb   : > { %v556_v22 = vpop.permute.xlu2 %555 }
  0xcc   : > { %757 = vst [vmem:[#allocation2] sm:$0xff] %v556_v22  ;;  %v506_v23 = vpop.permute.xlu1 %505  ;;  %v501_v24 = vpop.permute.xlu0 %500 }
  0xcd   : > { %747 = vst [vmem:[#allocation2 + $0x140] sm:$0xff] %v506_v23 }
  0xce   : > { %746 = vst [vmem:[#allocation2 + $0x138] sm:$0xff] %v501_v24 }
  0xd2   : > { %725 = vperm.xlu0 %5327, %v407_v25  }
  0xd3   : > { %v571_v26 = vpop.permute.xlu2 %570 }
  0xd4   : > { %760 = vst [vmem:[#allocation2 + $0x148] sm:$0xff] %v571_v26  ;;  %v521_v27 = vpop.permute.xlu1 %520  ;;  %v516_v28 = vpop.permute.xlu0 %515 }
  0xd5   : > { %750 = vst [vmem:[#allocation2 + $0x1b8] sm:$0xff] %v521_v27 }
  0xd6   : > { %749 = vst [vmem:[#allocation2 + $0x1a8] sm:$0xff] %v516_v28 }
  0xdb   : > { %v586_v29 = vpop.permute.xlu2 %585 }
  0xdc   : > { %763 = vst [vmem:[#allocation2 + $0xc8] sm:$0xff] %v586_v29  ;;  %v536_v30 = vpop.permute.xlu1 %535  ;;  %v531_v31 = vpop.permute.xlu0 %530 }
  0xdd   : > { %753 = vst [vmem:[#allocation2 + $0xf8] sm:$0xff] %v536_v30 }
  0xde   : > { %752 = vst [vmem:[#allocation2 + $0x1e8] sm:$0xff] %v531_v31 }
  0xe3   : > { %v601_v32 = vpop.permute.xlu2 %600 }
  0xe4   : > { %766 = vst [vmem:[#allocation2 + $0x20] sm:$0xff] %v601_v32  ;;  %v551_v33 = vpop.permute.xlu1 %550  ;;  %v546_v34 = vpop.permute.xlu0 %545 }
  0xe5   : > { %756 = vst [vmem:[#allocation2 + $0x1e0] sm:$0xff] %v551_v33 }
  0xe6   : > { %755 = vst [vmem:[#allocation2 + $0x30] sm:$0xff] %v546_v34 }
  0xeb   : > { %v616_v35 = vpop.permute.xlu2 %615 }
  0xec   : > { %769 = vst [vmem:[#allocation2 + $0x1f0] sm:$0xff] %v616_v35  ;;  %v566_v36 = vpop.permute.xlu1 %565  ;;  %v561_v37 = vpop.permute.xlu0 %560 }
  0xed   : > { %759 = vst [vmem:[#allocation2 + $0x8] sm:$0xff] %v566_v36 }
  0xee   : > { %758 = vst [vmem:[#allocation2 + $0xf0] sm:$0xff] %v561_v37 }
  0xf3   : > { %v631_v38 = vpop.permute.xlu2 %630 }
  0xf4   : > { %772 = vst [vmem:[#allocation2 + $0x70] sm:$0xff] %v631_v38  ;;  %v581_v39 = vpop.permute.xlu1 %580  ;;  %v576_v40 = vpop.permute.xlu0 %575 }
  0xf5   : > { %762 = vst [vmem:[#allocation2 + $0x100] sm:$0xff] %v581_v39 }
  0xf6   : > { %761 = vst [vmem:[#allocation2 + $0x1d0] sm:$0xff] %v576_v40 }
  0xfb   : > { %v646_v41 = vpop.permute.xlu2 %645 }
  0xfc   : > { %775 = vst [vmem:[#allocation2 + $0xd0] sm:$0xff] %v646_v41  ;;  %v596_v42 = vpop.permute.xlu1 %595  ;;  %v591_v43 = vpop.permute.xlu0 %590 }
  0xfd   : > { %765 = vst [vmem:[#allocation2 + $0x1f8] sm:$0xff] %v596_v42 }
  0xfe   : > { %764 = vst [vmem:[#allocation2 + $0x40] sm:$0xff] %v591_v43 }
 0x103   : > { %v661_v44 = vpop.permute.xlu2 %660 }
 0x104   : > { %778 = vst [vmem:[#allocation2 + $0xa8] sm:$0xff] %v661_v44  ;;  %v611_v45 = vpop.permute.xlu1 %610  ;;  %v606_v46 = vpop.permute.xlu0 %605 }
 0x105   : > { %768 = vst [vmem:[#allocation2 + $0x1a0] sm:$0xff] %v611_v45 }
 0x106   : > { %767 = vst [vmem:[#allocation2 + $0x128] sm:$0xff] %v606_v46 }
 0x10b   : > { %v676_v47 = vpop.permute.xlu2 %675 }
 0x10c   : > { %781 = vst [vmem:[#allocation2 + $0x178] sm:$0xff] %v676_v47  ;;  %v626_v48 = vpop.permute.xlu1 %625  ;;  %v621_v49 = vpop.permute.xlu0 %620 }
 0x10d   : > { %771 = vst [vmem:[#allocation2 + $0x78] sm:$0xff] %v626_v48 }
 0x10e   : > { %770 = vst [vmem:[#allocation2 + $0xe8] sm:$0xff] %v621_v49 }
 0x113   : > { %v691_v50 = vpop.permute.xlu2 %690 }
 0x114   : > { %784 = vst [vmem:[#allocation2 + $0x198] sm:$0xff] %v691_v50  ;;  %v641_v51 = vpop.permute.xlu1 %640  ;;  %v636_v52 = vpop.permute.xlu0 %635 }
 0x115   : > { %774 = vst [vmem:[#allocation2 + $0x1d8] sm:$0xff] %v641_v51 }
 0x116   : > { %773 = vst [vmem:[#allocation2 + $0x90] sm:$0xff] %v636_v52 }
 0x11b   : > { %v706_v53 = vpop.permute.xlu2 %705 }
 0x11c   : > { %787 = vst [vmem:[#allocation2 + $0x1c0] sm:$0xff] %v706_v53  ;;  %v656_v54 = vpop.permute.xlu1 %655  ;;  %v651_v55 = vpop.permute.xlu0 %650 }
 0x11d   : > { %777 = vst [vmem:[#allocation2 + $0x88] sm:$0xff] %v656_v54 }
 0x11e   : > { %776 = vst [vmem:[#allocation2 + $0xb8] sm:$0xff] %v651_v55 }
 0x123   : > { %v721_v56 = vpop.permute.xlu2 %720 }
 0x124   : > { %790 = vst [vmem:[#allocation2 + $0x58] sm:$0xff] %v721_v56  ;;  %v671_v57 = vpop.permute.xlu1 %670  ;;  %v666_v58 = vpop.permute.xlu0 %665 }
 0x125   : > { %780 = vst [vmem:[#allocation2 + $0x170] sm:$0xff] %v671_v57 }
 0x126   : > { %779 = vst [vmem:[#allocation2 + $0x1c8] sm:$0xff] %v666_v58 }
 0x12c   : > { %v686_v59 = vpop.permute.xlu1 %685  ;;  %v681_v60 = vpop.permute.xlu0 %680 }
 0x12d   : > { %783 = vst [vmem:[#allocation2 + $0x190] sm:$0xff] %v686_v59 }
 0x12e   : > { %782 = vst [vmem:[#allocation2 + $0x68] sm:$0xff] %v681_v60 }
 0x134   : > { %v701_v61 = vpop.permute.xlu1 %700  ;;  %v696_v62 = vpop.permute.xlu0 %695 }
 0x135   : > { %786 = vst [vmem:[#allocation2 + $0xc0] sm:$0xff] %v701_v61 }
 0x136   : > { %785 = vst [vmem:[#allocation2 + $0x38] sm:$0xff] %v696_v62 }
 0x13c   : > { %v716_v63 = vpop.permute.xlu1 %715  ;;  %v711_v0 = vpop.permute.xlu0 %710 }
 0x13d   : > { %789 = vst [vmem:[#allocation2 + $0x10] sm:$0xff] %v716_v63 }
 0x13e   : > { %788 = vst [vmem:[#allocation2 + $0x158] sm:$0xff] %v711_v0 }
 0x144   : > { %v726_v1 = vpop.permute.xlu0 %725 }
 0x145   : > { %791 = vst [vmem:[#allocation2 + $0xa0] sm:$0xff] %v726_v1 }
 0x146 PF: > { %v5171_v2 = vld [vmem:[%s5573_s21 + $0x38] sm:$0xff]  ;;  %v5170_v6 = vld [vmem:[%s5573_s21 + $0x30] sm:$0xff]  ;;  %v5169_v10 = vld [vmem:[%s5573_s21 + $0x28] sm:$0xff]  ;;  %p4773_p1 = scmp.ne.s32.totalorder %s5441_s29, 1 }
 0x147   : > { %v5179_v3 = vld [vmem:[%s5573_s21 + $0x78] sm:$0xff]  ;;  %1880 = vmatpush.bf16.msra.mxu0 %v5171_v2  ;;  %v5178_v7 = vld [vmem:[%s5573_s21 + $0x70] sm:$0xff]  ;;  %v5177_v11 = vld [vmem:[%s5573_s21 + $0x68] sm:$0xff] }
 0x148   : > { %v5187_v4 = vld [vmem:[%s5573_s21 + $0xb8] sm:$0xff]  ;;  %2049 = vmatpush.bf16.msra.mxu1 %v5179_v3  ;;  %v5186_v8 = vld [vmem:[%s5573_s21 + $0xb0] sm:$0xff]  ;;  %v5185_v12 = vld [vmem:[%s5573_s21 + $0xa8] sm:$0xff] }
 0x149   : > { %v5195_v5 = vld [vmem:[%s5573_s21 + $0xf8] sm:$0xff]  ;;  %2218 = vmatpush.bf16.msra.mxu2 %v5187_v4  ;;  %v5194_v9 = vld [vmem:[%s5573_s21 + $0xf0] sm:$0xff]  ;;  %v5193_v13 = vld [vmem:[%s5573_s21 + $0xe8] sm:$0xff] }
 0x14a   : > { %2387 = vmatpush.bf16.msra.mxu3 %v5195_v5  ;;  %v5168_v14 = vld [vmem:[%s5573_s21 + $0x20] sm:$0xff]  ;;  %v5167_v18 = vld [vmem:[%s5573_s21 + $0x18] sm:$0xff]  ;;  %v5166_v22 = vld [vmem:[%s5573_s21 + $0x10] sm:$0xff] }
 0x14b   : > { %1881 = vmatpush.bf16.msra.mxu0 %v5170_v6  ;;  %v5176_v15 = vld [vmem:[%s5573_s21 + $0x60] sm:$0xff]  ;;  %v5175_v19 = vld [vmem:[%s5573_s21 + $0x58] sm:$0xff]  ;;  %v5174_v23 = vld [vmem:[%s5573_s21 + $0x50] sm:$0xff] }
 0x14c   : > { %2050 = vmatpush.bf16.msra.mxu1 %v5178_v7  ;;  %v5184_v16 = vld [vmem:[%s5573_s21 + $0xa0] sm:$0xff]  ;;  %v5183_v20 = vld [vmem:[%s5573_s21 + $0x98] sm:$0xff]  ;;  %v5182_v24 = vld [vmem:[%s5573_s21 + $0x90] sm:$0xff] }
 0x14d   : > { %2219 = vmatpush.bf16.msra.mxu2 %v5186_v8  ;;  %v5192_v17 = vld [vmem:[%s5573_s21 + $0xe0] sm:$0xff]  ;;  %v5191_v21 = vld [vmem:[%s5573_s21 + $0xd8] sm:$0xff]  ;;  %v5190_v25 = vld [vmem:[%s5573_s21 + $0xd0] sm:$0xff] }
 0x14e   : > { %2388 = vmatpush.bf16.msra.mxu3 %v5194_v9  ;;  %v5165_v26 = vld [vmem:[%s5573_s21 + $0x8] sm:$0xff]  ;;  %v5164_v30 = vld [vmem:[%s5573_s21] sm:$0xff]  ;;  %v5038_v35 = vld [vmem:[%s5563_s17 + $0xc] sm:$0xf0] }
 0x14f   : > { %1882 = vmatpush.bf16.msra.mxu0 %v5169_v10  ;;  %v5173_v27 = vld [vmem:[%s5573_s21 + $0x48] sm:$0xff]  ;;  %v5172_v31 = vld [vmem:[%s5573_s21 + $0x40] sm:$0xff]  ;;  %v4137_v37 = vld [vmem:[%s5563_s17 + $0x10] sm:$0xf0] }
 0x150   : > { %2051 = vmatpush.bf16.msra.mxu1 %v5177_v11  ;;  %v5181_v28 = vld [vmem:[%s5573_s21 + $0x88] sm:$0xff]  ;;  %v5180_v32 = vld [vmem:[%s5573_s21 + $0x80] sm:$0xff]  ;;  %v5039_v39 = vld [vmem:[%s5563_s17 + $0x14] sm:$0xf0] }
 0x151   : > { %2220 = vmatpush.bf16.msra.mxu2 %v5185_v12  ;;  %v5189_v29 = vld [vmem:[%s5573_s21 + $0xc8] sm:$0xff]  ;;  %v5188_v33 = vld [vmem:[%s5573_s21 + $0xc0] sm:$0xff]  ;;  %v5042_v47 = vld [vmem:[%s5563_s17 + $0x2c] sm:$0xf0] }
 0x152   : > { %2389 = vmatpush.bf16.msra.mxu3 %v5193_v13  ;;  %v4135_v34 = vld [vmem:[%s5563_s17] sm:$0xf]  ;;  %v5036_v36 = vld [vmem:[%s5563_s17 + $0x4] sm:$0xf]  ;;  %v4143_v38 = vld [vmem:[%s5563_s17 + $0x8] sm:$0xf] }
 0x153   : > { %1883 = vmatpush.bf16.msra.mxu0 %v5168_v14  ;;  %v5037_v40 = vld [vmem:[%s5563_s17 + $0xc] sm:$0xf]  ;;  %v4145_v41 = vld [vmem:[%s5563_s17 + $0x18] sm:$0xf0]  ;;  %v4136_v42 = vor.u32 %v5038_v35, %v4135_v34  ;;  %v4140_v43 = vor.u32 %v5036_v36, %v4137_v37  ;;  %v4144_v44 = vor.u32 %v5039_v39, %v4143_v38  ;;  %v4151_v46 = vld [vmem:[%s5563_s17 + $0x20] sm:$0xf] }
 0x154   : > { %2052 = vmatpush.bf16.msra.mxu1 %v5176_v15  ;;  %v4148_v45 = vor.u32 %v5037_v40, %v4145_v41  ;;  %v5040_v48 = vld [vmem:[%s5563_s17 + $0x24] sm:$0xf]  ;;  %v4153_v49 = vld [vmem:[%s5563_s17 + $0x30] sm:$0xf0]  ;;  %v4159_v50 = vld [vmem:[%s5563_s17 + $0x28] sm:$0xf]  ;;  %v4152_v54 = vor.u32 %v5042_v47, %v4151_v46 }
 0x155   : > { %2221 = vmatpush.bf16.msra.mxu2 %v5184_v16  ;;  %v5043_v51 = vld [vmem:[%s5563_s17 + $0x34] sm:$0xf0]  ;;  %v5041_v52 = vld [vmem:[%s5563_s17 + $0x2c] sm:$0xf]  ;;  %v4161_v53 = vld [vmem:[%s5563_s17 + $0x38] sm:$0xf0]  ;;  %v4156_v55 = vor.u32 %v5040_v48, %v4153_v49 }
 0x156   : > { %2390 = vmatpush.bf16.msra.mxu3 %v5192_v17  ;;  %v4160_v56 = vor.u32 %v5043_v51, %v4159_v50  ;;  %v4164_v57 = vor.u32 %v5041_v52, %v4161_v53  ;;  %v4167_v58 = vld [vmem:[%s5563_s17 + $0x40] sm:$0xf]  ;;  %v5046_v59 = vld [vmem:[%s5563_s17 + $0x4c] sm:$0xf0]  ;;  %v5044_v60 = vld [vmem:[%s5563_s17 + $0x44] sm:$0xf] }
 0x157   : > { %1884 = vmatpush.bf16.msra.mxu0 %v5167_v18  ;;  %v4169_v61 = vld [vmem:[%s5563_s17 + $0x50] sm:$0xf0]  ;;  %v4175_v62 = vld [vmem:[%s5563_s17 + $0x48] sm:$0xf]  ;;  %v5047_v63 = vld [vmem:[%s5563_s17 + $0x54] sm:$0xf0]  ;;  %v4168_v2 = vor.u32 %v5046_v59, %v4167_v58 }
 0x158   : > { %2053 = vmatpush.bf16.msra.mxu1 %v5175_v19  ;;  %v5045_v0 = vld [vmem:[%s5563_s17 + $0x4c] sm:$0xf]  ;;  %v4177_v1 = vld [vmem:[%s5563_s17 + $0x58] sm:$0xf0]  ;;  %v4172_v3 = vor.u32 %v5044_v60, %v4169_v61  ;;  %v4176_v4 = vor.u32 %v5047_v63, %v4175_v62  ;;  %v4183_v6 = vld [vmem:[%s5563_s17 + $0x60] sm:$0xf] }
 0x159   : > { %2222 = vmatpush.bf16.msra.mxu2 %v5183_v20  ;;  %v4180_v5 = vor.u32 %v5045_v0, %v4177_v1  ;;  %v5050_v7 = vld [vmem:[%s5563_s17 + $0x6c] sm:$0xf0]  ;;  %v5048_v8 = vld [vmem:[%s5563_s17 + $0x64] sm:$0xf]  ;;  %v4185_v9 = vld [vmem:[%s5563_s17 + $0x70] sm:$0xf0] }
 0x15a   : > { %2391 = vmatpush.bf16.msra.mxu3 %v5191_v21  ;;  %v4191_v10 = vld [vmem:[%s5563_s17 + $0x68] sm:$0xf]  ;;  %v5051_v11 = vld [vmem:[%s5563_s17 + $0x74] sm:$0xf0]  ;;  %v5049_v12 = vld [vmem:[%s5563_s17 + $0x6c] sm:$0xf]  ;;  %v4184_v14 = vor.u32 %v5050_v7, %v4183_v6  ;;  %v4188_v15 = vor.u32 %v5048_v8, %v4185_v9 }
 0x15b   : > { %1885 = vmatpush.bf16.msra.mxu0 %v5166_v22  ;;  %v4193_v13 = vld [vmem:[%s5563_s17 + $0x78] sm:$0xf0]  ;;  %v4192_v16 = vor.u32 %v5051_v11, %v4191_v10  ;;  %v4199_v18 = vld [vmem:[%s5563_s17 + $0x80] sm:$0xf]  ;;  %v5054_v19 = vld [vmem:[%s5563_s17 + $0x8c] sm:$0xf0] }
 0x15c   : > { %2054 = vmatpush.bf16.msra.mxu1 %v5174_v23  ;;  %v4196_v17 = vor.u32 %v5049_v12, %v4193_v13  ;;  %v5052_v20 = vld [vmem:[%s5563_s17 + $0x84] sm:$0xf]  ;;  %v4201_v21 = vld [vmem:[%s5563_s17 + $0x90] sm:$0xf0]  ;;  %v4207_v22 = vld [vmem:[%s5563_s17 + $0x88] sm:$0xf] }
 0x15d   : > { %2223 = vmatpush.bf16.msra.mxu2 %v5182_v24  ;;  %v5055_v23 = vld [vmem:[%s5563_s17 + $0x94] sm:$0xf0]  ;;  %v5053_v24 = vld [vmem:[%s5563_s17 + $0x8c] sm:$0xf]  ;;  %v4223_v34 = vld [vmem:[%s5563_s17 + $0xa8] sm:$0xf] }
 0x15e   : > { %2392 = vmatpush.bf16.msra.mxu3 %v5190_v25  ;;  %v4209_v25 = vld [vmem:[%s5563_s17 + $0x98] sm:$0xf0]  ;;  %v5059_v35 = vld [vmem:[%s5563_s17 + $0xb4] sm:$0xf0]  ;;  %v5057_v36 = vld [vmem:[%s5563_s17 + $0xac] sm:$0xf] }
 0x15f   : > { %1886 = vmatpush.bf16.msra.mxu0 %v5165_v26  ;;  %v4200_v26 = vor.u32 %v5054_v19, %v4199_v18  ;;  %v4225_v37 = vld [vmem:[%s5563_s17 + $0xb8] sm:$0xf0]  ;;  %v4224_v40 = vor.u32 %v5059_v35, %v4223_v34  ;;  %v4239_v46 = vld [vmem:[%s5563_s17 + $0xc8] sm:$0xf]  ;;  %v5063_v47 = vld [vmem:[%s5563_s17 + $0xd4] sm:$0xf0] }
 0x160   : > { %2055 = vmatpush.bf16.msra.mxu1 %v5173_v27  ;;  %v4204_v27 = vor.u32 %v5052_v20, %v4201_v21  ;;  %v4228_v41 = vor.u32 %v5057_v36, %v4225_v37  ;;  %v5061_v48 = vld [vmem:[%s5563_s17 + $0xcc] sm:$0xf]  ;;  %v4241_v49 = vld [vmem:[%s5563_s17 + $0xd8] sm:$0xf0]  ;;  %v4240_v52 = vor.u32 %v5063_v47, %v4239_v46  ;;  %v4255_v58 = vld [vmem:[%s5563_s17 + $0xe8] sm:$0xf] }
 0x161   : > { %2224 = vmatpush.bf16.msra.mxu2 %v5181_v28  ;;  %v4208_v28 = vor.u32 %v5055_v23, %v4207_v22  ;;  %v4244_v53 = vor.u32 %v5061_v48, %v4241_v49  ;;  %v5067_v59 = vld [vmem:[%s5563_s17 + $0xf4] sm:$0xf0]  ;;  %v5065_v60 = vld [vmem:[%s5563_s17 + $0xec] sm:$0xf]  ;;  %v4257_v61 = vld [vmem:[%s5563_s17 + $0xf8] sm:$0xf0] }
 0x162   : > { %2393 = vmatpush.bf16.msra.mxu3 %v5189_v29  ;;  %v4212_v29 = vor.u32 %v5053_v24, %v4209_v25  ;;  %v4256_v0 = vor.u32 %v5067_v59, %v4255_v58  ;;  %v4260_v1 = vor.u32 %v5065_v60, %v4257_v61  ;;  %v4271_v6 = vld [vmem:[%s5563_s17 + $0x108] sm:$0xf]  ;;  %v5071_v7 = vld [vmem:[%s5563_s17 + $0x114] sm:$0xf0]  ;;  %v5069_v8 = vld [vmem:[%s5563_s17 + $0x10c] sm:$0xf] }
 0x163   : > { %1887 = vmatpush.bf16.msra.mxu0 %v5164_v30  ;;  %v4215_v30 = vld [vmem:[%s5563_s17 + $0xa0] sm:$0xf]  ;;  %v4273_v9 = vld [vmem:[%s5563_s17 + $0x118] sm:$0xf0]  ;;  %v792_v22 = vld [vmem:[#allocation2 + $0xb0] sm:$0xff] }
 0x164   : > { %2056 = vmatpush.bf16.msra.mxu1 %v5172_v31  ;;  %v5058_v31 = vld [vmem:[%s5563_s17 + $0xac] sm:$0xf0]  ;;  %v4279_v24 = vld [vmem:[%s5563_s17 + $0x120] sm:$0xf]  ;;  %v4297_v58 = vld [vmem:[%s5563_s17 + $0x150] sm:$0xf0] }
 0x165   : > { %2225 = vmatpush.bf16.msra.mxu2 %v5180_v32  ;;  %v5056_v32 = vld [vmem:[%s5563_s17 + $0xa4] sm:$0xf]  ;;  %v4216_v38 = vor.u32 %v5058_v31, %v4215_v30  ;;  %v5074_v25 = vld [vmem:[%s5563_s17 + $0x12c] sm:$0xf0]  ;;  %v5075_v30 = vld [vmem:[%s5563_s17 + $0x134] sm:$0xf0] }
 0x166   : > { %2394 = vmatpush.bf16.msra.mxu3 %v5188_v33  ;;  %1888 = vmatmul.bf16.vlgmr.msra.gmra.mxu0 %v4136_v42  ;;  %v4217_v33 = vld [vmem:[%s5563_s17 + $0xb0] sm:$0xf0]  ;;  %v4231_v42 = vld [vmem:[%s5563_s17 + $0xc0] sm:$0xf]  ;;  %v5073_v31 = vld [vmem:[%s5563_s17 + $0x12c] sm:$0xf]  ;;  %v4280_v36 = vor.u32 %v5074_v25, %v4279_v24 }
 0x167   : > { %2057 = vmatmul.bf16.vlgmr.msra.gmra.mxu1 %v4140_v43  ;;  %v4220_v39 = vor.u32 %v5056_v32, %v4217_v33  ;;  %v5062_v43 = vld [vmem:[%s5563_s17 + $0xcc] sm:$0xf0]  ;;  %v4289_v32 = vld [vmem:[%s5563_s17 + $0x138] sm:$0xf0]  ;;  %v4303_v59 = vld [vmem:[%s5563_s17 + $0x148] sm:$0xf] }
 0x168   : > { %2226 = vmatmul.bf16.vlgmr.msra.gmra.mxu2 %v4144_v44  ;;  %v5060_v44 = vld [vmem:[%s5563_s17 + $0xc4] sm:$0xf]  ;;  %v4232_v50 = vor.u32 %v5062_v43, %v4231_v42  ;;  %v4292_v42 = vor.u32 %v5073_v31, %v4289_v32  ;;  %v793_v43 = vld [vmem:[#allocation2 + $0x1b0] sm:$0xff]  ;;  %v5079_v60 = vld [vmem:[%s5563_s17 + $0x154] sm:$0xf0] }
 0x169   : > { %2395 = vmatmul.bf16.vlgmr.msra.gmra.mxu3 %v4148_v45  ;;  %v4233_v45 = vld [vmem:[%s5563_s17 + $0xd0] sm:$0xf0]  ;;  %v5077_v61 = vld [vmem:[%s5563_s17 + $0x14c] sm:$0xf]  ;;  %v4319_v25 = vld [vmem:[%s5563_s17 + $0x168] sm:$0xf] }
 0x16a   : > { %v4236_v51 = vor.u32 %v5060_v44, %v4233_v45  ;;  %v4313_v24 = vld [vmem:[%s5563_s17 + $0x170] sm:$0xf0] }
 0x176   : > { %1893 = vmatmul.bf16.gmra.mxu0 %v4152_v54  ;;  %v4247_v54 = vld [vmem:[%s5563_s17 + $0xe0] sm:$0xf] }
 0x177   : > { %2062 = vmatmul.bf16.gmra.mxu1 %v4156_v55  ;;  %v5066_v55 = vld [vmem:[%s5563_s17 + $0xec] sm:$0xf0] }
 0x178   : > { %2231 = vmatmul.bf16.gmra.mxu2 %v4160_v56  ;;  %v5064_v56 = vld [vmem:[%s5563_s17 + $0xe4] sm:$0xf]  ;;  %v4248_v62 = vor.u32 %v5066_v55, %v4247_v54  ;;  %v4295_v54 = vld [vmem:[%s5563_s17 + $0x140] sm:$0xf]  ;;  %v5078_v55 = vld [vmem:[%s5563_s17 + $0x14c] sm:$0xf0] }
 0x179   : > { %2400 = vmatmul.bf16.gmra.mxu3 %v4164_v57  ;;  %v4249_v57 = vld [vmem:[%s5563_s17 + $0xf0] sm:$0xf0] }
 0x17a   : > { %v4252_v63 = vor.u32 %v5064_v56, %v4249_v57  ;;  %v5076_v57 = vld [vmem:[%s5563_s17 + $0x144] sm:$0xf] }
 0x186   : > { %1898 = vmatmul.bf16.gmra.mxu0 %v4168_v2  ;;  %v4263_v2 = vld [vmem:[%s5563_s17 + $0x100] sm:$0xf] }
 0x187   : > { %2067 = vmatmul.bf16.gmra.mxu1 %v4172_v3  ;;  %v5070_v3 = vld [vmem:[%s5563_s17 + $0x10c] sm:$0xf0] }
 0x188   : > { %2236 = vmatmul.bf16.gmra.mxu2 %v4176_v4  ;;  %v5068_v4 = vld [vmem:[%s5563_s17 + $0x104] sm:$0xf]  ;;  %v4264_v10 = vor.u32 %v5070_v3, %v4263_v2  ;;  %v4296_v2 = vor.u32 %v5078_v55, %v4295_v54  ;;  %v4300_v3 = vor.u32 %v5076_v57, %v4297_v58  ;;  %v4329_v54 = vld [vmem:[%s5563_s17 + $0x190] sm:$0xf0]  ;;  %v4335_v55 = vld [vmem:[%s5563_s17 + $0x188] sm:$0xf] }
 0x189   : > { %2405 = vmatmul.bf16.gmra.mxu3 %v4180_v5  ;;  %v4265_v5 = vld [vmem:[%s5563_s17 + $0x110] sm:$0xf0]  ;;  %v5085_v57 = vld [vmem:[%s5563_s17 + $0x18c] sm:$0xf]  ;;  %v4337_v58 = vld [vmem:[%s5563_s17 + $0x198] sm:$0xf0] }
 0x18a   : > { %v4268_v11 = vor.u32 %v5068_v4, %v4265_v5 }
 0x196   : > { %1903 = vmatmul.bf16.gmra.mxu0 %v4184_v14  ;;  %v4272_v14 = vor.u32 %v5071_v7, %v4271_v6  ;;  %v4304_v7 = vor.u32 %v5079_v60, %v4303_v59 }
 0x197   : > { %2072 = vmatmul.bf16.gmra.mxu1 %v4188_v15  ;;  %v4276_v15 = vor.u32 %v5069_v8, %v4273_v9  ;;  %v795_v9 = vld [vmem:[#allocation2 + $0x18] sm:$0xff] }
 0x198   : > { %2241 = vmatmul.bf16.gmra.mxu2 %v4192_v16 }
 0x199   : > { %2410 = vmatmul.bf16.gmra.mxu3 %v4196_v17 }
 0x1a6   : > { %1908 = vmatmul.bf16.gmra.mxu0 %v4200_v26 }
 0x1a7   : > { %2077 = vmatmul.bf16.gmra.mxu1 %v4204_v27  ;;  %v5072_v27 = vld [vmem:[%s5563_s17 + $0x124] sm:$0xf] }
 0x1a8   : > { %2246 = vmatmul.bf16.gmra.mxu2 %v4208_v28  ;;  %v4281_v28 = vld [vmem:[%s5563_s17 + $0x130] sm:$0xf0] }
 0x1a9   : > { %2415 = vmatmul.bf16.gmra.mxu3 %v4212_v29  ;;  %v4287_v29 = vld [vmem:[%s5563_s17 + $0x128] sm:$0xf]  ;;  %v4284_v37 = vor.u32 %v5072_v27, %v4281_v28  ;;  %v5081_v27 = vld [vmem:[%s5563_s17 + $0x16c] sm:$0xf]  ;;  %v4321_v28 = vld [vmem:[%s5563_s17 + $0x178] sm:$0xf0] }
 0x1b6   : > { %1913 = vmatmul.bf16.gmra.mxu0 %v4216_v38 }
 0x1b7   : > { %2082 = vmatmul.bf16.gmra.mxu1 %v4220_v39 }
 0x1b8   : > { %2251 = vmatmul.bf16.gmra.mxu2 %v4224_v40 }
 0x1b9   : > { %2420 = vmatmul.bf16.gmra.mxu3 %v4228_v41  ;;  %v4288_v41 = vor.u32 %v5075_v30, %v4287_v29 }
 0x1c6   : > { %1918 = vmatmul.bf16.gmra.mxu0 %v4232_v50 }
 0x1c7   : > { %2087 = vmatmul.bf16.gmra.mxu1 %v4236_v51 }
 0x1c8   : > { %2256 = vmatmul.bf16.gmra.mxu2 %v4240_v52  ;;  %v794_v52 = vld [vmem:[#allocation2 + $0xd8] sm:$0xff] }
 0x1c9   : > { %2425 = vmatmul.bf16.gmra.mxu3 %v4244_v53 }
 0x1d6   : > { %1923 = vmatmul.bf16.gmra.mxu0 %v4248_v62  ;;  %v4305_v62 = vld [vmem:[%s5563_s17 + $0x158] sm:$0xf0] }
 0x1d7   : > { %2092 = vmatmul.bf16.gmra.mxu1 %v4252_v63  ;;  %v4308_v8 = vor.u32 %v5077_v61, %v4305_v62 }
 0x1d8   : > { %2261 = vmatmul.bf16.gmra.mxu2 %v4256_v0 }
 0x1d9   : > { %2430 = vmatmul.bf16.gmra.mxu3 %v4260_v1 }
 0x1e3   : > { %v1889_v12 = vpop.f32.mrf.mxu0 }
 0x1e4   : > { %v2058_v13 = vpop.f32.mrf.mxu1 }
 0x1e5   : > { %v2059_v16 = vadd.f32 %v2058_v13, %v1889_v12 }
 0x1e6   : > { %1928 = vmatmul.bf16.gmra.mxu0 %v4264_v10 }
 0x1e7   : > { %2097 = vmatmul.bf16.gmra.mxu1 %v4268_v11 }
 0x1e8   : > { %2266 = vmatmul.bf16.gmra.mxu2 %v4272_v14 }
 0x1e9   : > { %2435 = vmatmul.bf16.gmra.mxu3 %v4276_v15 }
 0x1eb   : > { %v2227_v17 = vpop.f32.mrf.mxu2  ;;  %v1891_v20 = vpop.f32.mrf.mxu0 }
 0x1ec   : > { %v2396_v18 = vpop.f32.mrf.mxu3  ;;  %v2228_v19 = vadd.f32 %v2227_v17, %v2059_v16  ;;  %v2060_v21 = vpop.f32.mrf.mxu1 }
 0x1ed   : > { %v2061_v33 = vadd.f32 %v2060_v21, %v1891_v20  ;;  %v4311_v20 = vld [vmem:[%s5563_s17 + $0x160] sm:$0xf]  ;;  %v5082_v21 = vld [vmem:[%s5563_s17 + $0x16c] sm:$0xf0] }
 0x1ee   : > { %v2397_v23 = vadd.f32 %v2396_v18, %v2228_v19  ;;  %v796_v18 = vld [vmem:[#allocation2 + $0x50] sm:$0xff]  ;;  %v4312_v32 = vor.u32 %v5082_v21, %v4311_v20  ;;  %v4351_v21 = vld [vmem:[%s5563_s17 + $0x1a8] sm:$0xf] }
 0x1ef   : > { %v4345_v20 = vld [vmem:[%s5563_s17 + $0x1b0] sm:$0xf0] }
 0x1f0   : > { %v2556_v26 = vadd.f32 %v2397_v23, %v792_v22  ;;  %v5080_v23 = vld [vmem:[%s5563_s17 + $0x164] sm:$0xf] }
 0x1f2   : > { %2620 = vst [vmem:[#allocation2 + $0xb0] sm:$0xff] %v2556_v26  ;;  %v5083_v26 = vld [vmem:[%s5563_s17 + $0x174] sm:$0xf0] }
 0x1f3   : > { %v2229_v34 = vpop.f32.mrf.mxu2  ;;  %v1894_v39 = vpop.f32.mrf.mxu0 }
 0x1f4   : > { %v2398_v35 = vpop.f32.mrf.mxu3  ;;  %v2230_v38 = vadd.f32 %v2229_v34, %v2061_v33  ;;  %v2063_v40 = vpop.f32.mrf.mxu1  ;;  %v4316_v33 = vor.u32 %v5080_v23, %v4313_v24  ;;  %v5089_v23 = vld [vmem:[%s5563_s17 + $0x1ac] sm:$0xf]  ;;  %v4353_v24 = vld [vmem:[%s5563_s17 + $0x1b8] sm:$0xf0] }
 0x1f5   : > { %v2064_v46 = vadd.f32 %v2063_v40, %v1894_v39  ;;  %v797_v39 = vld [vmem:[#allocation2 + $0x168] sm:$0xff] }
 0x1f6   : > { %v2399_v44 = vadd.f32 %v2398_v35, %v2230_v38  ;;  %1933 = vmatmul.bf16.gmra.mxu0 %v4280_v36  ;;  %v4324_v38 = vor.u32 %v5081_v27, %v4321_v28 }
 0x1f7   : > { %2102 = vmatmul.bf16.gmra.mxu1 %v4284_v37  ;;  %v4320_v37 = vor.u32 %v5083_v26, %v4319_v25 }
 0x1f8   : > { %v2557_v45 = vadd.f32 %v2399_v44, %v793_v43  ;;  %2271 = vmatmul.bf16.gmra.mxu2 %v4288_v41 }
 0x1f9   : > { %2440 = vmatmul.bf16.gmra.mxu3 %v4292_v42 }
 0x1fa   : > { %2621 = vst [vmem:[#allocation2 + $0x1b0] sm:$0xff] %v2557_v45 }
 0x1fb   : > { %v2232_v47 = vpop.f32.mrf.mxu2  ;;  %v1896_v50 = vpop.f32.mrf.mxu0 }
 0x1fc   : > { %v2401_v48 = vpop.f32.mrf.mxu3  ;;  %v2233_v49 = vadd.f32 %v2232_v47, %v2064_v46  ;;  %v2065_v51 = vpop.f32.mrf.mxu1 }
 0x1fd   : > { %v2066_v63 = vadd.f32 %v2065_v51, %v1896_v50  ;;  %v4327_v50 = vld [vmem:[%s5563_s17 + $0x180] sm:$0xf]  ;;  %v5086_v51 = vld [vmem:[%s5563_s17 + $0x18c] sm:$0xf0] }
 0x1fe   : > { %v2402_v53 = vadd.f32 %v2401_v48, %v2233_v49  ;;  %v798_v48 = vld [vmem:[#allocation2 + $0x130] sm:$0xff]  ;;  %v4328_v62 = vor.u32 %v5086_v51, %v4327_v50  ;;  %v4367_v51 = vld [vmem:[%s5563_s17 + $0x1c8] sm:$0xf] }
 0x1ff   : > { %v4361_v50 = vld [vmem:[%s5563_s17 + $0x1d0] sm:$0xf0] }
 0x200   : > { %v2558_v56 = vadd.f32 %v2402_v53, %v794_v52  ;;  %v5084_v53 = vld [vmem:[%s5563_s17 + $0x184] sm:$0xf] }
 0x202   : > { %2622 = vst [vmem:[#allocation2 + $0xd8] sm:$0xff] %v2558_v56  ;;  %v5087_v56 = vld [vmem:[%s5563_s17 + $0x194] sm:$0xf0] }
 0x203   : > { %v2234_v0 = vpop.f32.mrf.mxu2  ;;  %v1899_v5 = vpop.f32.mrf.mxu0 }
 0x204   : > { %v2403_v1 = vpop.f32.mrf.mxu3  ;;  %v2235_v4 = vadd.f32 %v2234_v0, %v2066_v63  ;;  %v2068_v6 = vpop.f32.mrf.mxu1  ;;  %v4332_v63 = vor.u32 %v5084_v53, %v4329_v54  ;;  %v5093_v53 = vld [vmem:[%s5563_s17 + $0x1cc] sm:$0xf]  ;;  %v4369_v54 = vld [vmem:[%s5563_s17 + $0x1d8] sm:$0xf0] }
 0x205   : > { %v2069_v12 = vadd.f32 %v2068_v6, %v1899_v5  ;;  %v799_v5 = vld [vmem:[#allocation2 + $0x48] sm:$0xff] }
 0x206   : > { %v2404_v10 = vadd.f32 %v2403_v1, %v2235_v4  ;;  %1938 = vmatmul.bf16.gmra.mxu0 %v4296_v2  ;;  %v4340_v4 = vor.u32 %v5085_v57, %v4337_v58 }
 0x207   : > { %2107 = vmatmul.bf16.gmra.mxu1 %v4300_v3  ;;  %v4336_v3 = vor.u32 %v5087_v56, %v4335_v55 }
 0x208   : > { %v2559_v11 = vadd.f32 %v2404_v10, %v795_v9  ;;  %2276 = vmatmul.bf16.gmra.mxu2 %v4304_v7 }
 0x209   : > { %2445 = vmatmul.bf16.gmra.mxu3 %v4308_v8 }
 0x20a   : > { %2623 = vst [vmem:[#allocation2 + $0x18] sm:$0xff] %v2559_v11 }
 0x20b   : > { %v2237_v13 = vpop.f32.mrf.mxu2  ;;  %v1901_v16 = vpop.f32.mrf.mxu0 }
 0x20c   : > { %v2406_v14 = vpop.f32.mrf.mxu3  ;;  %v2238_v15 = vadd.f32 %v2237_v13, %v2069_v12  ;;  %v2070_v17 = vpop.f32.mrf.mxu1 }
 0x20d   : > { %v2071_v29 = vadd.f32 %v2070_v17, %v1901_v16  ;;  %v4343_v16 = vld [vmem:[%s5563_s17 + $0x1a0] sm:$0xf]  ;;  %v5090_v17 = vld [vmem:[%s5563_s17 + $0x1ac] sm:$0xf0] }
 0x20e   : > { %v2407_v19 = vadd.f32 %v2406_v14, %v2238_v15  ;;  %v800_v14 = vld [vmem:[#allocation2 + $0x180] sm:$0xff]  ;;  %v4344_v28 = vor.u32 %v5090_v17, %v4343_v16  ;;  %v4377_v16 = vld [vmem:[%s5563_s17 + $0x1f0] sm:$0xf0]  ;;  %v4383_v17 = vld [vmem:[%s5563_s17 + $0x1e8] sm:$0xf] }
 0x210   : > { %v2560_v22 = vadd.f32 %v2407_v19, %v796_v18  ;;  %v5088_v19 = vld [vmem:[%s5563_s17 + $0x1a4] sm:$0xf] }
 0x212   : > { %2624 = vst [vmem:[#allocation2 + $0x50] sm:$0xff] %v2560_v22  ;;  %v5091_v22 = vld [vmem:[%s5563_s17 + $0x1b4] sm:$0xf0] }
 0x213   : > { %v2239_v30 = vpop.f32.mrf.mxu2  ;;  %v1904_v35 = vpop.f32.mrf.mxu0 }
 0x214   : > { %v2408_v31 = vpop.f32.mrf.mxu3  ;;  %v2240_v34 = vadd.f32 %v2239_v30, %v2071_v29  ;;  %v2073_v36 = vpop.f32.mrf.mxu1  ;;  %v4348_v29 = vor.u32 %v5088_v19, %v4345_v20  ;;  %v5097_v19 = vld [vmem:[%s5563_s17 + $0x1ec] sm:$0xf]  ;;  %v4385_v20 = vld [vmem:[%s5563_s17 + $0x1f8] sm:$0xf0] }
 0x215   : > { %v2074_v42 = vadd.f32 %v2073_v36, %v1904_v35  ;;  %v801_v35 = vld [vmem:[#allocation2 + $0x110] sm:$0xff] }
 0x216   : > { %v2409_v40 = vadd.f32 %v2408_v31, %v2240_v34  ;;  %1943 = vmatmul.bf16.gmra.mxu0 %v4312_v32  ;;  %v4356_v34 = vor.u32 %v5089_v23, %v4353_v24 }
 0x217   : > { %2112 = vmatmul.bf16.gmra.mxu1 %v4316_v33  ;;  %v4352_v33 = vor.u32 %v5091_v22, %v4351_v21 }
 0x218   : > { %v2561_v41 = vadd.f32 %v2409_v40, %v797_v39  ;;  %2281 = vmatmul.bf16.gmra.mxu2 %v4320_v37 }
 0x219   : > { %2450 = vmatmul.bf16.gmra.mxu3 %v4324_v38 }
 0x21a   : > { %2625 = vst [vmem:[#allocation2 + $0x168] sm:$0xff] %v2561_v41 }
 0x21b   : > { %v2242_v43 = vpop.f32.mrf.mxu2  ;;  %v1906_v46 = vpop.f32.mrf.mxu0 }
 0x21c   : > { %v2411_v44 = vpop.f32.mrf.mxu3  ;;  %v2243_v45 = vadd.f32 %v2242_v43, %v2074_v42  ;;  %v2075_v47 = vpop.f32.mrf.mxu1 }
 0x21d   : > { %v2076_v59 = vadd.f32 %v2075_v47, %v1906_v46  ;;  %v4359_v46 = vld [vmem:[%s5563_s17 + $0x1c0] sm:$0xf]  ;;  %v5094_v47 = vld [vmem:[%s5563_s17 + $0x1cc] sm:$0xf0] }
 0x21e   : > { %v2412_v49 = vadd.f32 %v2411_v44, %v2243_v45  ;;  %v802_v44 = vld [vmem:[#allocation2 + $0x118] sm:$0xff]  ;;  %v4360_v58 = vor.u32 %v5094_v47, %v4359_v46  ;;  %v4399_v47 = vld [vmem:[%s5563_s17 + $0x208] sm:$0xf] }
 0x21f   : > { %v4393_v46 = vld [vmem:[%s5563_s17 + $0x210] sm:$0xf0] }
 0x220   : > { %v2562_v52 = vadd.f32 %v2412_v49, %v798_v48  ;;  %v5092_v49 = vld [vmem:[%s5563_s17 + $0x1c4] sm:$0xf] }
 0x222   : > { %2626 = vst [vmem:[#allocation2 + $0x130] sm:$0xff] %v2562_v52  ;;  %v5095_v52 = vld [vmem:[%s5563_s17 + $0x1d4] sm:$0xf0] }
 0x223   : > { %v2244_v60 = vpop.f32.mrf.mxu2  ;;  %v1909_v1 = vpop.f32.mrf.mxu0 }
 0x224   : > { %v2413_v61 = vpop.f32.mrf.mxu3  ;;  %v2245_v0 = vadd.f32 %v2244_v60, %v2076_v59  ;;  %v2078_v2 = vpop.f32.mrf.mxu1  ;;  %v4364_v59 = vor.u32 %v5092_v49, %v4361_v50  ;;  %v5101_v49 = vld [vmem:[%s5563_s17 + $0x20c] sm:$0xf]  ;;  %v4401_v50 = vld [vmem:[%s5563_s17 + $0x218] sm:$0xf0] }
 0x225   : > { %v2079_v8 = vadd.f32 %v2078_v2, %v1909_v1  ;;  %v803_v1 = vld [vmem:[#allocation2 + $0x98] sm:$0xff] }
 0x226   : > { %v2414_v6 = vadd.f32 %v2413_v61, %v2245_v0  ;;  %1948 = vmatmul.bf16.gmra.mxu0 %v4328_v62  ;;  %v4372_v0 = vor.u32 %v5093_v53, %v4369_v54 }
 0x227   : > { %2117 = vmatmul.bf16.gmra.mxu1 %v4332_v63  ;;  %v4368_v63 = vor.u32 %v5095_v52, %v4367_v51 }
 0x228   : > { %v2563_v7 = vadd.f32 %v2414_v6, %v799_v5  ;;  %2286 = vmatmul.bf16.gmra.mxu2 %v4336_v3 }
 0x229   : > { %2455 = vmatmul.bf16.gmra.mxu3 %v4340_v4 }
 0x22a   : > { %2627 = vst [vmem:[#allocation2 + $0x48] sm:$0xff] %v2563_v7 }
 0x22b   : > { %v2247_v9 = vpop.f32.mrf.mxu2  ;;  %v1911_v12 = vpop.f32.mrf.mxu0 }
 0x22c   : > { %v2416_v10 = vpop.f32.mrf.mxu3  ;;  %v2248_v11 = vadd.f32 %v2247_v9, %v2079_v8  ;;  %v2080_v13 = vpop.f32.mrf.mxu1 }
 0x22d   : > { %v2081_v25 = vadd.f32 %v2080_v13, %v1911_v12  ;;  %v4375_v12 = vld [vmem:[%s5563_s17 + $0x1e0] sm:$0xf]  ;;  %v5098_v13 = vld [vmem:[%s5563_s17 + $0x1ec] sm:$0xf0] }
 0x22e   : > { %v2417_v15 = vadd.f32 %v2416_v10, %v2248_v11  ;;  %v804_v10 = vld [vmem:[#allocation2 + $0x120] sm:$0xff]  ;;  %v4376_v24 = vor.u32 %v5098_v13, %v4375_v12  ;;  %v4409_v12 = vld [vmem:[%s5563_s17 + $0x230] sm:$0xf0]  ;;  %v4415_v13 = vld [vmem:[%s5563_s17 + $0x228] sm:$0xf] }
 0x230   : > { %v2564_v18 = vadd.f32 %v2417_v15, %v800_v14  ;;  %v5096_v15 = vld [vmem:[%s5563_s17 + $0x1e4] sm:$0xf] }
 0x232   : > { %2628 = vst [vmem:[#allocation2 + $0x180] sm:$0xff] %v2564_v18  ;;  %v5099_v18 = vld [vmem:[%s5563_s17 + $0x1f4] sm:$0xf0] }
 0x233   : > { %v2249_v26 = vpop.f32.mrf.mxu2  ;;  %v1914_v31 = vpop.f32.mrf.mxu0 }
 0x234   : > { %v2418_v27 = vpop.f32.mrf.mxu3  ;;  %v2250_v30 = vadd.f32 %v2249_v26, %v2081_v25  ;;  %v2083_v32 = vpop.f32.mrf.mxu1  ;;  %v4380_v25 = vor.u32 %v5096_v15, %v4377_v16  ;;  %v5105_v15 = vld [vmem:[%s5563_s17 + $0x22c] sm:$0xf]  ;;  %v4417_v16 = vld [vmem:[%s5563_s17 + $0x238] sm:$0xf0] }
 0x235   : > { %v2084_v38 = vadd.f32 %v2083_v32, %v1914_v31  ;;  %v805_v31 = vld [vmem:[#allocation2 + $0x150] sm:$0xff] }
 0x236   : > { %v2419_v36 = vadd.f32 %v2418_v27, %v2250_v30  ;;  %1953 = vmatmul.bf16.gmra.mxu0 %v4344_v28  ;;  %v4388_v30 = vor.u32 %v5097_v19, %v4385_v20 }
 0x237   : > { %2122 = vmatmul.bf16.gmra.mxu1 %v4348_v29  ;;  %v4384_v29 = vor.u32 %v5099_v18, %v4383_v17 }
 0x238   : > { %v2565_v37 = vadd.f32 %v2419_v36, %v801_v35  ;;  %2291 = vmatmul.bf16.gmra.mxu2 %v4352_v33 }
 0x239   : > { %2460 = vmatmul.bf16.gmra.mxu3 %v4356_v34 }
 0x23a   : > { %2629 = vst [vmem:[#allocation2 + $0x110] sm:$0xff] %v2565_v37 }
 0x23b   : > { %v2252_v39 = vpop.f32.mrf.mxu2  ;;  %v1916_v42 = vpop.f32.mrf.mxu0 }
 0x23c   : > { %v2421_v40 = vpop.f32.mrf.mxu3  ;;  %v2253_v41 = vadd.f32 %v2252_v39, %v2084_v38  ;;  %v2085_v43 = vpop.f32.mrf.mxu1 }
 0x23d   : > { %v2086_v55 = vadd.f32 %v2085_v43, %v1916_v42  ;;  %v4391_v42 = vld [vmem:[%s5563_s17 + $0x200] sm:$0xf]  ;;  %v5102_v43 = vld [vmem:[%s5563_s17 + $0x20c] sm:$0xf0] }
 0x23e   : > { %v2422_v45 = vadd.f32 %v2421_v40, %v2253_v41  ;;  %v806_v40 = vld [vmem:[#allocation2 + $0x108] sm:$0xff]  ;;  %v4392_v54 = vor.u32 %v5102_v43, %v4391_v42  ;;  %v4425_v42 = vld [vmem:[%s5563_s17 + $0x250] sm:$0xf0] }
 0x23f   : > { %v4431_v43 = vld [vmem:[%s5563_s17 + $0x248] sm:$0xf] }
 0x240   : > { %v2566_v48 = vadd.f32 %v2422_v45, %v802_v44  ;;  %v5100_v45 = vld [vmem:[%s5563_s17 + $0x204] sm:$0xf] }
 0x242   : > { %2630 = vst [vmem:[#allocation2 + $0x118] sm:$0xff] %v2566_v48  ;;  %v5103_v48 = vld [vmem:[%s5563_s17 + $0x214] sm:$0xf0] }
 0x243   : > { %v2254_v56 = vpop.f32.mrf.mxu2  ;;  %v1919_v61 = vpop.f32.mrf.mxu0 }
 0x244   : > { %v2423_v57 = vpop.f32.mrf.mxu3  ;;  %v2255_v60 = vadd.f32 %v2254_v56, %v2086_v55  ;;  %v2088_v62 = vpop.f32.mrf.mxu1  ;;  %v4396_v55 = vor.u32 %v5100_v45, %v4393_v46  ;;  %v5109_v45 = vld [vmem:[%s5563_s17 + $0x24c] sm:$0xf]  ;;  %v4433_v46 = vld [vmem:[%s5563_s17 + $0x258] sm:$0xf0] }
 0x245   : > { %v2089_v4 = vadd.f32 %v2088_v62, %v1919_v61  ;;  %v807_v61 = vld [vmem:[#allocation2 + $0x60] sm:$0xff] }
 0x246   : > { %v2424_v2 = vadd.f32 %v2423_v57, %v2255_v60  ;;  %1958 = vmatmul.bf16.gmra.mxu0 %v4360_v58  ;;  %v4404_v60 = vor.u32 %v5101_v49, %v4401_v50 }
 0x247   : > { %2127 = vmatmul.bf16.gmra.mxu1 %v4364_v59  ;;  %v4400_v59 = vor.u32 %v5103_v48, %v4399_v47 }
 0x248   : > { %v2567_v3 = vadd.f32 %v2424_v2, %v803_v1  ;;  %2296 = vmatmul.bf16.gmra.mxu2 %v4368_v63 }
 0x249   : > { %2465 = vmatmul.bf16.gmra.mxu3 %v4372_v0 }
 0x24a   : > { %2631 = vst [vmem:[#allocation2 + $0x98] sm:$0xff] %v2567_v3 }
 0x24b   : > { %v2257_v5 = vpop.f32.mrf.mxu2  ;;  %v1921_v8 = vpop.f32.mrf.mxu0 }
 0x24c   : > { %v2426_v6 = vpop.f32.mrf.mxu3  ;;  %v2258_v7 = vadd.f32 %v2257_v5, %v2089_v4  ;;  %v2090_v9 = vpop.f32.mrf.mxu1 }
 0x24d   : > { %v2091_v21 = vadd.f32 %v2090_v9, %v1921_v8  ;;  %v4407_v8 = vld [vmem:[%s5563_s17 + $0x220] sm:$0xf]  ;;  %v5106_v9 = vld [vmem:[%s5563_s17 + $0x22c] sm:$0xf0] }
 0x24e   : > { %v2427_v11 = vadd.f32 %v2426_v6, %v2258_v7  ;;  %v808_v6 = vld [vmem:[#allocation2 + $0xe0] sm:$0xff]  ;;  %v4408_v20 = vor.u32 %v5106_v9, %v4407_v8  ;;  %v4441_v8 = vld [vmem:[%s5563_s17 + $0x270] sm:$0xf0]  ;;  %v4447_v9 = vld [vmem:[%s5563_s17 + $0x268] sm:$0xf] }
 0x250   : > { %v2568_v14 = vadd.f32 %v2427_v11, %v804_v10  ;;  %v5104_v11 = vld [vmem:[%s5563_s17 + $0x224] sm:$0xf] }
 0x252   : > { %2632 = vst [vmem:[#allocation2 + $0x120] sm:$0xff] %v2568_v14  ;;  %v5107_v14 = vld [vmem:[%s5563_s17 + $0x234] sm:$0xf0] }
 0x253   : > { %v2259_v22 = vpop.f32.mrf.mxu2  ;;  %v1924_v27 = vpop.f32.mrf.mxu0 }
 0x254   : > { %v2428_v23 = vpop.f32.mrf.mxu3  ;;  %v2260_v26 = vadd.f32 %v2259_v22, %v2091_v21  ;;  %v2093_v28 = vpop.f32.mrf.mxu1  ;;  %v4412_v21 = vor.u32 %v5104_v11, %v4409_v12  ;;  %v5113_v11 = vld [vmem:[%s5563_s17 + $0x26c] sm:$0xf]  ;;  %v4449_v12 = vld [vmem:[%s5563_s17 + $0x278] sm:$0xf0] }
 0x255   : > { %v2094_v34 = vadd.f32 %v2093_v28, %v1924_v27  ;;  %v809_v27 = vld [vmem:[#allocation2 + $0x188] sm:$0xff] }
 0x256   : > { %v2429_v32 = vadd.f32 %v2428_v23, %v2260_v26  ;;  %1963 = vmatmul.bf16.gmra.mxu0 %v4376_v24  ;;  %v4420_v26 = vor.u32 %v5105_v15, %v4417_v16 }
 0x257   : > { %2132 = vmatmul.bf16.gmra.mxu1 %v4380_v25  ;;  %v4416_v25 = vor.u32 %v5107_v14, %v4415_v13 }
 0x258   : > { %v2569_v33 = vadd.f32 %v2429_v32, %v805_v31  ;;  %2301 = vmatmul.bf16.gmra.mxu2 %v4384_v29 }
 0x259   : > { %2470 = vmatmul.bf16.gmra.mxu3 %v4388_v30 }
 0x25a   : > { %2633 = vst [vmem:[#allocation2 + $0x150] sm:$0xff] %v2569_v33 }
 0x25b   : > { %v2262_v35 = vpop.f32.mrf.mxu2  ;;  %v1926_v38 = vpop.f32.mrf.mxu0 }
 0x25c   : > { %v2431_v36 = vpop.f32.mrf.mxu3  ;;  %v2263_v37 = vadd.f32 %v2262_v35, %v2094_v34  ;;  %v2095_v39 = vpop.f32.mrf.mxu1 }
 0x25d   : > { %v2096_v51 = vadd.f32 %v2095_v39, %v1926_v38  ;;  %v4423_v38 = vld [vmem:[%s5563_s17 + $0x240] sm:$0xf]  ;;  %v5110_v39 = vld [vmem:[%s5563_s17 + $0x24c] sm:$0xf0] }
 0x25e   : > { %v2432_v41 = vadd.f32 %v2431_v36, %v2263_v37  ;;  %v810_v36 = vld [vmem:[#allocation2 + $0x138] sm:$0xff]  ;;  %v4424_v50 = vor.u32 %v5110_v39, %v4423_v38  ;;  %v4463_v39 = vld [vmem:[%s5563_s17 + $0x288] sm:$0xf] }
 0x25f   : > { %v4457_v38 = vld [vmem:[%s5563_s17 + $0x290] sm:$0xf0] }
 0x260   : > { %v2570_v44 = vadd.f32 %v2432_v41, %v806_v40  ;;  %v5108_v41 = vld [vmem:[%s5563_s17 + $0x244] sm:$0xf] }
 0x262   : > { %2634 = vst [vmem:[#allocation2 + $0x108] sm:$0xff] %v2570_v44  ;;  %v5111_v44 = vld [vmem:[%s5563_s17 + $0x254] sm:$0xf0] }
 0x263   : > { %v2264_v52 = vpop.f32.mrf.mxu2  ;;  %v1929_v57 = vpop.f32.mrf.mxu0 }
 0x264   : > { %v2433_v53 = vpop.f32.mrf.mxu3  ;;  %v2265_v56 = vadd.f32 %v2264_v52, %v2096_v51  ;;  %v2098_v58 = vpop.f32.mrf.mxu1  ;;  %v4428_v51 = vor.u32 %v5108_v41, %v4425_v42  ;;  %v5117_v41 = vld [vmem:[%s5563_s17 + $0x28c] sm:$0xf]  ;;  %v4465_v42 = vld [vmem:[%s5563_s17 + $0x298] sm:$0xf0] }
 0x265   : > { %v2099_v0 = vadd.f32 %v2098_v58, %v1929_v57  ;;  %v811_v57 = vld [vmem:[#allocation2 + $0x140] sm:$0xff] }
 0x266   : > { %v2434_v62 = vadd.f32 %v2433_v53, %v2265_v56  ;;  %1968 = vmatmul.bf16.gmra.mxu0 %v4392_v54  ;;  %v4436_v56 = vor.u32 %v5109_v45, %v4433_v46 }
 0x267   : > { %2137 = vmatmul.bf16.gmra.mxu1 %v4396_v55  ;;  %v4432_v55 = vor.u32 %v5111_v44, %v4431_v43 }
 0x268   : > { %v2571_v63 = vadd.f32 %v2434_v62, %v807_v61  ;;  %2306 = vmatmul.bf16.gmra.mxu2 %v4400_v59 }
 0x269   : > { %2475 = vmatmul.bf16.gmra.mxu3 %v4404_v60 }
 0x26a   : > { %2635 = vst [vmem:[#allocation2 + $0x60] sm:$0xff] %v2571_v63 }
 0x26b   : > { %v2267_v1 = vpop.f32.mrf.mxu2  ;;  %v1931_v4 = vpop.f32.mrf.mxu0 }
 0x26c   : > { %v2436_v2 = vpop.f32.mrf.mxu3  ;;  %v2268_v3 = vadd.f32 %v2267_v1, %v2099_v0  ;;  %v2100_v5 = vpop.f32.mrf.mxu1 }
 0x26d   : > { %v2101_v17 = vadd.f32 %v2100_v5, %v1931_v4  ;;  %v4439_v4 = vld [vmem:[%s5563_s17 + $0x260] sm:$0xf]  ;;  %v5114_v5 = vld [vmem:[%s5563_s17 + $0x26c] sm:$0xf0] }
 0x26e   : > { %v2437_v7 = vadd.f32 %v2436_v2, %v2268_v3  ;;  %v812_v2 = vld [vmem:[#allocation2 + $0x80] sm:$0xff]  ;;  %v4440_v16 = vor.u32 %v5114_v5, %v4439_v4  ;;  %v4473_v4 = vld [vmem:[%s5563_s17 + $0x2b0] sm:$0xf0]  ;;  %v4479_v5 = vld [vmem:[%s5563_s17 + $0x2a8] sm:$0xf] }
 0x270   : > { %v2572_v10 = vadd.f32 %v2437_v7, %v808_v6  ;;  %v5112_v7 = vld [vmem:[%s5563_s17 + $0x264] sm:$0xf] }
 0x272   : > { %2636 = vst [vmem:[#allocation2 + $0xe0] sm:$0xff] %v2572_v10  ;;  %v5115_v10 = vld [vmem:[%s5563_s17 + $0x274] sm:$0xf0] }
 0x273   : > { %v2269_v18 = vpop.f32.mrf.mxu2  ;;  %v1934_v23 = vpop.f32.mrf.mxu0 }
 0x274   : > { %v2438_v19 = vpop.f32.mrf.mxu3  ;;  %v2270_v22 = vadd.f32 %v2269_v18, %v2101_v17  ;;  %v2103_v24 = vpop.f32.mrf.mxu1  ;;  %v4444_v17 = vor.u32 %v5112_v7, %v4441_v8  ;;  %v5121_v7 = vld [vmem:[%s5563_s17 + $0x2ac] sm:$0xf]  ;;  %v4481_v8 = vld [vmem:[%s5563_s17 + $0x2b8] sm:$0xf0] }
 0x275   : > { %v2104_v30 = vadd.f32 %v2103_v24, %v1934_v23  ;;  %v813_v23 = vld [vmem:[#allocation2 + $0x1a8] sm:$0xff] }
 0x276   : > { %v2439_v28 = vadd.f32 %v2438_v19, %v2270_v22  ;;  %1973 = vmatmul.bf16.gmra.mxu0 %v4408_v20  ;;  %v4452_v22 = vor.u32 %v5113_v11, %v4449_v12 }
 0x277   : > { %2142 = vmatmul.bf16.gmra.mxu1 %v4412_v21  ;;  %v4448_v21 = vor.u32 %v5115_v10, %v4447_v9 }
 0x278   : > { %v2573_v29 = vadd.f32 %v2439_v28, %v809_v27  ;;  %2311 = vmatmul.bf16.gmra.mxu2 %v4416_v25 }
 0x279   : > { %2480 = vmatmul.bf16.gmra.mxu3 %v4420_v26 }
 0x27a   : > { %2637 = vst [vmem:[#allocation2 + $0x188] sm:$0xff] %v2573_v29 }
 0x27b   : > { %v2272_v31 = vpop.f32.mrf.mxu2  ;;  %v1936_v34 = vpop.f32.mrf.mxu0 }
 0x27c   : > { %v2441_v32 = vpop.f32.mrf.mxu3  ;;  %v2273_v33 = vadd.f32 %v2272_v31, %v2104_v30  ;;  %v2105_v35 = vpop.f32.mrf.mxu1 }
 0x27d   : > { %v2106_v47 = vadd.f32 %v2105_v35, %v1936_v34  ;;  %v4455_v34 = vld [vmem:[%s5563_s17 + $0x280] sm:$0xf]  ;;  %v5118_v35 = vld [vmem:[%s5563_s17 + $0x28c] sm:$0xf0] }
 0x27e   : > { %v2442_v37 = vadd.f32 %v2441_v32, %v2273_v33  ;;  %v814_v32 = vld [vmem:[#allocation2 + $0x1b8] sm:$0xff]  ;;  %v4456_v46 = vor.u32 %v5118_v35, %v4455_v34  ;;  %v4495_v35 = vld [vmem:[%s5563_s17 + $0x2c8] sm:$0xf] }
 0x27f   : > { %v4489_v34 = vld [vmem:[%s5563_s17 + $0x2d0] sm:$0xf0] }
 0x280   : > { %v2574_v40 = vadd.f32 %v2442_v37, %v810_v36  ;;  %v5116_v37 = vld [vmem:[%s5563_s17 + $0x284] sm:$0xf] }
 0x282   : > { %2638 = vst [vmem:[#allocation2 + $0x138] sm:$0xff] %v2574_v40  ;;  %v5119_v40 = vld [vmem:[%s5563_s17 + $0x294] sm:$0xf0] }
 0x283   : > { %v2274_v48 = vpop.f32.mrf.mxu2  ;;  %v1939_v53 = vpop.f32.mrf.mxu0 }
 0x284   : > { %v2443_v49 = vpop.f32.mrf.mxu3  ;;  %v2275_v52 = vadd.f32 %v2274_v48, %v2106_v47  ;;  %v2108_v54 = vpop.f32.mrf.mxu1  ;;  %v4460_v47 = vor.u32 %v5116_v37, %v4457_v38  ;;  %v5125_v37 = vld [vmem:[%s5563_s17 + $0x2cc] sm:$0xf]  ;;  %v4497_v38 = vld [vmem:[%s5563_s17 + $0x2d8] sm:$0xf0] }
 0x285   : > { %v2109_v60 = vadd.f32 %v2108_v54, %v1939_v53  ;;  %v815_v53 = vld [vmem:[#allocation2 + $0x28] sm:$0xff] }
 0x286   : > { %v2444_v58 = vadd.f32 %v2443_v49, %v2275_v52  ;;  %1978 = vmatmul.bf16.gmra.mxu0 %v4424_v50  ;;  %v4468_v52 = vor.u32 %v5117_v41, %v4465_v42 }
 0x287   : > { %2147 = vmatmul.bf16.gmra.mxu1 %v4428_v51  ;;  %v4464_v51 = vor.u32 %v5119_v40, %v4463_v39 }
 0x288   : > { %v2575_v59 = vadd.f32 %v2444_v58, %v811_v57  ;;  %2316 = vmatmul.bf16.gmra.mxu2 %v4432_v55 }
 0x289   : > { %2485 = vmatmul.bf16.gmra.mxu3 %v4436_v56 }
 0x28a   : > { %2639 = vst [vmem:[#allocation2 + $0x140] sm:$0xff] %v2575_v59 }
 0x28b   : > { %v2277_v61 = vpop.f32.mrf.mxu2  ;;  %v1941_v0 = vpop.f32.mrf.mxu0 }
 0x28c   : > { %v2446_v62 = vpop.f32.mrf.mxu3  ;;  %v2278_v63 = vadd.f32 %v2277_v61, %v2109_v60  ;;  %v2110_v1 = vpop.f32.mrf.mxu1 }
 0x28d   : > { %v2111_v13 = vadd.f32 %v2110_v1, %v1941_v0  ;;  %v4471_v0 = vld [vmem:[%s5563_s17 + $0x2a0] sm:$0xf]  ;;  %v5122_v1 = vld [vmem:[%s5563_s17 + $0x2ac] sm:$0xf0] }
 0x28e   : > { %v2447_v3 = vadd.f32 %v2446_v62, %v2278_v63  ;;  %v816_v62 = vld [vmem:[#allocation2 + $0x1e8] sm:$0xff]  ;;  %v4472_v12 = vor.u32 %v5122_v1, %v4471_v0  ;;  %v4505_v0 = vld [vmem:[%s5563_s17 + $0x2f0] sm:$0xf0] }
 0x28f   : > { %v4511_v1 = vld [vmem:[%s5563_s17 + $0x2e8] sm:$0xf] }
 0x290   : > { %v2576_v6 = vadd.f32 %v2447_v3, %v812_v2  ;;  %v5120_v3 = vld [vmem:[%s5563_s17 + $0x2a4] sm:$0xf] }
 0x292   : > { %2640 = vst [vmem:[#allocation2 + $0x80] sm:$0xff] %v2576_v6  ;;  %v5123_v6 = vld [vmem:[%s5563_s17 + $0x2b4] sm:$0xf0] }
 0x293   : > { %v2279_v14 = vpop.f32.mrf.mxu2  ;;  %v1944_v19 = vpop.f32.mrf.mxu0 }
 0x294   : > { %v2448_v15 = vpop.f32.mrf.mxu3  ;;  %v2280_v18 = vadd.f32 %v2279_v14, %v2111_v13  ;;  %v2113_v20 = vpop.f32.mrf.mxu1  ;;  %v4476_v13 = vor.u32 %v5120_v3, %v4473_v4  ;;  %v5129_v3 = vld [vmem:[%s5563_s17 + $0x2ec] sm:$0xf]  ;;  %v4513_v4 = vld [vmem:[%s5563_s17 + $0x2f8] sm:$0xf0] }
 0x295   : > { %v2114_v26 = vadd.f32 %v2113_v20, %v1944_v19  ;;  %v817_v19 = vld [vmem:[#allocation2 + $0xf8] sm:$0xff] }
 0x296   : > { %v2449_v24 = vadd.f32 %v2448_v15, %v2280_v18  ;;  %1983 = vmatmul.bf16.gmra.mxu0 %v4440_v16  ;;  %v4484_v18 = vor.u32 %v5121_v7, %v4481_v8 }
 0x297   : > { %2152 = vmatmul.bf16.gmra.mxu1 %v4444_v17  ;;  %v4480_v17 = vor.u32 %v5123_v6, %v4479_v5 }
 0x298   : > { %v2577_v25 = vadd.f32 %v2449_v24, %v813_v23  ;;  %2321 = vmatmul.bf16.gmra.mxu2 %v4448_v21 }
 0x299   : > { %2490 = vmatmul.bf16.gmra.mxu3 %v4452_v22 }
 0x29a   : > { %2641 = vst [vmem:[#allocation2 + $0x1a8] sm:$0xff] %v2577_v25 }
 0x29b   : > { %v2282_v27 = vpop.f32.mrf.mxu2  ;;  %v1946_v30 = vpop.f32.mrf.mxu0 }
 0x29c   : > { %v2451_v28 = vpop.f32.mrf.mxu3  ;;  %v2283_v29 = vadd.f32 %v2282_v27, %v2114_v26  ;;  %v2115_v31 = vpop.f32.mrf.mxu1 }
 0x29d   : > { %v2116_v43 = vadd.f32 %v2115_v31, %v1946_v30  ;;  %v4487_v30 = vld [vmem:[%s5563_s17 + $0x2c0] sm:$0xf]  ;;  %v5126_v31 = vld [vmem:[%s5563_s17 + $0x2cc] sm:$0xf0] }
 0x29e   : > { %v2452_v33 = vadd.f32 %v2451_v28, %v2283_v29  ;;  %v818_v28 = vld [vmem:[#allocation2 + $0x160] sm:$0xff]  ;;  %v4488_v42 = vor.u32 %v5126_v31, %v4487_v30  ;;  %v4521_v30 = vld [vmem:[%s5563_s17 + $0x310] sm:$0xf0]  ;;  %v4527_v31 = vld [vmem:[%s5563_s17 + $0x308] sm:$0xf] }
 0x2a0   : > { %v2578_v36 = vadd.f32 %v2452_v33, %v814_v32  ;;  %v5124_v33 = vld [vmem:[%s5563_s17 + $0x2c4] sm:$0xf] }
 0x2a2   : > { %2642 = vst [vmem:[#allocation2 + $0x1b8] sm:$0xff] %v2578_v36  ;;  %v5127_v36 = vld [vmem:[%s5563_s17 + $0x2d4] sm:$0xf0] }
 0x2a3   : > { %v2284_v44 = vpop.f32.mrf.mxu2  ;;  %v1949_v49 = vpop.f32.mrf.mxu0 }
 0x2a4   : > { %v2453_v45 = vpop.f32.mrf.mxu3  ;;  %v2285_v48 = vadd.f32 %v2284_v44, %v2116_v43  ;;  %v2118_v50 = vpop.f32.mrf.mxu1  ;;  %v4492_v43 = vor.u32 %v5124_v33, %v4489_v34  ;;  %v5133_v33 = vld [vmem:[%s5563_s17 + $0x30c] sm:$0xf]  ;;  %v4529_v34 = vld [vmem:[%s5563_s17 + $0x318] sm:$0xf0] }
 0x2a5   : > { %v2119_v56 = vadd.f32 %v2118_v50, %v1949_v49  ;;  %v819_v49 = vld [vmem:[#allocation2 + $0x30] sm:$0xff] }
 0x2a6   : > { %v2454_v54 = vadd.f32 %v2453_v45, %v2285_v48  ;;  %1988 = vmatmul.bf16.gmra.mxu0 %v4456_v46  ;;  %v4500_v48 = vor.u32 %v5125_v37, %v4497_v38 }
 0x2a7   : > { %2157 = vmatmul.bf16.gmra.mxu1 %v4460_v47  ;;  %v4496_v47 = vor.u32 %v5127_v36, %v4495_v35 }
 0x2a8   : > { %v2579_v55 = vadd.f32 %v2454_v54, %v815_v53  ;;  %2326 = vmatmul.bf16.gmra.mxu2 %v4464_v51 }
 0x2a9   : > { %2495 = vmatmul.bf16.gmra.mxu3 %v4468_v52 }
 0x2aa   : > { %2643 = vst [vmem:[#allocation2 + $0x28] sm:$0xff] %v2579_v55 }
 0x2ab   : > { %v2287_v57 = vpop.f32.mrf.mxu2  ;;  %v1951_v60 = vpop.f32.mrf.mxu0 }
 0x2ac   : > { %v2456_v58 = vpop.f32.mrf.mxu3  ;;  %v2288_v59 = vadd.f32 %v2287_v57, %v2119_v56  ;;  %v2120_v61 = vpop.f32.mrf.mxu1 }
 0x2ad   : > { %v2121_v9 = vadd.f32 %v2120_v61, %v1951_v60  ;;  %v4503_v60 = vld [vmem:[%s5563_s17 + $0x2e0] sm:$0xf]  ;;  %v5130_v61 = vld [vmem:[%s5563_s17 + $0x2ec] sm:$0xf0] }
 0x2ae   : > { %v2457_v63 = vadd.f32 %v2456_v58, %v2288_v59  ;;  %v820_v58 = vld [vmem:[#allocation2 + $0x1e0] sm:$0xff]  ;;  %v4504_v8 = vor.u32 %v5130_v61, %v4503_v60  ;;  %v4537_v60 = vld [vmem:[%s5563_s17 + $0x330] sm:$0xf0]  ;;  %v4543_v61 = vld [vmem:[%s5563_s17 + $0x328] sm:$0xf] }
 0x2b0   : > { %v2580_v2 = vadd.f32 %v2457_v63, %v816_v62  ;;  %v5128_v63 = vld [vmem:[%s5563_s17 + $0x2e4] sm:$0xf] }
 0x2b2   : > { %2644 = vst [vmem:[#allocation2 + $0x1e8] sm:$0xff] %v2580_v2  ;;  %v5131_v2 = vld [vmem:[%s5563_s17 + $0x2f4] sm:$0xf0] }
 0x2b3   : > { %v2289_v10 = vpop.f32.mrf.mxu2  ;;  %v1954_v15 = vpop.f32.mrf.mxu0 }
 0x2b4   : > { %v2458_v11 = vpop.f32.mrf.mxu3  ;;  %v2290_v14 = vadd.f32 %v2289_v10, %v2121_v9  ;;  %v2123_v16 = vpop.f32.mrf.mxu1  ;;  %v4508_v9 = vor.u32 %v5128_v63, %v4505_v0  ;;  %v5137_v63 = vld [vmem:[%s5563_s17 + $0x32c] sm:$0xf]  ;;  %v4545_v0 = vld [vmem:[%s5563_s17 + $0x338] sm:$0xf0] }
 0x2b5   : > { %v2124_v22 = vadd.f32 %v2123_v16, %v1954_v15  ;;  %v821_v15 = vld [vmem:[#allocation2] sm:$0xff] }
 0x2b6   : > { %v2459_v20 = vadd.f32 %v2458_v11, %v2290_v14  ;;  %1993 = vmatmul.bf16.gmra.mxu0 %v4472_v12  ;;  %v4516_v14 = vor.u32 %v5129_v3, %v4513_v4 }
 0x2b7   : > { %2162 = vmatmul.bf16.gmra.mxu1 %v4476_v13  ;;  %v4512_v13 = vor.u32 %v5131_v2, %v4511_v1 }
 0x2b8   : > { %v2581_v21 = vadd.f32 %v2459_v20, %v817_v19  ;;  %2331 = vmatmul.bf16.gmra.mxu2 %v4480_v17 }
 0x2b9   : > { %2500 = vmatmul.bf16.gmra.mxu3 %v4484_v18 }
 0x2ba   : > { %2645 = vst [vmem:[#allocation2 + $0xf8] sm:$0xff] %v2581_v21 }
 0x2bb   : > { %v2292_v23 = vpop.f32.mrf.mxu2  ;;  %v1956_v26 = vpop.f32.mrf.mxu0 }
 0x2bc   : > { %v2461_v24 = vpop.f32.mrf.mxu3  ;;  %v2293_v25 = vadd.f32 %v2292_v23, %v2124_v22  ;;  %v2125_v27 = vpop.f32.mrf.mxu1 }
 0x2bd   : > { %v2126_v39 = vadd.f32 %v2125_v27, %v1956_v26  ;;  %v4519_v26 = vld [vmem:[%s5563_s17 + $0x300] sm:$0xf]  ;;  %v5134_v27 = vld [vmem:[%s5563_s17 + $0x30c] sm:$0xf0] }
 0x2be   : > { %v2462_v29 = vadd.f32 %v2461_v24, %v2293_v25  ;;  %v822_v24 = vld [vmem:[#allocation2 + $0xf0] sm:$0xff]  ;;  %v4520_v38 = vor.u32 %v5134_v27, %v4519_v26  ;;  %v4559_v27 = vld [vmem:[%s5563_s17 + $0x348] sm:$0xf] }
 0x2bf   : > { %v4553_v26 = vld [vmem:[%s5563_s17 + $0x350] sm:$0xf0] }
 0x2c0   : > { %v2582_v32 = vadd.f32 %v2462_v29, %v818_v28  ;;  %v5132_v29 = vld [vmem:[%s5563_s17 + $0x304] sm:$0xf] }
 0x2c2   : > { %2646 = vst [vmem:[#allocation2 + $0x160] sm:$0xff] %v2582_v32  ;;  %v5135_v32 = vld [vmem:[%s5563_s17 + $0x314] sm:$0xf0] }
 0x2c3   : > { %v2294_v40 = vpop.f32.mrf.mxu2  ;;  %v1959_v45 = vpop.f32.mrf.mxu0 }
 0x2c4   : > { %v2463_v41 = vpop.f32.mrf.mxu3  ;;  %v2295_v44 = vadd.f32 %v2294_v40, %v2126_v39  ;;  %v2128_v46 = vpop.f32.mrf.mxu1  ;;  %v4524_v39 = vor.u32 %v5132_v29, %v4521_v30  ;;  %v5141_v29 = vld [vmem:[%s5563_s17 + $0x34c] sm:$0xf]  ;;  %v4561_v30 = vld [vmem:[%s5563_s17 + $0x358] sm:$0xf0] }
 0x2c5   : > { %v2129_v52 = vadd.f32 %v2128_v46, %v1959_v45  ;;  %v823_v45 = vld [vmem:[#allocation2 + $0x8] sm:$0xff] }
 0x2c6   : > { %v2464_v50 = vadd.f32 %v2463_v41, %v2295_v44  ;;  %1998 = vmatmul.bf16.gmra.mxu0 %v4488_v42  ;;  %v4532_v44 = vor.u32 %v5133_v33, %v4529_v34 }
 0x2c7   : > { %2167 = vmatmul.bf16.gmra.mxu1 %v4492_v43  ;;  %v4528_v43 = vor.u32 %v5135_v32, %v4527_v31 }
 0x2c8   : > { %v2583_v51 = vadd.f32 %v2464_v50, %v819_v49  ;;  %2336 = vmatmul.bf16.gmra.mxu2 %v4496_v47 }
 0x2c9   : > { %2505 = vmatmul.bf16.gmra.mxu3 %v4500_v48 }
 0x2ca   : > { %2647 = vst [vmem:[#allocation2 + $0x30] sm:$0xff] %v2583_v51 }
 0x2cb   : > { %v2297_v53 = vpop.f32.mrf.mxu2  ;;  %v1961_v56 = vpop.f32.mrf.mxu0 }
 0x2cc   : > { %v2466_v54 = vpop.f32.mrf.mxu3  ;;  %v2298_v55 = vadd.f32 %v2297_v53, %v2129_v52  ;;  %v2130_v57 = vpop.f32.mrf.mxu1 }
 0x2cd   : > { %v2131_v5 = vadd.f32 %v2130_v57, %v1961_v56  ;;  %v4535_v56 = vld [vmem:[%s5563_s17 + $0x320] sm:$0xf]  ;;  %v5138_v57 = vld [vmem:[%s5563_s17 + $0x32c] sm:$0xf0] }
 0x2ce   : > { %v2467_v59 = vadd.f32 %v2466_v54, %v2298_v55  ;;  %v824_v54 = vld [vmem:[#allocation2 + $0x148] sm:$0xff]  ;;  %v4536_v4 = vor.u32 %v5138_v57, %v4535_v56  ;;  %v4569_v56 = vld [vmem:[%s5563_s17 + $0x370] sm:$0xf0] }
 0x2cf   : > { %v4575_v57 = vld [vmem:[%s5563_s17 + $0x368] sm:$0xf] }
 0x2d0   : > { %v2584_v62 = vadd.f32 %v2467_v59, %v820_v58  ;;  %v5136_v59 = vld [vmem:[%s5563_s17 + $0x324] sm:$0xf] }
 0x2d2   : > { %2648 = vst [vmem:[#allocation2 + $0x1e0] sm:$0xff] %v2584_v62  ;;  %v5139_v62 = vld [vmem:[%s5563_s17 + $0x334] sm:$0xf0] }
 0x2d3   : > { %v2299_v6 = vpop.f32.mrf.mxu2  ;;  %v1964_v11 = vpop.f32.mrf.mxu0 }
 0x2d4   : > { %v2468_v7 = vpop.f32.mrf.mxu3  ;;  %v2300_v10 = vadd.f32 %v2299_v6, %v2131_v5  ;;  %v2133_v12 = vpop.f32.mrf.mxu1  ;;  %v4540_v5 = vor.u32 %v5136_v59, %v4537_v60  ;;  %v5145_v59 = vld [vmem:[%s5563_s17 + $0x36c] sm:$0xf]  ;;  %v4577_v60 = vld [vmem:[%s5563_s17 + $0x378] sm:$0xf0] }
 0x2d5   : > { %v2134_v18 = vadd.f32 %v2133_v12, %v1964_v11  ;;  %v825_v11 = vld [vmem:[#allocation2 + $0x1d0] sm:$0xff] }
 0x2d6   : > { %v2469_v16 = vadd.f32 %v2468_v7, %v2300_v10  ;;  %2003 = vmatmul.bf16.gmra.mxu0 %v4504_v8  ;;  %v4548_v10 = vor.u32 %v5137_v63, %v4545_v0 }
 0x2d7   : > { %2172 = vmatmul.bf16.gmra.mxu1 %v4508_v9  ;;  %v4544_v9 = vor.u32 %v5139_v62, %v4543_v61 }
 0x2d8   : > { %v2585_v17 = vadd.f32 %v2469_v16, %v821_v15  ;;  %2341 = vmatmul.bf16.gmra.mxu2 %v4512_v13 }
 0x2d9   : > { %2510 = vmatmul.bf16.gmra.mxu3 %v4516_v14 }
 0x2da   : > { %2649 = vst [vmem:[#allocation2] sm:$0xff] %v2585_v17 }
 0x2db   : > { %v2302_v19 = vpop.f32.mrf.mxu2  ;;  %v1966_v22 = vpop.f32.mrf.mxu0 }
 0x2dc   : > { %v2471_v20 = vpop.f32.mrf.mxu3  ;;  %v2303_v21 = vadd.f32 %v2302_v19, %v2134_v18  ;;  %v2135_v23 = vpop.f32.mrf.mxu1 }
 0x2dd   : > { %v2136_v35 = vadd.f32 %v2135_v23, %v1966_v22  ;;  %v4551_v22 = vld [vmem:[%s5563_s17 + $0x340] sm:$0xf]  ;;  %v5142_v23 = vld [vmem:[%s5563_s17 + $0x34c] sm:$0xf0] }
 0x2de   : > { %v2472_v25 = vadd.f32 %v2471_v20, %v2303_v21  ;;  %v826_v20 = vld [vmem:[#allocation2 + $0x100] sm:$0xff]  ;;  %v4552_v34 = vor.u32 %v5142_v23, %v4551_v22  ;;  %v4585_v22 = vld [vmem:[%s5563_s17 + $0x390] sm:$0xf0]  ;;  %v4591_v23 = vld [vmem:[%s5563_s17 + $0x388] sm:$0xf] }
 0x2e0   : > { %v2586_v28 = vadd.f32 %v2472_v25, %v822_v24  ;;  %v5140_v25 = vld [vmem:[%s5563_s17 + $0x344] sm:$0xf] }
 0x2e2   : > { %2650 = vst [vmem:[#allocation2 + $0xf0] sm:$0xff] %v2586_v28  ;;  %v5143_v28 = vld [vmem:[%s5563_s17 + $0x354] sm:$0xf0] }
 0x2e3   : > { %v2304_v36 = vpop.f32.mrf.mxu2  ;;  %v1969_v41 = vpop.f32.mrf.mxu0 }
 0x2e4   : > { %v2473_v37 = vpop.f32.mrf.mxu3  ;;  %v2305_v40 = vadd.f32 %v2304_v36, %v2136_v35  ;;  %v2138_v42 = vpop.f32.mrf.mxu1  ;;  %v4556_v35 = vor.u32 %v5140_v25, %v4553_v26  ;;  %v5149_v25 = vld [vmem:[%s5563_s17 + $0x38c] sm:$0xf]  ;;  %v4593_v26 = vld [vmem:[%s5563_s17 + $0x398] sm:$0xf0] }
 0x2e5   : > { %v2139_v48 = vadd.f32 %v2138_v42, %v1969_v41  ;;  %v827_v41 = vld [vmem:[#allocation2 + $0xc8] sm:$0xff] }
 0x2e6   : > { %v2474_v46 = vadd.f32 %v2473_v37, %v2305_v40  ;;  %2008 = vmatmul.bf16.gmra.mxu0 %v4520_v38  ;;  %v4564_v40 = vor.u32 %v5141_v29, %v4561_v30 }
 0x2e7   : > { %2177 = vmatmul.bf16.gmra.mxu1 %v4524_v39  ;;  %v4560_v39 = vor.u32 %v5143_v28, %v4559_v27 }
 0x2e8   : > { %v2587_v47 = vadd.f32 %v2474_v46, %v823_v45  ;;  %2346 = vmatmul.bf16.gmra.mxu2 %v4528_v43 }
 0x2e9   : > { %2515 = vmatmul.bf16.gmra.mxu3 %v4532_v44 }
 0x2ea   : > { %2651 = vst [vmem:[#allocation2 + $0x8] sm:$0xff] %v2587_v47 }
 0x2eb   : > { %v2307_v49 = vpop.f32.mrf.mxu2  ;;  %v1971_v52 = vpop.f32.mrf.mxu0 }
 0x2ec   : > { %v2476_v50 = vpop.f32.mrf.mxu3  ;;  %v2308_v51 = vadd.f32 %v2307_v49, %v2139_v48  ;;  %v2140_v53 = vpop.f32.mrf.mxu1 }
 0x2ed   : > { %v2141_v1 = vadd.f32 %v2140_v53, %v1971_v52  ;;  %v4567_v52 = vld [vmem:[%s5563_s17 + $0x360] sm:$0xf]  ;;  %v5146_v53 = vld [vmem:[%s5563_s17 + $0x36c] sm:$0xf0] }
 0x2ee   : > { %v2477_v55 = vadd.f32 %v2476_v50, %v2308_v51  ;;  %v828_v50 = vld [vmem:[#allocation2 + $0x40] sm:$0xff]  ;;  %v4568_v0 = vor.u32 %v5146_v53, %v4567_v52  ;;  %v4601_v52 = vld [vmem:[%s5563_s17 + $0x3b0] sm:$0xf0]  ;;  %v4607_v53 = vld [vmem:[%s5563_s17 + $0x3a8] sm:$0xf] }
 0x2f0   : > { %v2588_v58 = vadd.f32 %v2477_v55, %v824_v54  ;;  %v5144_v55 = vld [vmem:[%s5563_s17 + $0x364] sm:$0xf] }
 0x2f2   : > { %2652 = vst [vmem:[#allocation2 + $0x148] sm:$0xff] %v2588_v58  ;;  %v5147_v58 = vld [vmem:[%s5563_s17 + $0x374] sm:$0xf0] }
 0x2f3   : > { %v2309_v2 = vpop.f32.mrf.mxu2  ;;  %v1974_v7 = vpop.f32.mrf.mxu0 }
 0x2f4   : > { %v2478_v3 = vpop.f32.mrf.mxu3  ;;  %v2310_v6 = vadd.f32 %v2309_v2, %v2141_v1  ;;  %v2143_v8 = vpop.f32.mrf.mxu1  ;;  %v4572_v1 = vor.u32 %v5144_v55, %v4569_v56  ;;  %v5153_v55 = vld [vmem:[%s5563_s17 + $0x3ac] sm:$0xf]  ;;  %v4609_v56 = vld [vmem:[%s5563_s17 + $0x3b8] sm:$0xf0] }
 0x2f5   : > { %v2144_v14 = vadd.f32 %v2143_v8, %v1974_v7  ;;  %v829_v7 = vld [vmem:[#allocation2 + $0x1f8] sm:$0xff] }
 0x2f6   : > { %v2479_v12 = vadd.f32 %v2478_v3, %v2310_v6  ;;  %2013 = vmatmul.bf16.gmra.mxu0 %v4536_v4  ;;  %v4580_v6 = vor.u32 %v5145_v59, %v4577_v60 }
 0x2f7   : > { %2182 = vmatmul.bf16.gmra.mxu1 %v4540_v5  ;;  %v4576_v5 = vor.u32 %v5147_v58, %v4575_v57 }
 0x2f8   : > { %v2589_v13 = vadd.f32 %v2479_v12, %v825_v11  ;;  %2351 = vmatmul.bf16.gmra.mxu2 %v4544_v9 }
 0x2f9   : > { %2520 = vmatmul.bf16.gmra.mxu3 %v4548_v10 }
 0x2fa   : > { %2653 = vst [vmem:[#allocation2 + $0x1d0] sm:$0xff] %v2589_v13 }
 0x2fb   : > { %v2312_v15 = vpop.f32.mrf.mxu2  ;;  %v1976_v18 = vpop.f32.mrf.mxu0 }
 0x2fc   : > { %v2481_v16 = vpop.f32.mrf.mxu3  ;;  %v2313_v17 = vadd.f32 %v2312_v15, %v2144_v14  ;;  %v2145_v19 = vpop.f32.mrf.mxu1 }
 0x2fd   : > { %v2146_v31 = vadd.f32 %v2145_v19, %v1976_v18  ;;  %v4583_v18 = vld [vmem:[%s5563_s17 + $0x380] sm:$0xf]  ;;  %v5150_v19 = vld [vmem:[%s5563_s17 + $0x38c] sm:$0xf0] }
 0x2fe   : > { %v2482_v21 = vadd.f32 %v2481_v16, %v2313_v17  ;;  %v830_v16 = vld [vmem:[#allocation2 + $0x20] sm:$0xff]  ;;  %v4584_v30 = vor.u32 %v5150_v19, %v4583_v18  ;;  %v4617_v18 = vld [vmem:[%s5563_s17 + $0x3d0] sm:$0xf0]  ;;  %v4623_v19 = vld [vmem:[%s5563_s17 + $0x3c8] sm:$0xf] }
 0x300   : > { %v2590_v24 = vadd.f32 %v2482_v21, %v826_v20  ;;  %v5148_v21 = vld [vmem:[%s5563_s17 + $0x384] sm:$0xf] }
 0x302   : > { %2654 = vst [vmem:[#allocation2 + $0x100] sm:$0xff] %v2590_v24  ;;  %v5151_v24 = vld [vmem:[%s5563_s17 + $0x394] sm:$0xf0] }
 0x303   : > { %v2314_v32 = vpop.f32.mrf.mxu2  ;;  %v1979_v37 = vpop.f32.mrf.mxu0 }
 0x304   : > { %v2483_v33 = vpop.f32.mrf.mxu3  ;;  %v2315_v36 = vadd.f32 %v2314_v32, %v2146_v31  ;;  %v2148_v38 = vpop.f32.mrf.mxu1  ;;  %v4588_v31 = vor.u32 %v5148_v21, %v4585_v22  ;;  %v5157_v21 = vld [vmem:[%s5563_s17 + $0x3cc] sm:$0xf]  ;;  %v4625_v22 = vld [vmem:[%s5563_s17 + $0x3d8] sm:$0xf0] }
 0x305   : > { %v2149_v44 = vadd.f32 %v2148_v38, %v1979_v37  ;;  %v831_v37 = vld [vmem:[#allocation2 + $0x128] sm:$0xff] }
 0x306   : > { %v2484_v42 = vadd.f32 %v2483_v33, %v2315_v36  ;;  %2018 = vmatmul.bf16.gmra.mxu0 %v4552_v34  ;;  %v4596_v36 = vor.u32 %v5149_v25, %v4593_v26 }
 0x307   : > { %2187 = vmatmul.bf16.gmra.mxu1 %v4556_v35  ;;  %v4592_v35 = vor.u32 %v5151_v24, %v4591_v23 }
 0x308   : > { %v2591_v43 = vadd.f32 %v2484_v42, %v827_v41  ;;  %2356 = vmatmul.bf16.gmra.mxu2 %v4560_v39 }
 0x309   : > { %2525 = vmatmul.bf16.gmra.mxu3 %v4564_v40 }
 0x30a   : > { %2655 = vst [vmem:[#allocation2 + $0xc8] sm:$0xff] %v2591_v43 }
 0x30b   : > { %v2317_v45 = vpop.f32.mrf.mxu2  ;;  %v1981_v48 = vpop.f32.mrf.mxu0 }
 0x30c   : > { %v2486_v46 = vpop.f32.mrf.mxu3  ;;  %v2318_v47 = vadd.f32 %v2317_v45, %v2149_v44  ;;  %v2150_v49 = vpop.f32.mrf.mxu1 }
 0x30d   : > { %v2151_v61 = vadd.f32 %v2150_v49, %v1981_v48  ;;  %v4599_v48 = vld [vmem:[%s5563_s17 + $0x3a0] sm:$0xf]  ;;  %v5154_v49 = vld [vmem:[%s5563_s17 + $0x3ac] sm:$0xf0] }
 0x30e   : > { %v2487_v51 = vadd.f32 %v2486_v46, %v2318_v47  ;;  %v832_v46 = vld [vmem:[#allocation2 + $0x1a0] sm:$0xff]  ;;  %v4600_v60 = vor.u32 %v5154_v49, %v4599_v48  ;;  %v4633_v48 = vld [vmem:[%s5563_s17 + $0x3f0] sm:$0xf0]  ;;  %v4639_v49 = vld [vmem:[%s5563_s17 + $0x3e8] sm:$0xf] }
 0x310   : > { %v2592_v54 = vadd.f32 %v2487_v51, %v828_v50  ;;  %v5152_v51 = vld [vmem:[%s5563_s17 + $0x3a4] sm:$0xf] }
 0x312   : > { %2656 = vst [vmem:[#allocation2 + $0x40] sm:$0xff] %v2592_v54  ;;  %v5155_v54 = vld [vmem:[%s5563_s17 + $0x3b4] sm:$0xf0] }
 0x313   : > { %v2319_v62 = vpop.f32.mrf.mxu2  ;;  %v1984_v3 = vpop.f32.mrf.mxu0 }
 0x314   : > { %v2488_v63 = vpop.f32.mrf.mxu3  ;;  %v2320_v2 = vadd.f32 %v2319_v62, %v2151_v61  ;;  %v2153_v4 = vpop.f32.mrf.mxu1  ;;  %v4604_v61 = vor.u32 %v5152_v51, %v4601_v52  ;;  %v5161_v51 = vld [vmem:[%s5563_s17 + $0x3ec] sm:$0xf]  ;;  %v4641_v52 = vld [vmem:[%s5563_s17 + $0x3f8] sm:$0xf0] }
 0x315   : > { %v2154_v10 = vadd.f32 %v2153_v4, %v1984_v3  ;;  %v833_v3 = vld [vmem:[#allocation2 + $0x1f0] sm:$0xff] }
 0x316   : > { %v2489_v8 = vadd.f32 %v2488_v63, %v2320_v2  ;;  %2023 = vmatmul.bf16.gmra.mxu0 %v4568_v0  ;;  %v4612_v2 = vor.u32 %v5153_v55, %v4609_v56 }
 0x317   : > { %2192 = vmatmul.bf16.gmra.mxu1 %v4572_v1  ;;  %v4608_v1 = vor.u32 %v5155_v54, %v4607_v53 }
 0x318   : > { %v2593_v9 = vadd.f32 %v2489_v8, %v829_v7  ;;  %2361 = vmatmul.bf16.gmra.mxu2 %v4576_v5 }
 0x319   : > { %2530 = vmatmul.bf16.gmra.mxu3 %v4580_v6 }
 0x31a   : > { %2657 = vst [vmem:[#allocation2 + $0x1f8] sm:$0xff] %v2593_v9 }
 0x31b   : > { %v2322_v11 = vpop.f32.mrf.mxu2  ;;  %v1986_v14 = vpop.f32.mrf.mxu0 }
 0x31c   : > { %v2491_v12 = vpop.f32.mrf.mxu3  ;;  %v2323_v13 = vadd.f32 %v2322_v11, %v2154_v10  ;;  %v2155_v15 = vpop.f32.mrf.mxu1 }
 0x31d   : > { %v2156_v27 = vadd.f32 %v2155_v15, %v1986_v14  ;;  %v4615_v14 = vld [vmem:[%s5563_s17 + $0x3c0] sm:$0xf]  ;;  %v5158_v15 = vld [vmem:[%s5563_s17 + $0x3cc] sm:$0xf0] }
 0x31e   : > { %v2492_v17 = vadd.f32 %v2491_v12, %v2323_v13  ;;  %v834_v12 = vld [vmem:[#allocation2 + $0xe8] sm:$0xff]  ;;  %v4616_v26 = vor.u32 %v5158_v15, %v4615_v14 }
 0x320   : > { %v2594_v20 = vadd.f32 %v2492_v17, %v830_v16  ;;  %v5156_v17 = vld [vmem:[%s5563_s17 + $0x3c4] sm:$0xf] }
 0x322   : > { %2658 = vst [vmem:[#allocation2 + $0x20] sm:$0xff] %v2594_v20  ;;  %v5159_v20 = vld [vmem:[%s5563_s17 + $0x3d4] sm:$0xf0] }
 0x323   : > { %v2324_v28 = vpop.f32.mrf.mxu2  ;;  %v1989_v33 = vpop.f32.mrf.mxu0 }
 0x324   : > { %v2493_v29 = vpop.f32.mrf.mxu3  ;;  %v2325_v32 = vadd.f32 %v2324_v28, %v2156_v27  ;;  %v2158_v34 = vpop.f32.mrf.mxu1  ;;  %v4620_v27 = vor.u32 %v5156_v17, %v4617_v18  ;;  %v839_v17 = vld [vmem:[#allocation2 + $0xd0] sm:$0xff] }
 0x325   : > { %v2159_v40 = vadd.f32 %v2158_v34, %v1989_v33  ;;  %v835_v33 = vld [vmem:[#allocation2 + $0x78] sm:$0xff] }
 0x326   : > { %v2494_v38 = vadd.f32 %v2493_v29, %v2325_v32  ;;  %2028 = vmatmul.bf16.gmra.mxu0 %v4584_v30  ;;  %v4628_v32 = vor.u32 %v5157_v21, %v4625_v22 }
 0x327   : > { %2197 = vmatmul.bf16.gmra.mxu1 %v4588_v31  ;;  %v4624_v31 = vor.u32 %v5159_v20, %v4623_v19 }
 0x328   : > { %v2595_v39 = vadd.f32 %v2494_v38, %v831_v37  ;;  %2366 = vmatmul.bf16.gmra.mxu2 %v4592_v35 }
 0x329   : > { %2535 = vmatmul.bf16.gmra.mxu3 %v4596_v36 }
 0x32a   : > { %2659 = vst [vmem:[#allocation2 + $0x128] sm:$0xff] %v2595_v39 }
 0x32b   : > { %v2327_v41 = vpop.f32.mrf.mxu2  ;;  %v1991_v44 = vpop.f32.mrf.mxu0 }
 0x32c   : > { %v2496_v42 = vpop.f32.mrf.mxu3  ;;  %v2328_v43 = vadd.f32 %v2327_v41, %v2159_v40  ;;  %v2160_v45 = vpop.f32.mrf.mxu1 }
 0x32d   : > { %v2161_v57 = vadd.f32 %v2160_v45, %v1991_v44  ;;  %v4631_v44 = vld [vmem:[%s5563_s17 + $0x3e0] sm:$0xf]  ;;  %v5162_v45 = vld [vmem:[%s5563_s17 + $0x3ec] sm:$0xf0] }
 0x32e   : > { %v2497_v47 = vadd.f32 %v2496_v42, %v2328_v43  ;;  %v836_v42 = vld [vmem:[#allocation2 + $0x70] sm:$0xff]  ;;  %v4632_v56 = vor.u32 %v5162_v45, %v4631_v44  ;;  %v842_v44 = vld [vmem:[#allocation2 + $0xa8] sm:$0xff] }
 0x330   : > { %v2596_v50 = vadd.f32 %v2497_v47, %v832_v46  ;;  %v5160_v47 = vld [vmem:[%s5563_s17 + $0x3e4] sm:$0xf] }
 0x332   : > { %2660 = vst [vmem:[#allocation2 + $0x1a0] sm:$0xff] %v2596_v50  ;;  %v5163_v50 = vld [vmem:[%s5563_s17 + $0x3f4] sm:$0xf0] }
 0x333   : > { %v2329_v58 = vpop.f32.mrf.mxu2  ;;  %v1994_v63 = vpop.f32.mrf.mxu0 }
 0x334   : > { %v2498_v59 = vpop.f32.mrf.mxu3  ;;  %v2330_v62 = vadd.f32 %v2329_v58, %v2161_v57  ;;  %v2163_v0 = vpop.f32.mrf.mxu1  ;;  %v4636_v57 = vor.u32 %v5160_v47, %v4633_v48 }
 0x335   : > { %v2164_v6 = vadd.f32 %v2163_v0, %v1994_v63  ;;  %v837_v63 = vld [vmem:[#allocation2 + $0x90] sm:$0xff] }
 0x336   : > { %v2499_v4 = vadd.f32 %v2498_v59, %v2330_v62  ;;  %2033 = vmatmul.bf16.gmra.mxu0 %v4600_v60  ;;  %v4644_v62 = vor.u32 %v5161_v51, %v4641_v52 }
 0x337   : > { %2202 = vmatmul.bf16.gmra.mxu1 %v4604_v61  ;;  %v4640_v61 = vor.u32 %v5163_v50, %v4639_v49 }
 0x338   : > { %v2597_v5 = vadd.f32 %v2499_v4, %v833_v3  ;;  %2371 = vmatmul.bf16.gmra.mxu2 %v4608_v1 }
 0x339   : > { %2540 = vmatmul.bf16.gmra.mxu3 %v4612_v2 }
 0x33a   : > { %2661 = vst [vmem:[#allocation2 + $0x1f0] sm:$0xff] %v2597_v5 }
 0x33b   : > { %v2332_v7 = vpop.f32.mrf.mxu2  ;;  %v1996_v10 = vpop.f32.mrf.mxu0 }
 0x33c   : > { %v2501_v8 = vpop.f32.mrf.mxu3  ;;  %v2333_v9 = vadd.f32 %v2332_v7, %v2164_v6  ;;  %v2165_v11 = vpop.f32.mrf.mxu1 }
 0x33d   : > { %v2166_v23 = vadd.f32 %v2165_v11, %v1996_v10 }
 0x33e   : > { %v2502_v13 = vadd.f32 %v2501_v8, %v2333_v9  ;;  %v838_v8 = vld [vmem:[#allocation2 + $0x1d8] sm:$0xff] }
 0x340   : > { %v2598_v16 = vadd.f32 %v2502_v13, %v834_v12 }
 0x342   : > { %2662 = vst [vmem:[#allocation2 + $0xe8] sm:$0xff] %v2598_v16 }
 0x343   : > { %v2334_v24 = vpop.f32.mrf.mxu2  ;;  %v1999_v29 = vpop.f32.mrf.mxu0 }
 0x344   : > { %v2503_v25 = vpop.f32.mrf.mxu3  ;;  %v2335_v28 = vadd.f32 %v2334_v24, %v2166_v23  ;;  %v2168_v30 = vpop.f32.mrf.mxu1 }
 0x345   : > { %v2169_v36 = vadd.f32 %v2168_v30, %v1999_v29 }
 0x346   : > { %v2504_v34 = vadd.f32 %v2503_v25, %v2335_v28  ;;  %2038 = vmatmul.bf16.gmra.mxu0 %v4616_v26  ;;  %v840_v26 = vld [vmem:[#allocation2 + $0xb8] sm:$0xff] }
 0x347   : > { %2207 = vmatmul.bf16.gmra.mxu1 %v4620_v27 }
 0x348   : > { %v2599_v35 = vadd.f32 %v2504_v34, %v835_v33  ;;  %2376 = vmatmul.bf16.gmra.mxu2 %v4624_v31 }
 0x349   : > { %2545 = vmatmul.bf16.gmra.mxu3 %v4628_v32 }
 0x34a   : > { %2663 = vst [vmem:[#allocation2 + $0x78] sm:$0xff] %v2599_v35  ;;  %v841_v35 = vld [vmem:[#allocation2 + $0x88] sm:$0xff] }
 0x34b   : > { %v2337_v37 = vpop.f32.mrf.mxu2  ;;  %v2001_v40 = vpop.f32.mrf.mxu0 }
 0x34c   : > { %v2506_v38 = vpop.f32.mrf.mxu3  ;;  %v2338_v39 = vadd.f32 %v2337_v37, %v2169_v36  ;;  %v2170_v41 = vpop.f32.mrf.mxu1 }
 0x34d   : > { %v2171_v53 = vadd.f32 %v2170_v41, %v2001_v40 }
 0x34e   : > { %v2507_v43 = vadd.f32 %v2506_v38, %v2338_v39 }
 0x350   : > { %v2600_v46 = vadd.f32 %v2507_v43, %v836_v42 }
 0x352   : > { %2664 = vst [vmem:[#allocation2 + $0x70] sm:$0xff] %v2600_v46 }
 0x353   : > { %v2339_v54 = vpop.f32.mrf.mxu2  ;;  %v2004_v59 = vpop.f32.mrf.mxu0 }
 0x354   : > { %v2508_v55 = vpop.f32.mrf.mxu3  ;;  %v2340_v58 = vadd.f32 %v2339_v54, %v2171_v53  ;;  %v2173_v60 = vpop.f32.mrf.mxu1  ;;  %v843_v53 = vld [vmem:[#allocation2 + $0x1c8] sm:$0xff] }
 0x355   : > { %v2174_v2 = vadd.f32 %v2173_v60, %v2004_v59 }
 0x356   : > { %v2509_v0 = vadd.f32 %v2508_v55, %v2340_v58  ;;  %2043 = vmatmul.bf16.gmra.mxu0 %v4632_v56 }
 0x357   : > { %2212 = vmatmul.bf16.gmra.mxu1 %v4636_v57 }
 0x358   : > { %v2601_v1 = vadd.f32 %v2509_v0, %v837_v63  ;;  %2381 = vmatmul.bf16.gmra.mxu2 %v4640_v61 }
 0x359   : > { %2550 = vmatmul.bf16.gmra.mxu3 %v4644_v62  ;;  %v844_v62 = vld [vmem:[#allocation2 + $0x170] sm:$0xff] }
 0x35a   : > { %2665 = vst [vmem:[#allocation2 + $0x90] sm:$0xff] %v2601_v1 }
 0x35b   : > { %v2342_v3 = vpop.f32.mrf.mxu2  ;;  %v2006_v6 = vpop.f32.mrf.mxu0 }
 0x35c   : > { %v2511_v4 = vpop.f32.mrf.mxu3  ;;  %v2343_v5 = vadd.f32 %v2342_v3, %v2174_v2  ;;  %v2175_v7 = vpop.f32.mrf.mxu1 }
 0x35d   : > { %v2176_v11 = vadd.f32 %v2175_v7, %v2006_v6  ;;  %v845_v7 = vld [vmem:[#allocation2 + $0x178] sm:$0xff] }
 0x35e   : > { %v2512_v9 = vadd.f32 %v2511_v4, %v2343_v5 }
 0x360   : > { %v2602_v10 = vadd.f32 %v2512_v9, %v838_v8 }
 0x362   : > { %2666 = vst [vmem:[#allocation2 + $0x1d8] sm:$0xff] %v2602_v10 }
 0x363   : > { %v2344_v12 = vpop.f32.mrf.mxu2  ;;  %v2009_v15 = vpop.f32.mrf.mxu0 }
 0x364   : > { %v2513_v13 = vpop.f32.mrf.mxu3  ;;  %v2345_v14 = vadd.f32 %v2344_v12, %v2176_v11  ;;  %v2178_v16 = vpop.f32.mrf.mxu1 }
 0x365   : > { %v2179_v20 = vadd.f32 %v2178_v16, %v2009_v15  ;;  %v846_v16 = vld [vmem:[#allocation2 + $0x68] sm:$0xff] }
 0x366   : > { %v2514_v18 = vadd.f32 %v2513_v13, %v2345_v14 }
 0x368   : > { %v2603_v19 = vadd.f32 %v2514_v18, %v839_v17 }
 0x36a   : > { %2667 = vst [vmem:[#allocation2 + $0xd0] sm:$0xff] %v2603_v19 }
 0x36b   : > { %v2347_v21 = vpop.f32.mrf.mxu2  ;;  %v2011_v24 = vpop.f32.mrf.mxu0 }
 0x36c   : > { %v2516_v22 = vpop.f32.mrf.mxu3  ;;  %v2348_v23 = vadd.f32 %v2347_v21, %v2179_v20  ;;  %v2180_v25 = vpop.f32.mrf.mxu1 }
 0x36d   : > { %v2181_v29 = vadd.f32 %v2180_v25, %v2011_v24  ;;  %v847_v25 = vld [vmem:[#allocation2 + $0x190] sm:$0xff] }
 0x36e   : > { %v2517_v27 = vadd.f32 %v2516_v22, %v2348_v23 }
 0x370   : > { %v2604_v28 = vadd.f32 %v2517_v27, %v840_v26 }
 0x372   : > { %2668 = vst [vmem:[#allocation2 + $0xb8] sm:$0xff] %v2604_v28 }
 0x373   : > { %v2349_v30 = vpop.f32.mrf.mxu2  ;;  %v2014_v33 = vpop.f32.mrf.mxu0 }
 0x374   : > { %v2518_v31 = vpop.f32.mrf.mxu3  ;;  %v2350_v32 = vadd.f32 %v2349_v30, %v2181_v29  ;;  %v2183_v34 = vpop.f32.mrf.mxu1 }
 0x375   : > { %v2184_v38 = vadd.f32 %v2183_v34, %v2014_v33  ;;  %v848_v34 = vld [vmem:[#allocation2 + $0x198] sm:$0xff] }
 0x376   : > { %v2519_v36 = vadd.f32 %v2518_v31, %v2350_v32 }
 0x378   : > { %v2605_v37 = vadd.f32 %v2519_v36, %v841_v35 }
 0x37a   : > { %2669 = vst [vmem:[#allocation2 + $0x88] sm:$0xff] %v2605_v37 }
 0x37b   : > { %v2352_v39 = vpop.f32.mrf.mxu2  ;;  %v2016_v42 = vpop.f32.mrf.mxu0 }
 0x37c   : > { %v2521_v40 = vpop.f32.mrf.mxu3  ;;  %v2353_v41 = vadd.f32 %v2352_v39, %v2184_v38  ;;  %v2185_v43 = vpop.f32.mrf.mxu1 }
 0x37d   : > { %v2186_v47 = vadd.f32 %v2185_v43, %v2016_v42  ;;  %v849_v43 = vld [vmem:[#allocation2 + $0x38] sm:$0xff] }
 0x37e   : > { %v2522_v45 = vadd.f32 %v2521_v40, %v2353_v41 }
 0x380   : > { %v2606_v46 = vadd.f32 %v2522_v45, %v842_v44 }
 0x382   : > { %2670 = vst [vmem:[#allocation2 + $0xa8] sm:$0xff] %v2606_v46 }
 0x383   : > { %v2354_v48 = vpop.f32.mrf.mxu2  ;;  %v2019_v51 = vpop.f32.mrf.mxu0 }
 0x384   : > { %v2523_v49 = vpop.f32.mrf.mxu3  ;;  %v2355_v50 = vadd.f32 %v2354_v48, %v2186_v47  ;;  %v2188_v52 = vpop.f32.mrf.mxu1 }
 0x385   : > { %v2189_v56 = vadd.f32 %v2188_v52, %v2019_v51  ;;  %v850_v52 = vld [vmem:[#allocation2 + $0xc0] sm:$0xff] }
 0x386   : > { %v2524_v54 = vadd.f32 %v2523_v49, %v2355_v50 }
 0x388   : > { %v2607_v55 = vadd.f32 %v2524_v54, %v843_v53 }
 0x38a   : > { %2671 = vst [vmem:[#allocation2 + $0x1c8] sm:$0xff] %v2607_v55 }
 0x38b   : > { %v2357_v57 = vpop.f32.mrf.mxu2  ;;  %v2021_v60 = vpop.f32.mrf.mxu0 }
 0x38c   : > { %v2526_v58 = vpop.f32.mrf.mxu3  ;;  %v2358_v59 = vadd.f32 %v2357_v57, %v2189_v56  ;;  %v2190_v61 = vpop.f32.mrf.mxu1 }
 0x38d   : > { %v2191_v1 = vadd.f32 %v2190_v61, %v2021_v60  ;;  %v851_v61 = vld [vmem:[#allocation2 + $0x1c0] sm:$0xff] }
 0x38e   : > { %v2527_v63 = vadd.f32 %v2526_v58, %v2358_v59 }
 0x390   : > { %v2608_v0 = vadd.f32 %v2527_v63, %v844_v62 }
 0x392   : > { %2672 = vst [vmem:[#allocation2 + $0x170] sm:$0xff] %v2608_v0 }
 0x393   : > { %v2359_v2 = vpop.f32.mrf.mxu2  ;;  %v2024_v5 = vpop.f32.mrf.mxu0 }
 0x394   : > { %v2528_v3 = vpop.f32.mrf.mxu3  ;;  %v2360_v4 = vadd.f32 %v2359_v2, %v2191_v1  ;;  %v2193_v6 = vpop.f32.mrf.mxu1 }
 0x395   : > { %v2194_v10 = vadd.f32 %v2193_v6, %v2024_v5  ;;  %v852_v6 = vld [vmem:[#allocation2 + $0x158] sm:$0xff] }
 0x396   : > { %v2529_v8 = vadd.f32 %v2528_v3, %v2360_v4 }
 0x398   : > { %v2609_v9 = vadd.f32 %v2529_v8, %v845_v7 }
 0x39a   : > { %2673 = vst [vmem:[#allocation2 + $0x178] sm:$0xff] %v2609_v9 }
 0x39b   : > { %v2362_v11 = vpop.f32.mrf.mxu2  ;;  %v2026_v14 = vpop.f32.mrf.mxu0 }
 0x39c   : > { %v2531_v12 = vpop.f32.mrf.mxu3  ;;  %v2363_v13 = vadd.f32 %v2362_v11, %v2194_v10  ;;  %v2195_v15 = vpop.f32.mrf.mxu1 }
 0x39d   : > { %v2196_v19 = vadd.f32 %v2195_v15, %v2026_v14 }
 0x39e   : > { %v2532_v17 = vadd.f32 %v2531_v12, %v2363_v13  ;;  %v853_v13 = vld [vmem:[#allocation2 + $0x10] sm:$0xff] }
 0x3a0   : > { %v2610_v18 = vadd.f32 %v2532_v17, %v846_v16 }
 0x3a2   : > { %2674 = vst [vmem:[#allocation2 + $0x68] sm:$0xff] %v2610_v18 }
 0x3a3   : > { %v2364_v20 = vpop.f32.mrf.mxu2  ;;  %v2029_v23 = vpop.f32.mrf.mxu0 }
 0x3a4   : > { %v2533_v21 = vpop.f32.mrf.mxu3  ;;  %v2365_v22 = vadd.f32 %v2364_v20, %v2196_v19  ;;  %v2198_v24 = vpop.f32.mrf.mxu1 }
 0x3a5   : > { %v2199_v28 = vadd.f32 %v2198_v24, %v2029_v23 }
 0x3a6   : > { %v2534_v26 = vadd.f32 %v2533_v21, %v2365_v22  ;;  %v854_v22 = vld [vmem:[#allocation2 + $0x58] sm:$0xff] }
 0x3a8   : > { %v2611_v27 = vadd.f32 %v2534_v26, %v847_v25 }
 0x3aa   : > { %2675 = vst [vmem:[#allocation2 + $0x190] sm:$0xff] %v2611_v27 }
 0x3ab   : > { %v2367_v29 = vpop.f32.mrf.mxu2  ;;  %v2031_v32 = vpop.f32.mrf.mxu0 }
 0x3ac   : > { %v2536_v30 = vpop.f32.mrf.mxu3  ;;  %v2368_v31 = vadd.f32 %v2367_v29, %v2199_v28  ;;  %v2200_v33 = vpop.f32.mrf.mxu1 }
 0x3ad   : > { %v2201_v37 = vadd.f32 %v2200_v33, %v2031_v32 }
 0x3ae   : > { %v2537_v35 = vadd.f32 %v2536_v30, %v2368_v31  ;;  %v855_v30 = vld [vmem:[#allocation2 + $0xa0] sm:$0xff] }
 0x3b0   : > { %v2612_v36 = vadd.f32 %v2537_v35, %v848_v34 }
 0x3b2   : > { %2676 = vst [vmem:[#allocation2 + $0x198] sm:$0xff] %v2612_v36 }
 0x3b3   : > { %v2369_v38 = vpop.f32.mrf.mxu2  ;;  %v2034_v41 = vpop.f32.mrf.mxu0 }
 0x3b4   : > { %v2538_v39 = vpop.f32.mrf.mxu3  ;;  %v2370_v40 = vadd.f32 %v2369_v38, %v2201_v37  ;;  %v2203_v42 = vpop.f32.mrf.mxu1 }
 0x3b5   : > { %v2204_v46 = vadd.f32 %v2203_v42, %v2034_v41 }
 0x3b6   : > { %v2539_v44 = vadd.f32 %v2538_v39, %v2370_v40 }
 0x3b8   : > { %v2613_v45 = vadd.f32 %v2539_v44, %v849_v43 }
 0x3ba   : > { %2677 = vst [vmem:[#allocation2 + $0x38] sm:$0xff] %v2613_v45 }
 0x3bb   : > { %v2372_v47 = vpop.f32.mrf.mxu2  ;;  %v2036_v50 = vpop.f32.mrf.mxu0 }
 0x3bc   : > { %v2541_v48 = vpop.f32.mrf.mxu3  ;;  %v2373_v49 = vadd.f32 %v2372_v47, %v2204_v46  ;;  %v2205_v51 = vpop.f32.mrf.mxu1 }
 0x3bd   : > { %v2206_v55 = vadd.f32 %v2205_v51, %v2036_v50 }
 0x3be   : > { %v2542_v53 = vadd.f32 %v2541_v48, %v2373_v49 }
 0x3c0   : > { %v2614_v54 = vadd.f32 %v2542_v53, %v850_v52 }
 0x3c2   : > { %2678 = vst [vmem:[#allocation2 + $0xc0] sm:$0xff] %v2614_v54 }
 0x3c3   : > { %v2374_v56 = vpop.f32.mrf.mxu2  ;;  %v2039_v59 = vpop.f32.mrf.mxu0 }
 0x3c4   : > { %v2543_v57 = vpop.f32.mrf.mxu3  ;;  %v2375_v58 = vadd.f32 %v2374_v56, %v2206_v55  ;;  %v2208_v60 = vpop.f32.mrf.mxu1 }
 0x3c5   : > { %v2209_v0 = vadd.f32 %v2208_v60, %v2039_v59 }
 0x3c6   : > { %v2544_v62 = vadd.f32 %v2543_v57, %v2375_v58 }
 0x3c8   : > { %v2615_v63 = vadd.f32 %v2544_v62, %v851_v61 }
 0x3ca   : > { %2679 = vst [vmem:[#allocation2 + $0x1c0] sm:$0xff] %v2615_v63 }
 0x3cb   : > { %v2377_v1 = vpop.f32.mrf.mxu2  ;;  %v2041_v4 = vpop.f32.mrf.mxu0 }
 0x3cc   : > { %v2546_v2 = vpop.f32.mrf.mxu3  ;;  %v2378_v3 = vadd.f32 %v2377_v1, %v2209_v0  ;;  %v2210_v5 = vpop.f32.mrf.mxu1 }
 0x3cd   : > { %v2211_v9 = vadd.f32 %v2210_v5, %v2041_v4 }
 0x3ce   : > { %v2547_v7 = vadd.f32 %v2546_v2, %v2378_v3 }
 0x3d0   : > { %v2616_v8 = vadd.f32 %v2547_v7, %v852_v6 }
 0x3d2   : > { %2680 = vst [vmem:[#allocation2 + $0x158] sm:$0xff] %v2616_v8 }
 0x3d3   : > { %v2379_v10 = vpop.f32.mrf.mxu2  ;;  %v2044_v14 = vpop.f32.mrf.mxu0 }
 0x3d4   : > { %v2548_v11 = vpop.f32.mrf.mxu3  ;;  %v2380_v12 = vadd.f32 %v2379_v10, %v2211_v9  ;;  %v2213_v15 = vpop.f32.mrf.mxu1 }
 0x3d5   : > { %v2214_v18 = vadd.f32 %v2213_v15, %v2044_v14 }
 0x3d6   : > { %v2549_v16 = vadd.f32 %v2548_v11, %v2380_v12 }
 0x3d8   : > { %v2617_v17 = vadd.f32 %v2549_v16, %v853_v13 }
 0x3da   : > { %2681 = vst [vmem:[#allocation2 + $0x10] sm:$0xff] %v2617_v17 }
 0x3db   : > { %v2382_v19 = vpop.f32.mrf.mxu2  ;;  %v2046_v24 = vpop.f32.mrf.mxu0 }
 0x3dc   : > { %v2551_v20 = vpop.f32.mrf.mxu3  ;;  %v2383_v21 = vadd.f32 %v2382_v19, %v2214_v18  ;;  %v2215_v25 = vpop.f32.mrf.mxu1 }
 0x3dd   : > { %v2216_v27 = vadd.f32 %v2215_v25, %v2046_v24 }
 0x3de   : > { %v2552_v23 = vadd.f32 %v2551_v20, %v2383_v21 }
 0x3e0   : > { %v2618_v26 = vadd.f32 %v2552_v23, %v854_v22 }
 0x3e2   : > { %2682 = vst [vmem:[#allocation2 + $0x58] sm:$0xff] %v2618_v26 }
 0x3e3   : > { %v2384_v28 = vpop.f32.mrf.mxu2 }
 0x3e4   : > { %v2385_v29 = vadd.f32 %v2384_v28, %v2216_v27  ;;  %v2553_v31 = vpop.f32.mrf.mxu3 }
 0x3e6   : > { %v2554_v32 = vadd.f32 %v2553_v31, %v2385_v29  ;;  %2687 = sbr.rel (%p4773_p1) target bundleno = 1474 (0x5c2), region = 60 }
 0x3e8   : > { %v2619_v33 = vadd.f32 %v2554_v32, %v855_v30 }
 0x3ea   : > { %2683 = vst [vmem:[#allocation2 + $0xa0] sm:$0xff] %v2619_v33 }
 0x3eb   : > { %v2852_v34 = vld [vmem:[%s6765_s4 + $0x20] sm:$0xff]  ;;  %v2850_v35 = vld [vmem:[%s6765_s4 + $0x10] sm:$0xff]  ;;  %v5455_v37 = vmov 0   ;;  %v2702_v38 = vld [vmem:[#allocation2 + $0x108] sm:$0xff] }
 0x3ec   : > { %v2848_v36 = vld [vmem:[%s6765_s4] sm:$0xff]  ;;  %5332 = vset.pattern.permute.xlu2 %v5455_v37  ;;  %5331 = vset.pattern.permute.xlu1 %v5455_v37  ;;  %v2718_v40 = vld [vmem:[#allocation2 + $0xf0] sm:$0xff]  ;;  %v2719_v42 = vld [vmem:[#allocation2 + $0x8] sm:$0xff] }
 0x3ed   : > { %v2703_v39 = vld [vmem:[#allocation2 + $0x60] sm:$0xff]  ;;  %5330 = vset.pattern.permute.xlu0 %v5455_v37  ;;  %2902 = vperm.xlu2 %5332, %v2852_v34   ;;  %v2734_v43 = vld [vmem:[#allocation2 + $0x1d8] sm:$0xff]  ;;  %v2735_v44 = vld [vmem:[#allocation2 + $0xd0] sm:$0xff]  ;;  %v2831_v45 = vpack.c.bf16 %v2719_v42, %v2718_v40 }
 0x3ee   : > { %v2823_v41 = vpack.c.bf16 %v2703_v39, %v2702_v38  ;;  %2892 = vperm.xlu1 %5331, %v2850_v35   ;;  %2882 = vperm.xlu0 %5330, %v2848_v36   ;;  %v2839_v46 = vpack.c.bf16 %v2735_v44, %v2734_v43  ;;  %v2750_v47 = vld [vmem:[#allocation2 + $0x58] sm:$0xff]  ;;  %v2700_v49 = vld [vmem:[#allocation2 + $0x120] sm:$0xff]  ;;  %v2701_v51 = vld [vmem:[#allocation2 + $0x150] sm:$0xff] }
 0x3ef   : > { %v2716_v52 = vld [vmem:[#allocation2 + $0x1e0] sm:$0xff]  ;;  %3449 = vmatpush.bf16.msra.mxu1 %v2831_v45  ;;  %v2822_v54 = vpack.c.bf16 %v2701_v51, %v2700_v49  ;;  %v2732_v56 = vld [vmem:[#allocation2 + $0x70] sm:$0xff]  ;;  %v2748_v58 = vld [vmem:[#allocation2 + $0x158] sm:$0xff] }
 0x3f0   : > { %3360 = vmatpush.bf16.msra.mxu0 %v2823_v41  ;;  %v2717_v53 = vld [vmem:[#allocation2] sm:$0xff]  ;;  %3538 = vmatpush.bf16.msra.mxu2 %v2839_v46  ;;  %v2733_v57 = vld [vmem:[#allocation2 + $0x90] sm:$0xff]  ;;  %v2853_v61 = vld [vmem:[%s6765_s4 + $0x28] sm:$0xff] }
 0x3f1   : > { %v2751_v48 = vld [vmem:[#allocation2 + $0xa0] sm:$0xff]  ;;  %v2830_v55 = vpack.c.bf16 %v2717_v53, %v2716_v52  ;;  %v2838_v59 = vpack.c.bf16 %v2733_v57, %v2732_v56  ;;  %v2749_v60 = vld [vmem:[#allocation2 + $0x10] sm:$0xff]  ;;  %v2851_v62 = vld [vmem:[%s6765_s4 + $0x18] sm:$0xff] }
 0x3f2   : > { %v2847_v50 = vpack.c.bf16 %v2751_v48, %v2750_v47  ;;  %v2846_v63 = vpack.c.bf16 %v2749_v60, %v2748_v58  ;;  %v2849_v0 = vld [vmem:[%s6765_s4 + $0x8] sm:$0xff]  ;;  %v2698_v1 = vld [vmem:[#allocation2 + $0x118] sm:$0xff]  ;;  %v2714_v4 = vld [vmem:[#allocation2 + $0x160] sm:$0xff] }
 0x3f3   : > { %v2699_v2 = vld [vmem:[#allocation2 + $0x98] sm:$0xff]  ;;  %v2715_v5 = vld [vmem:[#allocation2 + $0x30] sm:$0xff]  ;;  %v2730_v6 = vld [vmem:[#allocation2 + $0xe8] sm:$0xff]  ;;  %3450 = vmatpush.bf16.msra.mxu1 %v2830_v55 }
 0x3f4   : > { %3627 = vmatpush.bf16.msra.mxu3 %v2847_v50  ;;  %3361 = vmatpush.bf16.msra.mxu0 %v2822_v54  ;;  %v2821_v3 = vpack.c.bf16 %v2699_v2, %v2698_v1  ;;  %v2829_v7 = vpack.c.bf16 %v2715_v5, %v2714_v4  ;;  %v2731_v8 = vld [vmem:[#allocation2 + $0x78] sm:$0xff]  ;;  %v2746_v9 = vld [vmem:[#allocation2 + $0xc0] sm:$0xff]  ;;  %v2697_v14 = vld [vmem:[#allocation2 + $0x110] sm:$0xff] }
 0x3f5   : > { %3539 = vmatpush.bf16.msra.mxu2 %v2838_v59  ;;  %v2747_v10 = vld [vmem:[#allocation2 + $0x1c0] sm:$0xff]  ;;  %2907 = vperm.xlu2 %5332, %v2853_v61   ;;  %v2837_v11 = vpack.c.bf16 %v2731_v8, %v2730_v6  ;;  %v2712_v15 = vld [vmem:[#allocation2 + $0x1e8] sm:$0xff]  ;;  %v2713_v16 = vld [vmem:[#allocation2 + $0xf8] sm:$0xff] }
 0x3f6   : > { %v2845_v12 = vpack.c.bf16 %v2747_v10, %v2746_v9  ;;  %v2696_v13 = vld [vmem:[#allocation2 + $0x180] sm:$0xff]  ;;  %2897 = vperm.xlu1 %5331, %v2851_v62   ;;  %2887 = vperm.xlu0 %5330, %v2849_v0   ;;  %v2729_v18 = vld [vmem:[#allocation2 + $0x1f0] sm:$0xff]  ;;  %v2744_v20 = vld [vmem:[#allocation2 + $0x198] sm:$0xff]  ;;  %v2828_v22 = vpack.c.bf16 %v2713_v16, %v2712_v15 }
 0x3f7   : > { %v2728_v17 = vld [vmem:[#allocation2 + $0x1a0] sm:$0xff]  ;;  %v2820_v19 = vpack.c.bf16 %v2697_v14, %v2696_v13  ;;  %v2745_v21 = vld [vmem:[#allocation2 + $0x38] sm:$0xff]  ;;  %3451 = vmatpush.bf16.msra.mxu1 %v2829_v7  ;;  %v2694_v25 = vld [vmem:[#allocation2 + $0x130] sm:$0xff] }
 0x3f8   : > { %3628 = vmatpush.bf16.msra.mxu3 %v2846_v63  ;;  %3362 = vmatpush.bf16.msra.mxu0 %v2821_v3  ;;  %v2836_v23 = vpack.c.bf16 %v2729_v18, %v2728_v17  ;;  %v2856_v24 = vld [vmem:[%s6765_s4 + $0x40] sm:$0xff]  ;;  %v2844_v26 = vpack.c.bf16 %v2745_v21, %v2744_v20  ;;  %v2695_v27 = vld [vmem:[#allocation2 + $0x48] sm:$0xff]  ;;  %v2710_v28 = vld [vmem:[#allocation2 + $0x1b8] sm:$0xff] }
 0x3f9   : > { %3540 = vmatpush.bf16.msra.mxu2 %v2837_v11  ;;  %v2711_v29 = vld [vmem:[#allocation2 + $0x28] sm:$0xff]  ;;  %v2726_v30 = vld [vmem:[#allocation2 + $0x20] sm:$0xff]  ;;  %v2855_v33 = vld [vmem:[%s6765_s4 + $0x38] sm:$0xff]  ;;  %v2819_v35 = vpack.c.bf16 %v2695_v27, %v2694_v25 }
 0x3fa   : > { %v2727_v31 = vld [vmem:[#allocation2 + $0x128] sm:$0xff]  ;;  %v2854_v34 = vld [vmem:[%s6765_s4 + $0x30] sm:$0xff]  ;;  %v2827_v37 = vpack.c.bf16 %v2711_v29, %v2710_v28  ;;  %v2708_v41 = vld [vmem:[#allocation2 + $0x80] sm:$0xff] }
 0x3fb   : > { %v2742_v32 = vld [vmem:[#allocation2 + $0x68] sm:$0xff]  ;;  %v2743_v36 = vld [vmem:[#allocation2 + $0x190] sm:$0xff]  ;;  %3452 = vmatpush.bf16.msra.mxu1 %v2828_v22  ;;  %v2835_v38 = vpack.c.bf16 %v2727_v31, %v2726_v30  ;;  %v2724_v44 = vld [vmem:[#allocation2 + $0x40] sm:$0xff] }
 0x3fc   : > { %3629 = vmatpush.bf16.msra.mxu3 %v2845_v12  ;;  %3363 = vmatpush.bf16.msra.mxu0 %v2820_v19  ;;  %v2692_v39 = vld [vmem:[#allocation2 + $0x50] sm:$0xff]  ;;  %v2693_v40 = vld [vmem:[#allocation2 + $0x168] sm:$0xff]  ;;  %v2843_v42 = vpack.c.bf16 %v2743_v36, %v2742_v32  ;;  %v2725_v45 = vld [vmem:[#allocation2 + $0x1f8] sm:$0xff] }
 0x3fd   : > { %3541 = vmatpush.bf16.msra.mxu2 %v2836_v23  ;;  %2922 = vperm.xlu2 %5332, %v2856_v24   ;;  %v2709_v43 = vld [vmem:[#allocation2 + $0x1a8] sm:$0xff]  ;;  %v2740_v46 = vld [vmem:[#allocation2 + $0x170] sm:$0xff]  ;;  %v2741_v47 = vld [vmem:[#allocation2 + $0x178] sm:$0xff]  ;;  %v2818_v48 = vpack.c.bf16 %v2693_v40, %v2692_v39  ;;  %v2834_v50 = vpack.c.bf16 %v2725_v45, %v2724_v44 }
 0x3fe   : > { %2917 = vperm.xlu1 %5331, %v2855_v33   ;;  %2912 = vperm.xlu0 %5330, %v2854_v34   ;;  %v2826_v49 = vpack.c.bf16 %v2709_v43, %v2708_v41  ;;  %v2690_v51 = vld [vmem:[#allocation2 + $0xd8] sm:$0xff]  ;;  %v2842_v54 = vpack.c.bf16 %v2741_v47, %v2740_v46  ;;  %v2707_v55 = vld [vmem:[#allocation2 + $0x140] sm:$0xff]  ;;  %v2723_v57 = vld [vmem:[#allocation2 + $0xc8] sm:$0xff] }
 0x3ff   : > { %3453 = vmatpush.bf16.msra.mxu1 %v2827_v37  ;;  %v2691_v52 = vld [vmem:[#allocation2 + $0x18] sm:$0xff]  ;;  %v2722_v56 = vld [vmem:[#allocation2 + $0x100] sm:$0xff]  ;;  %v2738_v59 = vld [vmem:[#allocation2 + $0xa8] sm:$0xff] }
 0x400   : > { %3630 = vmatpush.bf16.msra.mxu3 %v2844_v26  ;;  %3364 = vmatpush.bf16.msra.mxu0 %v2819_v35  ;;  %v2706_v53 = vld [vmem:[#allocation2 + $0x138] sm:$0xff]  ;;  %v2739_v60 = vld [vmem:[#allocation2 + $0x1c8] sm:$0xff]  ;;  %v2858_v61 = vld [vmem:[%s6765_s4 + $0x50] sm:$0xff]  ;;  %v2817_v63 = vpack.c.bf16 %v2691_v52, %v2690_v51  ;;  %v2833_v1 = vpack.c.bf16 %v2723_v57, %v2722_v56 }
 0x401   : > { %3542 = vmatpush.bf16.msra.mxu2 %v2835_v38  ;;  %v2859_v58 = vld [vmem:[%s6765_s4 + $0x58] sm:$0xff]  ;;  %v2857_v62 = vld [vmem:[%s6765_s4 + $0x48] sm:$0xff]  ;;  %v2825_v0 = vpack.c.bf16 %v2707_v55, %v2706_v53  ;;  %v2688_v2 = vld [vmem:[#allocation2 + $0xb0] sm:$0xff]  ;;  %v2841_v5 = vpack.c.bf16 %v2739_v60, %v2738_v59 }
 0x402   : > { %v2689_v3 = vld [vmem:[#allocation2 + $0x1b0] sm:$0xff]  ;;  %v2704_v4 = vld [vmem:[#allocation2 + $0xe0] sm:$0xff]  ;;  %v2705_v6 = vld [vmem:[#allocation2 + $0x188] sm:$0xff] }
 0x403   : > { %3454 = vmatpush.bf16.msra.mxu1 %v2826_v49  ;;  %v2720_v7 = vld [vmem:[#allocation2 + $0x148] sm:$0xff]  ;;  %v2721_v8 = vld [vmem:[#allocation2 + $0x1d0] sm:$0xff]  ;;  %v2736_v9 = vld [vmem:[#allocation2 + $0xb8] sm:$0xff]  ;;  %v2816_v11 = vpack.c.bf16 %v2689_v3, %v2688_v2  ;;  %v2824_v14 = vpack.c.bf16 %v2705_v6, %v2704_v4 }
 0x404   : > { %3631 = vmatpush.bf16.msra.mxu3 %v2843_v42  ;;  %3365 = vmatpush.bf16.msra.mxu0 %v2818_v48  ;;  %v2737_v10 = vld [vmem:[#allocation2 + $0x88] sm:$0xff]  ;;  %v4776_v12 = vld [vmem:[%s6764_s3] sm:$0xf]  ;;  %v5198_v13 = vld [vmem:[%s6764_s3 + $0xc] sm:$0xf0]  ;;  %v2832_v15 = vpack.c.bf16 %v2721_v8, %v2720_v7 }
 0x405   : > { %3543 = vmatpush.bf16.msra.mxu2 %v2834_v50  ;;  %2937 = vperm.xlu2 %5332, %v2859_v58   ;;  %v5196_v16 = vld [vmem:[%s6764_s3 + $0x4] sm:$0xf]  ;;  %v4778_v17 = vld [vmem:[%s6764_s3 + $0x10] sm:$0xf0]  ;;  %v4784_v18 = vld [vmem:[%s6764_s3 + $0x8] sm:$0xf]  ;;  %v2840_v19 = vpack.c.bf16 %v2737_v10, %v2736_v9  ;;  %v4777_v26 = vor.u32 %v5198_v13, %v4776_v12 }
 0x406   : > { %2932 = vperm.xlu1 %5331, %v2858_v61   ;;  %2927 = vperm.xlu0 %5330, %v2857_v62   ;;  %v5199_v20 = vld [vmem:[%s6764_s3 + $0x14] sm:$0xf0]  ;;  %v5197_v21 = vld [vmem:[%s6764_s3 + $0xc] sm:$0xf]  ;;  %v4786_v22 = vld [vmem:[%s6764_s3 + $0x18] sm:$0xf0]  ;;  %v4781_v27 = vor.u32 %v5196_v16, %v4778_v17 }
 0x407   : > { %3455 = vmatpush.bf16.msra.mxu1 %v2825_v0  ;;  %v2862_v23 = vld [vmem:[%s6765_s4 + $0x70] sm:$0xff]  ;;  %v2861_v24 = vld [vmem:[%s6765_s4 + $0x68] sm:$0xff]  ;;  %v2860_v25 = vld [vmem:[%s6765_s4 + $0x60] sm:$0xff]  ;;  %v4785_v28 = vor.u32 %v5199_v20, %v4784_v18  ;;  %v4789_v29 = vor.u32 %v5197_v21, %v4786_v22 }
 0x408   : > { %3632 = vmatpush.bf16.msra.mxu3 %v2842_v54  ;;  %3366 = vmatpush.bf16.msra.mxu0 %v2817_v63  ;;  %v2865_v30 = vld [vmem:[%s6765_s4 + $0x88] sm:$0xff]  ;;  %v2864_v31 = vld [vmem:[%s6765_s4 + $0x80] sm:$0xff]  ;;  %v2863_v32 = vld [vmem:[%s6765_s4 + $0x78] sm:$0xff] }
 0x409   : > { %3544 = vmatpush.bf16.msra.mxu2 %v2833_v1  ;;  %v4792_v33 = vld [vmem:[%s6764_s3 + $0x20] sm:$0xf]  ;;  %v5202_v34 = vld [vmem:[%s6764_s3 + $0x2c] sm:$0xf0]  ;;  %v5200_v35 = vld [vmem:[%s6764_s3 + $0x24] sm:$0xf] }
 0x40a   : > { %v4794_v36 = vld [vmem:[%s6764_s3 + $0x30] sm:$0xf0]  ;;  %v4800_v37 = vld [vmem:[%s6764_s3 + $0x28] sm:$0xf]  ;;  %v5203_v38 = vld [vmem:[%s6764_s3 + $0x34] sm:$0xf0]  ;;  %v4793_v44 = vor.u32 %v5202_v34, %v4792_v33 }
 0x40b   : > { %3456 = vmatpush.bf16.msra.mxu1 %v2824_v14  ;;  %v5201_v39 = vld [vmem:[%s6764_s3 + $0x2c] sm:$0xf]  ;;  %v4802_v40 = vld [vmem:[%s6764_s3 + $0x38] sm:$0xf0]  ;;  %v2868_v41 = vld [vmem:[%s6765_s4 + $0xa0] sm:$0xff]  ;;  %v4797_v45 = vor.u32 %v5200_v35, %v4794_v36  ;;  %v4801_v46 = vor.u32 %v5203_v38, %v4800_v37 }
 0x40c   : > { %3633 = vmatpush.bf16.msra.mxu3 %v2841_v5  ;;  %3367 = vmatpush.bf16.msra.mxu0 %v2816_v11  ;;  %v2867_v42 = vld [vmem:[%s6765_s4 + $0x98] sm:$0xff]  ;;  %v2866_v43 = vld [vmem:[%s6765_s4 + $0x90] sm:$0xff]  ;;  %v4805_v47 = vor.u32 %v5201_v39, %v4802_v40  ;;  %v2869_v50 = vld [vmem:[%s6765_s4 + $0xa8] sm:$0xff] }
 0x40d   : > { %3545 = vmatpush.bf16.msra.mxu2 %v2832_v15  ;;  %2952 = vperm.xlu2 %5332, %v2862_v23   ;;  %v2871_v48 = vld [vmem:[%s6765_s4 + $0xb8] sm:$0xff]  ;;  %v2870_v49 = vld [vmem:[%s6765_s4 + $0xb0] sm:$0xff]  ;;  %v4808_v51 = vld [vmem:[%s6764_s3 + $0x40] sm:$0xf] }
 0x40e   : > { %2947 = vperm.xlu1 %5331, %v2861_v24   ;;  %2942 = vperm.xlu0 %5330, %v2860_v25   ;;  %v5206_v52 = vld [vmem:[%s6764_s3 + $0x4c] sm:$0xf0]  ;;  %v5204_v53 = vld [vmem:[%s6764_s3 + $0x44] sm:$0xf]  ;;  %v4810_v54 = vld [vmem:[%s6764_s3 + $0x50] sm:$0xf0] }
 0x40f   : > { %3368 = vmatmul.bf16.vlgmr.msra.gmra.mxu0 %v4777_v26  ;;  %3457 = vmatmul.bf16.vlgmr.msra.gmra.mxu1 %v4781_v27  ;;  %v4816_v55 = vld [vmem:[%s6764_s3 + $0x48] sm:$0xf]  ;;  %v5207_v56 = vld [vmem:[%s6764_s3 + $0x54] sm:$0xf0]  ;;  %v5205_v57 = vld [vmem:[%s6764_s3 + $0x4c] sm:$0xf]  ;;  %v4809_v62 = vor.u32 %v5206_v52, %v4808_v51  ;;  %v4813_v63 = vor.u32 %v5204_v53, %v4810_v54 }
 0x410   : > { %3634 = vmatpush.bf16.msra.mxu3 %v2840_v19  ;;  %3546 = vmatmul.bf16.vlgmr.msra.gmra.mxu2 %v4785_v28  ;;  %v4818_v58 = vld [vmem:[%s6764_s3 + $0x58] sm:$0xf0]  ;;  %v2874_v59 = vld [vmem:[%s6765_s4 + $0xd0] sm:$0xff]  ;;  %v2873_v60 = vld [vmem:[%s6765_s4 + $0xc8] sm:$0xff]  ;;  %v4817_v0 = vor.u32 %v5207_v56, %v4816_v55 }
 0x411   : > { %v2872_v61 = vld [vmem:[%s6765_s4 + $0xc0] sm:$0xff]  ;;  %v4821_v1 = vor.u32 %v5205_v57, %v4818_v58  ;;  %v2877_v2 = vld [vmem:[%s6765_s4 + $0xe8] sm:$0xff]  ;;  %v2875_v4 = vld [vmem:[%s6765_s4 + $0xd8] sm:$0xff] }
 0x412   : > { %v2876_v3 = vld [vmem:[%s6765_s4 + $0xe0] sm:$0xff]  ;;  %v5210_v6 = vld [vmem:[%s6764_s3 + $0x6c] sm:$0xf0]  ;;  %v4826_v8 = vld [vmem:[%s6764_s3 + $0x70] sm:$0xf0] }
 0x413   : > { %3635 = vmatmul.bf16.vlgmr.msra.gmra.mxu3 %v4789_v29  ;;  %v4824_v5 = vld [vmem:[%s6764_s3 + $0x60] sm:$0xf]  ;;  %v5208_v7 = vld [vmem:[%s6764_s3 + $0x64] sm:$0xf]  ;;  %v4832_v9 = vld [vmem:[%s6764_s3 + $0x68] sm:$0xf] }
 0x414   : > { %v5211_v10 = vld [vmem:[%s6764_s3 + $0x74] sm:$0xf0]  ;;  %v5209_v11 = vld [vmem:[%s6764_s3 + $0x6c] sm:$0xf]  ;;  %v4834_v12 = vld [vmem:[%s6764_s3 + $0x78] sm:$0xf0]  ;;  %v4825_v16 = vor.u32 %v5210_v6, %v4824_v5  ;;  %v4829_v17 = vor.u32 %v5208_v7, %v4826_v8 }
 0x415   : > { %2967 = vperm.xlu2 %5332, %v2865_v30   ;;  %v3748_v13 = vld [vmem:[%s6766_s5] sm:$0xff]  ;;  %v2879_v14 = vld [vmem:[%s6765_s4 + $0xf8] sm:$0xff]  ;;  %v2878_v15 = vld [vmem:[%s6765_s4 + $0xf0] sm:$0xff]  ;;  %v4833_v18 = vor.u32 %v5211_v10, %v4832_v9  ;;  %v4837_v19 = vor.u32 %v5209_v11, %v4834_v12 }
 0x416   : > { %2962 = vperm.xlu1 %5331, %v2864_v31   ;;  %2957 = vperm.xlu0 %5330, %v2863_v32   ;;  %v3751_v20 = vld [vmem:[%s6766_s5 + $0x18] sm:$0xff]  ;;  %v3750_v21 = vld [vmem:[%s6766_s5 + $0x10] sm:$0xff]  ;;  %v3749_v22 = vld [vmem:[%s6766_s5 + $0x8] sm:$0xff] }
 0x417   : > { %v4840_v23 = vld [vmem:[%s6764_s3 + $0x80] sm:$0xf]  ;;  %v5214_v24 = vld [vmem:[%s6764_s3 + $0x8c] sm:$0xf0]  ;;  %v5212_v25 = vld [vmem:[%s6764_s3 + $0x84] sm:$0xf] }
 0x418   : > { %v4842_v26 = vld [vmem:[%s6764_s3 + $0x90] sm:$0xf0]  ;;  %v4848_v27 = vld [vmem:[%s6764_s3 + $0x88] sm:$0xf]  ;;  %v5215_v28 = vld [vmem:[%s6764_s3 + $0x94] sm:$0xf0]  ;;  %v4841_v35 = vor.u32 %v5214_v24, %v4840_v23 }
 0x419   : > { %v5213_v29 = vld [vmem:[%s6764_s3 + $0x8c] sm:$0xf]  ;;  %v4850_v30 = vld [vmem:[%s6764_s3 + $0x98] sm:$0xf0]  ;;  %v3754_v31 = vld [vmem:[%s6766_s5 + $0x30] sm:$0xff]  ;;  %v4845_v36 = vor.u32 %v5212_v25, %v4842_v26  ;;  %v4849_v37 = vor.u32 %v5215_v28, %v4848_v27 }
 0x41a   : > { %v3753_v33 = vld [vmem:[%s6766_s5 + $0x28] sm:$0xff]  ;;  %v3752_v34 = vld [vmem:[%s6766_s5 + $0x20] sm:$0xff]  ;;  %v4853_v38 = vor.u32 %v5213_v29, %v4850_v30  ;;  %v3759_v52 = vld [vmem:[%s6766_s5 + $0x58] sm:$0xff] }
 0x41b   : > { %v3757_v39 = vld [vmem:[%s6766_s5 + $0x48] sm:$0xff]  ;;  %v3756_v40 = vld [vmem:[%s6766_s5 + $0x40] sm:$0xff]  ;;  %v3758_v53 = vld [vmem:[%s6766_s5 + $0x50] sm:$0xff] }
 0x41c   : > { %v3760_v51 = vld [vmem:[%s6766_s5 + $0x60] sm:$0xff]  ;;  %v4874_v5 = vld [vmem:[%s6764_s3 + $0xd0] sm:$0xf0]  ;;  %v4880_v6 = vld [vmem:[%s6764_s3 + $0xc8] sm:$0xf] }
 0x41d   : > { %2982 = vperm.xlu2 %5332, %v2868_v41   ;;  %v3755_v41 = vld [vmem:[%s6766_s5 + $0x38] sm:$0xff]  ;;  %v5221_v9 = vld [vmem:[%s6764_s3 + $0xcc] sm:$0xf]  ;;  %v3766_v11 = vld [vmem:[%s6766_s5 + $0x90] sm:$0xff] }
 0x41e   : > { %2977 = vperm.xlu1 %5331, %v2867_v42   ;;  %2972 = vperm.xlu0 %5330, %v2866_v43   ;;  %v4856_v43 = vld [vmem:[%s6764_s3 + $0xa0] sm:$0xf]  ;;  %v5223_v8 = vld [vmem:[%s6764_s3 + $0xd4] sm:$0xf0]  ;;  %v4882_v10 = vld [vmem:[%s6764_s3 + $0xd8] sm:$0xf0] }
 0x41f   : > { %3373 = vmatmul.bf16.gmra.mxu0 %v4793_v44  ;;  %3462 = vmatmul.bf16.gmra.mxu1 %v4797_v45  ;;  %v5218_v44 = vld [vmem:[%s6764_s3 + $0xac] sm:$0xf0]  ;;  %v5216_v45 = vld [vmem:[%s6764_s3 + $0xa4] sm:$0xf]  ;;  %v3765_v12 = vld [vmem:[%s6766_s5 + $0x88] sm:$0xff] }
 0x420   : > { %3551 = vmatmul.bf16.gmra.mxu2 %v4801_v46  ;;  %v4858_v46 = vld [vmem:[%s6764_s3 + $0xb0] sm:$0xf0]  ;;  %v4857_v54 = vor.u32 %v5218_v44, %v4856_v43  ;;  %v3767_v23 = vld [vmem:[%s6766_s5 + $0x98] sm:$0xff]  ;;  %v4888_v24 = vld [vmem:[%s6764_s3 + $0xe0] sm:$0xf] }
 0x421   : > { %v4861_v55 = vor.u32 %v5216_v45, %v4858_v46  ;;  %v5226_v25 = vld [vmem:[%s6764_s3 + $0xec] sm:$0xf0]  ;;  %v5224_v28 = vld [vmem:[%s6764_s3 + $0xe4] sm:$0xf]  ;;  %v4890_v29 = vld [vmem:[%s6764_s3 + $0xf0] sm:$0xf0] }
 0x422   : > { %v4896_v30 = vld [vmem:[%s6764_s3 + $0xe8] sm:$0xf]  ;;  %v3775_v46 = vld [vmem:[%s6766_s5 + $0xd8] sm:$0xff] }
 0x423   : > { %3640 = vmatmul.bf16.gmra.mxu3 %v4805_v47  ;;  %v4864_v47 = vld [vmem:[%s6764_s3 + $0xa8] sm:$0xf] }
 0x425   : > { %2997 = vperm.xlu2 %5332, %v2871_v48   ;;  %v5219_v48 = vld [vmem:[%s6764_s3 + $0xb4] sm:$0xf0] }
 0x426   : > { %2992 = vperm.xlu1 %5331, %v2870_v49   ;;  %2987 = vperm.xlu0 %5330, %v2869_v50   ;;  %v5217_v49 = vld [vmem:[%s6764_s3 + $0xac] sm:$0xf]  ;;  %v4866_v50 = vld [vmem:[%s6764_s3 + $0xb8] sm:$0xf0]  ;;  %v4865_v56 = vor.u32 %v5219_v48, %v4864_v47  ;;  %v3774_v47 = vld [vmem:[%s6766_s5 + $0xd0] sm:$0xff] }
 0x427   : > { %v4869_v57 = vor.u32 %v5217_v49, %v4866_v50  ;;  %v3773_v48 = vld [vmem:[%s6766_s5 + $0xc8] sm:$0xff]  ;;  %v4904_v50 = vld [vmem:[%s6764_s3 + $0x100] sm:$0xf] }
 0x42d   : > { %3012 = vperm.xlu2 %5332, %v2874_v59  }
 0x42e   : > { %3007 = vperm.xlu1 %5331, %v2873_v60   ;;  %3002 = vperm.xlu0 %5330, %v2872_v61   ;;  %v3763_v61 = vld [vmem:[%s6766_s5 + $0x78] sm:$0xff] }
 0x42f   : > { %3378 = vmatmul.bf16.gmra.mxu0 %v4809_v62  ;;  %3467 = vmatmul.bf16.gmra.mxu1 %v4813_v63  ;;  %v3762_v62 = vld [vmem:[%s6766_s5 + $0x70] sm:$0xff]  ;;  %v3761_v63 = vld [vmem:[%s6766_s5 + $0x68] sm:$0xff] }
 0x430   : > { %3556 = vmatmul.bf16.gmra.mxu2 %v4817_v0  ;;  %v4872_v0 = vld [vmem:[%s6764_s3 + $0xc0] sm:$0xf] }
 0x433   : > { %3645 = vmatmul.bf16.gmra.mxu3 %v4821_v1  ;;  %v5222_v1 = vld [vmem:[%s6764_s3 + $0xcc] sm:$0xf0] }
 0x435   : > { %3027 = vperm.xlu2 %5332, %v2877_v2  }
 0x436   : > { %3022 = vperm.xlu1 %5331, %v2876_v3   ;;  %3017 = vperm.xlu0 %5330, %v2875_v4   ;;  %v5220_v4 = vld [vmem:[%s6764_s3 + $0xc4] sm:$0xf] }
 0x43d   : > { %3782 = vperm.xlu2 %5332, %v3748_v13   ;;  %v3764_v13 = vld [vmem:[%s6766_s5 + $0x80] sm:$0xff] }
 0x43e   : > { %3037 = vperm.xlu1 %5331, %v2879_v14   ;;  %3032 = vperm.xlu0 %5330, %v2878_v15   ;;  %v4873_v14 = vor.u32 %v5222_v1, %v4872_v0  ;;  %v4877_v15 = vor.u32 %v5220_v4, %v4874_v5  ;;  %v3777_v0 = vld [vmem:[%s6766_s5 + $0xe8] sm:$0xff]  ;;  %v3776_v1 = vld [vmem:[%s6766_s5 + $0xe0] sm:$0xff] }
 0x43f   : > { %3383 = vmatmul.bf16.gmra.mxu0 %v4825_v16  ;;  %3472 = vmatmul.bf16.gmra.mxu1 %v4829_v17  ;;  %v4881_v16 = vor.u32 %v5223_v8, %v4880_v6  ;;  %v4885_v17 = vor.u32 %v5221_v9, %v4882_v10 }
 0x440   : > { %3561 = vmatmul.bf16.gmra.mxu2 %v4833_v18 }
 0x443   : > { %3650 = vmatmul.bf16.gmra.mxu3 %v4837_v19 }
 0x445   : > { %3797 = vperm.xlu2 %5332, %v3751_v20   ;;  %v3769_v20 = vld [vmem:[%s6766_s5 + $0xa8] sm:$0xff] }
 0x446   : > { %3792 = vperm.xlu1 %5331, %v3750_v21   ;;  %3787 = vperm.xlu0 %5330, %v3749_v22   ;;  %v3768_v22 = vld [vmem:[%s6766_s5 + $0xa0] sm:$0xff] }
 0x447   : > { %v6288_v32 = vpop.permute.xlu2 %2902 }
 0x44d   : > { %3812 = vperm.xlu2 %5332, %v3754_v31   ;;  %v5227_v31 = vld [vmem:[%s6764_s3 + $0xf4] sm:$0xf0] }
 0x44e   : > { %3807 = vperm.xlu1 %5331, %v3753_v33   ;;  %3802 = vperm.xlu0 %5330, %v3752_v34   ;;  %v5225_v33 = vld [vmem:[%s6764_s3 + $0xec] sm:$0xf]  ;;  %v4898_v34 = vld [vmem:[%s6764_s3 + $0xf8] sm:$0xf0] }
 0x44f   : > { %3388 = vmatmul.bf16.gmra.mxu0 %v4841_v35  ;;  %3477 = vmatmul.bf16.gmra.mxu1 %v4845_v36  ;;  %v6305_v42 = vpop.permute.xlu2 %2907  ;;  %v3772_v35 = vld [vmem:[%s6766_s5 + $0xc0] sm:$0xff]  ;;  %v3771_v36 = vld [vmem:[%s6766_s5 + $0xb8] sm:$0xff] }
 0x450   : > { %3566 = vmatmul.bf16.gmra.mxu2 %v4849_v37  ;;  %v3770_v37 = vld [vmem:[%s6766_s5 + $0xb0] sm:$0xff] }
 0x453   : > { %3655 = vmatmul.bf16.gmra.mxu3 %v4853_v38  ;;  %v4889_v38 = vor.u32 %v5226_v25, %v4888_v24 }
 0x455   : > { %3827 = vperm.xlu2 %5332, %v3757_v39   ;;  %v4893_v39 = vor.u32 %v5224_v28, %v4890_v29 }
 0x456   : > { %3822 = vperm.xlu1 %5331, %v3756_v40   ;;  %3817 = vperm.xlu0 %5330, %v3755_v41   ;;  %v4897_v40 = vor.u32 %v5227_v31, %v4896_v30  ;;  %v4901_v41 = vor.u32 %v5225_v33, %v4898_v34  ;;  %v4920_v30 = vld [vmem:[%s6764_s3 + $0x120] sm:$0xf]  ;;  %v5234_v31 = vld [vmem:[%s6764_s3 + $0x12c] sm:$0xf0] }
 0x457   : > { %v6340_v58 = vpop.permute.xlu2 %2922 }
 0x45d   : > { %3842 = vperm.xlu2 %5332, %v3760_v51   ;;  %v5230_v51 = vld [vmem:[%s6764_s3 + $0x10c] sm:$0xf0] }
 0x45e   : > { %3837 = vperm.xlu1 %5331, %v3759_v52   ;;  %3832 = vperm.xlu0 %5330, %v3758_v53   ;;  %v4905_v4 = vor.u32 %v5230_v51, %v4904_v50 }
 0x45f   : > { %3393 = vmatmul.bf16.gmra.mxu0 %v4857_v54  ;;  %3482 = vmatmul.bf16.gmra.mxu1 %v4861_v55  ;;  %v6374_v7 = vpop.permute.xlu2 %2937  ;;  %v5228_v54 = vld [vmem:[%s6764_s3 + $0x104] sm:$0xf]  ;;  %v4906_v55 = vld [vmem:[%s6764_s3 + $0x110] sm:$0xf0] }
 0x460   : > { %3571 = vmatmul.bf16.gmra.mxu2 %v4865_v56  ;;  %v6342_v59 = vpop.permute.xlu1 %2892  ;;  %v6344_v60 = vpop.permute.xlu0 %2882  ;;  %v4912_v56 = vld [vmem:[%s6764_s3 + $0x108] sm:$0xf]  ;;  %v4909_v5 = vor.u32 %v5228_v54, %v4906_v55 }
 0x463   : > { %3660 = vmatmul.bf16.gmra.mxu3 %v4869_v57  ;;  %v5231_v57 = vld [vmem:[%s6764_s3 + $0x114] sm:$0xf0] }
 0x464   : > { %v4913_v9 = vor.u32 %v5231_v57, %v4912_v56 }
 0x465   : > { %3857 = vperm.xlu2 %5332, %v3763_v61   ;;  %v5229_v61 = vld [vmem:[%s6764_s3 + $0x10c] sm:$0xf] }
 0x466   : > { %3852 = vperm.xlu1 %5331, %v3762_v62   ;;  %3847 = vperm.xlu0 %5330, %v3761_v63   ;;  %v4914_v62 = vld [vmem:[%s6764_s3 + $0x118] sm:$0xf0]  ;;  %v3778_v63 = vld [vmem:[%s6766_s5 + $0xf0] sm:$0xff] }
 0x467   : > { %v6401_v21 = vpop.permute.xlu2 %2952  ;;  %v4917_v10 = vor.u32 %v5229_v61, %v4914_v62 }
 0x468   : > { %v6361_v2 = vpop.permute.xlu1 %2897  ;;  %v6363_v3 = vpop.permute.xlu0 %2887 }
 0x46d   : > { %3872 = vperm.xlu2 %5332, %v3766_v11  }
 0x46e   : > { %3867 = vperm.xlu1 %5331, %v3765_v12   ;;  %3862 = vperm.xlu0 %5330, %v3764_v13  }
 0x46f   : > { %3398 = vmatmul.bf16.gmra.mxu0 %v4873_v14  ;;  %3487 = vmatmul.bf16.gmra.mxu1 %v4877_v15  ;;  %v6446_v43 = vpop.permute.xlu2 %2967 }
 0x470   : > { %3576 = vmatmul.bf16.gmra.mxu2 %v4881_v16  ;;  %v6394_v18 = vpop.permute.xlu1 %2917  ;;  %v6396_v19 = vpop.permute.xlu0 %2912 }
 0x473   : > { %3665 = vmatmul.bf16.gmra.mxu3 %v4885_v17 }
 0x475   : > { %3887 = vperm.xlu2 %5332, %v3769_v20   ;;  %v4009_v20 = vld [vmem:[#allocation3] sm:$0x1] }
 0x476   : > { %3882 = vperm.xlu1 %5331, %v3768_v22   ;;  %3877 = vperm.xlu0 %5330, %v3767_v23  }
 0x477   : > { %v6461_v49 = vpop.permute.xlu2 %2982 }
 0x478   : > { %v6415_v26 = vpop.permute.xlu1 %2932  ;;  %v6417_v27 = vpop.permute.xlu0 %2927 }
 0x47d   : > { %3902 = vperm.xlu2 %5332, %v3772_v35   ;;  %v4922_v35 = vld [vmem:[%s6764_s3 + $0x130] sm:$0xf0] }
 0x47e   : > { %3897 = vperm.xlu1 %5331, %v3771_v36   ;;  %3892 = vperm.xlu0 %5330, %v3770_v37   ;;  %v4928_v36 = vld [vmem:[%s6764_s3 + $0x128] sm:$0xf]  ;;  %v5235_v37 = vld [vmem:[%s6764_s3 + $0x134] sm:$0xf0] }
 0x47f   : > { %3403 = vmatmul.bf16.gmra.mxu0 %v4889_v38  ;;  %3492 = vmatmul.bf16.gmra.mxu1 %v4893_v39  ;;  %v6505_v15 = vpop.permute.xlu2 %2997  ;;  %v5233_v38 = vld [vmem:[%s6764_s3 + $0x12c] sm:$0xf]  ;;  %v4930_v39 = vld [vmem:[%s6764_s3 + $0x138] sm:$0xf0]  ;;  %v4929_v54 = vor.u32 %v5235_v37, %v4928_v36 }
 0x480   : > { %3581 = vmatmul.bf16.gmra.mxu2 %v4897_v40  ;;  %v6448_v44 = vpop.permute.xlu1 %2947  ;;  %v6450_v45 = vpop.permute.xlu0 %2942  ;;  %v4933_v55 = vor.u32 %v5233_v38, %v4930_v39 }
 0x483   : > { %3670 = vmatmul.bf16.gmra.mxu3 %v4901_v41 }
 0x485   : > { %3917 = vperm.xlu2 %5332, %v3775_v46   ;;  %v4921_v46 = vor.u32 %v5234_v31, %v4920_v30 }
 0x486   : > { %3912 = vperm.xlu1 %5331, %v3774_v47   ;;  %3907 = vperm.xlu0 %5330, %v3773_v48  }
 0x487   : > { %v6541_v56 = vpop.permute.xlu2 %3012 }
 0x488   : > { %v6469_v52 = vpop.permute.xlu1 %2962  ;;  %v6471_v53 = vpop.permute.xlu0 %2957 }
 0x48c   : > { %v3369_v6 = vpop.f32.mrf.mxu0  ;;  %v3458_v8 = vpop.f32.mrf.mxu1 }
 0x48d   : > { %v3370_v11 = vadd.f32 %v3369_v6, %v6344_v60  ;;  %3932 = vperm.xlu2 %5332, %v3778_v63   ;;  %v3779_v60 = vld [vmem:[%s6766_s5 + $0xf8] sm:$0xff] }
 0x48e   : > { %3927 = vperm.xlu1 %5331, %v3777_v0   ;;  %3922 = vperm.xlu0 %5330, %v3776_v1  }
 0x48f   : > { %v3459_v12 = vadd.f32 %v3458_v8, %v3370_v11  ;;  %3408 = vmatmul.bf16.gmra.mxu0 %v4905_v4  ;;  %3497 = vmatmul.bf16.gmra.mxu1 %v4909_v5 }
 0x490   : > { %3586 = vmatmul.bf16.gmra.mxu2 %v4913_v9  ;;  %v6501_v13 = vpop.permute.xlu1 %2977  ;;  %v6503_v14 = vpop.permute.xlu0 %2972 }
 0x493   : > { %3675 = vmatmul.bf16.gmra.mxu3 %v4917_v10  ;;  %v3547_v16 = vpop.f32.mrf.mxu2 }
 0x494   : > { %v3548_v22 = vadd.f32 %v3547_v16, %v3459_v12  ;;  %v3371_v23 = vpop.f32.mrf.mxu0  ;;  %v3460_v24 = vpop.f32.mrf.mxu1  ;;  %v4936_v12 = vld [vmem:[%s6764_s3 + $0x140] sm:$0xf]  ;;  %v5238_v16 = vld [vmem:[%s6764_s3 + $0x14c] sm:$0xf0] }
 0x495   : > { %v3372_v25 = vadd.f32 %v3371_v23, %v6363_v3  ;;  %v5232_v3 = vld [vmem:[%s6764_s3 + $0x124] sm:$0xf]  ;;  %v5239_v23 = vld [vmem:[%s6764_s3 + $0x154] sm:$0xf0]  ;;  %v4937_v31 = vor.u32 %v5238_v16, %v4936_v12  ;;  %v4960_v16 = vld [vmem:[%s6764_s3 + $0x168] sm:$0xf] }
 0x496   : > { %v3636_v17 = vpop.f32.mrf.mxu3  ;;  %4012 = vperm.xlu1 %5331, %v4009_v20   ;;  %3937 = vperm.xlu0 %5330, %v3779_v60   ;;  %v4925_v47 = vor.u32 %v5232_v3, %v4922_v35  ;;  %v4938_v60 = vld [vmem:[%s6764_s3 + $0x150] sm:$0xf0] }
 0x497   : > { %v6511_v28 = vadd.f32 %v3636_v17, %v3548_v22  ;;  %v3461_v29 = vadd.f32 %v3460_v24, %v3372_v25  ;;  %v4944_v22 = vld [vmem:[%s6764_s3 + $0x148] sm:$0xf]  ;;  %v5237_v24 = vld [vmem:[%s6764_s3 + $0x14c] sm:$0xf]  ;;  %v4946_v25 = vld [vmem:[%s6764_s3 + $0x158] sm:$0xf0] }
 0x498   : > { %v6519_v33 = vpop.permute.xlu1 %2992  ;;  %v6521_v34 = vpop.permute.xlu0 %2987  ;;  %v4945_v38 = vor.u32 %v5239_v23, %v4944_v22  ;;  %v4949_v39 = vor.u32 %v5237_v24, %v4946_v25  ;;  %v5241_v24 = vld [vmem:[%s6764_s3 + $0x16c] sm:$0xf]  ;;  %v4962_v25 = vld [vmem:[%s6764_s3 + $0x178] sm:$0xf0] }
 0x49b   : > { %v3549_v40 = vpop.f32.mrf.mxu2 }
 0x49c   : > { %v3550_v48 = vadd.f32 %v3549_v40, %v3461_v29  ;;  %v3374_v50 = vpop.f32.mrf.mxu0  ;;  %v3463_v51 = vpop.f32.mrf.mxu1 }
 0x49d   : > { %v3375_v57 = vadd.f32 %v3374_v50, %v6342_v59  ;;  %v6551_v59 = vpop.permute.xlu2 %3027 }
 0x49e   : > { %v3638_v41 = vpop.f32.mrf.mxu3 }
 0x49f   : > { %v6544_v61 = vadd.f32 %v3638_v41, %v3550_v48  ;;  %v3464_v62 = vadd.f32 %v3463_v51, %v3375_v57  ;;  %3413 = vmatmul.bf16.gmra.mxu0 %v4921_v46  ;;  %3502 = vmatmul.bf16.gmra.mxu1 %v4925_v47 }
 0x4a0   : > { %3591 = vmatmul.bf16.gmra.mxu2 %v4929_v54  ;;  %v6546_v63 = vpop.permute.xlu1 %3007  ;;  %v6548_v0 = vpop.permute.xlu0 %3002 }
 0x4a3   : > { %3680 = vmatmul.bf16.gmra.mxu3 %v4933_v55  ;;  %v3552_v1 = vpop.f32.mrf.mxu2 }
 0x4a4   : > { %v3553_v5 = vadd.f32 %v3552_v1, %v3464_v62  ;;  %v3376_v6 = vpop.f32.mrf.mxu0  ;;  %v3465_v8 = vpop.f32.mrf.mxu1  ;;  %v3716_v1 = vmax.f32 %v6511_v28, 0.0 }
 0x4a5   : > { %v3377_v9 = vadd.f32 %v3376_v6, %v6361_v2  ;;  %v5236_v2 = vld [vmem:[%s6764_s3 + $0x144] sm:$0xf]  ;;  %v3783_v50 = vpop.permute.xlu2 %3782  ;;  %v3717_v6 = vmax.f32 %v6544_v61, 0.0  ;;  %v5243_v61 = vld [vmem:[%s6764_s3 + $0x174] sm:$0xf0] }
 0x4a6   : > { %v3641_v4 = vpop.f32.mrf.mxu3  ;;  %v4941_v3 = vor.u32 %v5236_v2, %v4938_v60  ;;  %v3940_v2 = vmul.f32 %v3783_v50, %v3716_v1 }
 0x4a7   : > { %v3642_v10 = vadd.f32 %v3641_v4, %v3553_v5  ;;  %v3466_v11 = vadd.f32 %v3465_v8, %v3377_v9  ;;  %v4952_v5 = vld [vmem:[%s6764_s3 + $0x160] sm:$0xf]  ;;  %v5242_v9 = vld [vmem:[%s6764_s3 + $0x16c] sm:$0xf0] }
 0x4a8   : > { %v6559_v17 = vpop.permute.xlu1 %3022  ;;  %v6561_v20 = vpop.permute.xlu0 %3017 }
 0x4a9   : > { %v3718_v60 = vmax.f32 %v3642_v10, 0.0 }
 0x4ab   : > { %v3554_v29 = vpop.f32.mrf.mxu2 }
 0x4ac   : > { %v3555_v35 = vadd.f32 %v3554_v29, %v3466_v11  ;;  %v3379_v36 = vpop.f32.mrf.mxu0  ;;  %v3468_v37 = vpop.f32.mrf.mxu1  ;;  %v5240_v11 = vld [vmem:[%s6764_s3 + $0x164] sm:$0xf] }
 0x4ad   : > { %v3380_v40 = vadd.f32 %v3379_v36, %v6288_v32  ;;  %v3798_v29 = vpop.permute.xlu2 %3797  ;;  %v4953_v36 = vor.u32 %v5242_v9, %v4952_v5 }
 0x4ae   : > { %v3643_v30 = vpop.f32.mrf.mxu3 }
 0x4af   : > { %v3644_v41 = vadd.f32 %v3643_v30, %v3555_v35  ;;  %v3469_v46 = vadd.f32 %v3468_v37, %v3380_v40  ;;  %3418 = vmatmul.bf16.gmra.mxu0 %v4937_v31  ;;  %3507 = vmatmul.bf16.gmra.mxu1 %v4941_v3  ;;  %v4961_v40 = vor.u32 %v5243_v61, %v4960_v16 }
 0x4b0   : > { %3596 = vmatmul.bf16.gmra.mxu2 %v4945_v38  ;;  %v6582_v47 = vpop.permute.xlu1 %3037  ;;  %v6584_v48 = vpop.permute.xlu0 %3032 }
 0x4b1   : > { %v3719_v22 = vmax.f32 %v3644_v41, 0.0  ;;  %v4965_v41 = vor.u32 %v5241_v24, %v4962_v25  ;;  %v4970_v25 = vld [vmem:[%s6764_s3 + $0x190] sm:$0xf0] }
 0x4b3   : > { %3685 = vmatmul.bf16.gmra.mxu3 %v4949_v39  ;;  %v3557_v51 = vpop.f32.mrf.mxu2 }
 0x4b4   : > { %v3558_v55 = vadd.f32 %v3557_v51, %v3469_v46  ;;  %v3381_v57 = vpop.f32.mrf.mxu0  ;;  %v3470_v62 = vpop.f32.mrf.mxu1  ;;  %v3943_v46 = vmul.f32 %v3798_v29, %v3719_v22  ;;  %v5246_v22 = vld [vmem:[%s6764_s3 + $0x18c] sm:$0xf0] }
 0x4b5   : > { %v3382_v32 = vadd.f32 %v3381_v57, %v6305_v42  ;;  %v4954_v42 = vld [vmem:[%s6764_s3 + $0x170] sm:$0xf0]  ;;  %v3813_v29 = vpop.permute.xlu2 %3812 }
 0x4b6   : > { %v3646_v54 = vpop.f32.mrf.mxu3  ;;  %v4957_v37 = vor.u32 %v5240_v11, %v4954_v42 }
 0x4b7   : > { %v3647_v4 = vadd.f32 %v3646_v54, %v3558_v55  ;;  %v3471_v8 = vadd.f32 %v3470_v62, %v3382_v32 }
 0x4b8   : > { %v3793_v12 = vpop.permute.xlu1 %3792  ;;  %v3788_v28 = vpop.permute.xlu0 %3787 }
 0x4b9   : > { %v3941_v23 = vmul.f32 %v3788_v28, %v3717_v6  ;;  %v3942_v30 = vmul.f32 %v3793_v12, %v3718_v60  ;;  %v3720_v55 = vmax.f32 %v3647_v4, 0.0  ;;  %v4968_v60 = vld [vmem:[%s6764_s3 + $0x180] sm:$0xf] }
 0x4bb   : > { %v3972_v31 = vadd.f32 %v3941_v23, %v3940_v2  ;;  %v3559_v3 = vpop.f32.mrf.mxu2  ;;  %v5244_v23 = vld [vmem:[%s6764_s3 + $0x184] sm:$0xf] }
 0x4bc   : > { %v3560_v38 = vadd.f32 %v3559_v3, %v3471_v8  ;;  %v3384_v39 = vpop.f32.mrf.mxu0  ;;  %v3473_v10 = vpop.f32.mrf.mxu1  ;;  %v4978_v3 = vld [vmem:[%s6764_s3 + $0x198] sm:$0xf0] }
 0x4bd   : > { %v3973_v50 = vadd.f32 %v3972_v31, %v3942_v30  ;;  %v3385_v51 = vadd.f32 %v3384_v39, %v6396_v19  ;;  %v5247_v30 = vld [vmem:[%s6764_s3 + $0x194] sm:$0xf0]  ;;  %v5245_v31 = vld [vmem:[%s6764_s3 + $0x18c] sm:$0xf]  ;;  %v4973_v39 = vor.u32 %v5244_v23, %v4970_v25 }
 0x4be   : > { %v3648_v35 = vpop.f32.mrf.mxu3  ;;  %v5249_v23 = vld [vmem:[%s6764_s3 + $0x1ac] sm:$0xf] }
 0x4bf   : > { %v3649_v54 = vadd.f32 %v3648_v35, %v3560_v38  ;;  %v3474_v57 = vadd.f32 %v3473_v10, %v3385_v51  ;;  %3423 = vmatmul.bf16.gmra.mxu0 %v4953_v36  ;;  %3512 = vmatmul.bf16.gmra.mxu1 %v4957_v37  ;;  %v3974_v62 = vadd.f32 %v3973_v50, %v3943_v46 }
 0x4c0   : > { %3601 = vmatmul.bf16.gmra.mxu2 %v4961_v40  ;;  %v3808_v32 = vpop.permute.xlu1 %3807  ;;  %v3803_v5 = vpop.permute.xlu0 %3802  ;;  %v4969_v38 = vor.u32 %v5246_v22, %v4968_v60  ;;  %v4981_v51 = vor.u32 %v5245_v31, %v4978_v3  ;;  %v5251_v22 = vld [vmem:[%s6764_s3 + $0x1b4] sm:$0xf0] }
 0x4c1   : > { %v3721_v1 = vmax.f32 %v3649_v54, 0.0  ;;  %v3944_v6 = vmul.f32 %v3803_v5, %v3720_v55 }
 0x4c3   : > { %3690 = vmatmul.bf16.gmra.mxu3 %v4965_v41  ;;  %v3945_v8 = vmul.f32 %v3808_v32, %v3721_v1  ;;  %v3975_v9 = vadd.f32 %v3974_v62, %v3944_v6  ;;  %v3562_v11 = vpop.f32.mrf.mxu2 }
 0x4c4   : > { %v3563_v28 = vadd.f32 %v3562_v11, %v3474_v57  ;;  %v3386_v42 = vpop.f32.mrf.mxu0  ;;  %v3475_v16 = vpop.f32.mrf.mxu1 }
 0x4c5   : > { %v3976_v19 = vadd.f32 %v3975_v9, %v3945_v8  ;;  %v3387_v4 = vadd.f32 %v3386_v42, %v6394_v18  ;;  %v4976_v18 = vld [vmem:[%s6764_s3 + $0x188] sm:$0xf] }
 0x4c6   : > { %v3651_v12 = vpop.f32.mrf.mxu3  ;;  %v4977_v50 = vor.u32 %v5247_v30, %v4976_v18 }
 0x4c7   : > { %v3652_v61 = vadd.f32 %v3651_v12, %v3563_v28  ;;  %v3476_v2 = vadd.f32 %v3475_v16, %v3387_v4  ;;  %v5248_v4 = vld [vmem:[%s6764_s3 + $0x1a4] sm:$0xf] }
 0x4c8   : > { %v3818_v1 = vpop.permute.xlu0 %3817  ;;  %v3823_v60 = vpop.permute.xlu1 %3822 }
 0x4c9   : > { %v3722_v24 = vmax.f32 %v3652_v61, 0.0 }
 0x4cb   : > { %v3946_v35 = vmul.f32 %v3813_v29, %v3722_v24  ;;  %v3564_v36 = vpop.f32.mrf.mxu2  ;;  %v4994_v24 = vld [vmem:[%s6764_s3 + $0x1b8] sm:$0xf0] }
 0x4cc   : > { %v3565_v40 = vadd.f32 %v3564_v36, %v3476_v2  ;;  %v3389_v41 = vpop.f32.mrf.mxu0  ;;  %v3478_v46 = vpop.f32.mrf.mxu1  ;;  %v4986_v2 = vld [vmem:[%s6764_s3 + $0x1b0] sm:$0xf0] }
 0x4cd   : > { %v3977_v10 = vadd.f32 %v3976_v19, %v3946_v35  ;;  %v3390_v54 = vadd.f32 %v3389_v41, %v6340_v58  ;;  %v4984_v58 = vld [vmem:[%s6764_s3 + $0x1a0] sm:$0xf]  ;;  %v5250_v19 = vld [vmem:[%s6764_s3 + $0x1ac] sm:$0xf0]  ;;  %v4989_v31 = vor.u32 %v5248_v4, %v4986_v2 }
 0x4ce   : > { %v3653_v37 = vpop.f32.mrf.mxu3  ;;  %v4985_v30 = vor.u32 %v5250_v19, %v4984_v58  ;;  %v5253_v58 = vld [vmem:[%s6764_s3 + $0x1cc] sm:$0xf]  ;;  %v5010_v19 = vld [vmem:[%s6764_s3 + $0x1d8] sm:$0xf0] }
 0x4cf   : > { %v3654_v55 = vadd.f32 %v3653_v37, %v3565_v40  ;;  %v3479_v57 = vadd.f32 %v3478_v46, %v3390_v54  ;;  %3428 = vmatmul.bf16.gmra.mxu0 %v4969_v38  ;;  %3517 = vmatmul.bf16.gmra.mxu1 %v4973_v39  ;;  %v4997_v39 = vor.u32 %v5249_v23, %v4994_v24 }
 0x4d0   : > { %3606 = vmatmul.bf16.gmra.mxu2 %v4977_v50  ;;  %v3828_v50 = vpop.permute.xlu2 %3827 }
 0x4d1   : > { %v3723_v62 = vmax.f32 %v3654_v55, 0.0 }
 0x4d3   : > { %3695 = vmatmul.bf16.gmra.mxu3 %v4981_v51  ;;  %v3947_v32 = vmul.f32 %v3818_v1, %v3723_v62  ;;  %v3567_v5 = vpop.f32.mrf.mxu2 }
 0x4d4   : > { %v3568_v9 = vadd.f32 %v3567_v5, %v3479_v57  ;;  %v3391_v11 = vpop.f32.mrf.mxu0  ;;  %v3480_v12 = vpop.f32.mrf.mxu1 }
 0x4d5   : > { %v3978_v8 = vadd.f32 %v3977_v10, %v3947_v32  ;;  %v3392_v28 = vadd.f32 %v3391_v11, %v6417_v27  ;;  %v4992_v27 = vld [vmem:[%s6764_s3 + $0x1a8] sm:$0xf]  ;;  %v5252_v11 = vld [vmem:[%s6764_s3 + $0x1c4] sm:$0xf] }
 0x4d6   : > { %v3656_v6 = vpop.f32.mrf.mxu3  ;;  %v4993_v38 = vor.u32 %v5251_v22, %v4992_v27 }
 0x4d7   : > { %v3657_v42 = vadd.f32 %v3656_v6, %v3568_v9  ;;  %v3481_v16 = vadd.f32 %v3480_v12, %v3392_v28  ;;  %v5254_v9 = vld [vmem:[%s6764_s3 + $0x1cc] sm:$0xf0]  ;;  %v5002_v28 = vld [vmem:[%s6764_s3 + $0x1d0] sm:$0xf0] }
 0x4d9   : > { %v3724_v61 = vmax.f32 %v3657_v42, 0.0  ;;  %v3833_v42 = vpop.permute.xlu0 %3832 }
 0x4db   : > { %v3948_v25 = vmul.f32 %v3823_v60, %v3724_v61  ;;  %v3569_v18 = vpop.f32.mrf.mxu2  ;;  %v5005_v60 = vor.u32 %v5252_v11, %v5002_v28 }
 0x4dc   : > { %v3570_v35 = vadd.f32 %v3569_v18, %v3481_v16  ;;  %v3394_v36 = vpop.f32.mrf.mxu0  ;;  %v3483_v37 = vpop.f32.mrf.mxu1  ;;  %v5255_v16 = vld [vmem:[%s6764_s3 + $0x1d4] sm:$0xf0] }
 0x4dd   : > { %v3979_v3 = vadd.f32 %v3978_v8, %v3948_v25  ;;  %v3395_v10 = vadd.f32 %v3394_v36, %v6415_v26  ;;  %v5000_v26 = vld [vmem:[%s6764_s3 + $0x1c0] sm:$0xf]  ;;  %v3838_v36 = vpop.permute.xlu1 %3837 }
 0x4de   : > { %v3658_v29 = vpop.f32.mrf.mxu3  ;;  %v5001_v27 = vor.u32 %v5254_v9, %v5000_v26 }
 0x4df   : > { %v3659_v40 = vadd.f32 %v3658_v29, %v3570_v35  ;;  %v3484_v41 = vadd.f32 %v3483_v37, %v3395_v10  ;;  %3433 = vmatmul.bf16.gmra.mxu0 %v4985_v30  ;;  %3522 = vmatmul.bf16.gmra.mxu1 %v4989_v31  ;;  %v5013_v29 = vor.u32 %v5253_v58, %v5010_v19 }
 0x4e0   : > { %3611 = vmatmul.bf16.gmra.mxu2 %v4993_v38 }
 0x4e1   : > { %v3725_v46 = vmax.f32 %v3659_v40, 0.0 }
 0x4e3   : > { %3700 = vmatmul.bf16.gmra.mxu3 %v4997_v39  ;;  %v3949_v51 = vmul.f32 %v3828_v50, %v3725_v46  ;;  %v3572_v54 = vpop.f32.mrf.mxu2 }
 0x4e4   : > { %v3573_v62 = vadd.f32 %v3572_v54, %v3484_v41  ;;  %v3396_v1 = vpop.f32.mrf.mxu0  ;;  %v3485_v32 = vpop.f32.mrf.mxu1 }
 0x4e5   : > { %v3980_v57 = vadd.f32 %v3979_v3, %v3949_v51  ;;  %v3397_v5 = vadd.f32 %v3396_v1, %v6374_v7  ;;  %v5008_v7 = vld [vmem:[%s6764_s3 + $0x1c8] sm:$0xf]  ;;  %v5018_v1 = vld [vmem:[%s6764_s3 + $0x1f0] sm:$0xf0] }
 0x4e6   : > { %v3661_v55 = vpop.f32.mrf.mxu3  ;;  %v5009_v18 = vor.u32 %v5255_v16, %v5008_v7 }
 0x4e7   : > { %v3662_v6 = vadd.f32 %v3661_v55, %v3573_v62  ;;  %v3486_v8 = vadd.f32 %v3485_v32, %v3397_v5  ;;  %v5258_v55 = vld [vmem:[%s6764_s3 + $0x1ec] sm:$0xf0]  ;;  %v3843_v32 = vpop.permute.xlu2 %3842  ;;  %v5259_v5 = vld [vmem:[%s6764_s3 + $0x1f4] sm:$0xf0] }
 0x4e9   : > { %v3726_v12 = vmax.f32 %v3662_v6, 0.0  ;;  %v5257_v6 = vld [vmem:[%s6764_s3 + $0x1ec] sm:$0xf] }
 0x4eb   : > { %v3950_v4 = vmul.f32 %v3833_v42, %v3726_v12  ;;  %v3574_v61 = vpop.f32.mrf.mxu2 }
 0x4ec   : > { %v3575_v23 = vadd.f32 %v3574_v61, %v3486_v8  ;;  %v3399_v24 = vpop.f32.mrf.mxu0  ;;  %v3488_v25 = vpop.f32.mrf.mxu1  ;;  %v5026_v8 = vld [vmem:[%s6764_s3 + $0x1f8] sm:$0xf0] }
 0x4ed   : > { %v3981_v22 = vadd.f32 %v3980_v57, %v3950_v4  ;;  %v3400_v30 = vadd.f32 %v3399_v24, %v6450_v45  ;;  %v5016_v45 = vld [vmem:[%s6764_s3 + $0x1e0] sm:$0xf]  ;;  %v5256_v57 = vld [vmem:[%s6764_s3 + $0x1e4] sm:$0xf]  ;;  %v5029_v4 = vor.u32 %v5257_v6, %v5026_v8 }
 0x4ee   : > { %v3663_v2 = vpop.f32.mrf.mxu3  ;;  %v5017_v12 = vor.u32 %v5258_v55, %v5016_v45  ;;  %v5021_v28 = vor.u32 %v5256_v57, %v5018_v1 }
 0x4ef   : > { %v3664_v31 = vadd.f32 %v3663_v2, %v3575_v23  ;;  %v3489_v3 = vadd.f32 %v3488_v25, %v3400_v30  ;;  %3438 = vmatmul.bf16.gmra.mxu0 %v5001_v27  ;;  %3527 = vmatmul.bf16.gmra.mxu1 %v5005_v60  ;;  %v3858_v57 = vpop.permute.xlu2 %3857 }
 0x4f0   : > { %3616 = vmatmul.bf16.gmra.mxu2 %v5009_v18 }
 0x4f1   : > { %v3727_v35 = vmax.f32 %v3664_v31, 0.0 }
 0x4f3   : > { %3705 = vmatmul.bf16.gmra.mxu3 %v5013_v29  ;;  %v3951_v37 = vmul.f32 %v3838_v36, %v3727_v35  ;;  %v3577_v38 = vpop.f32.mrf.mxu2 }
 0x4f4   : > { %v3578_v40 = vadd.f32 %v3577_v38, %v3489_v3  ;;  %v3401_v41 = vpop.f32.mrf.mxu0  ;;  %v3490_v46 = vpop.f32.mrf.mxu1 }
 0x4f5   : > { %v3982_v10 = vadd.f32 %v3981_v22, %v3951_v37  ;;  %v3402_v50 = vadd.f32 %v3401_v41, %v6448_v44  ;;  %v5024_v44 = vld [vmem:[%s6764_s3 + $0x1e8] sm:$0xf]  ;;  %v3848_v22 = vpop.permute.xlu0 %3847  ;;  %v3853_v37 = vpop.permute.xlu1 %3852 }
 0x4f6   : > { %v3666_v39 = vpop.f32.mrf.mxu3  ;;  %v5025_v19 = vor.u32 %v5259_v5, %v5024_v44 }
 0x4f7   : > { %v3667_v51 = vadd.f32 %v3666_v39, %v3578_v40  ;;  %v3491_v54 = vadd.f32 %v3490_v46, %v3402_v50 }
 0x4f9   : > { %v3728_v62 = vmax.f32 %v3667_v51, 0.0 }
 0x4fb   : > { %v3952_v26 = vmul.f32 %v3843_v32, %v3728_v62  ;;  %v3579_v9 = vpop.f32.mrf.mxu2 }
 0x4fc   : > { %v3580_v42 = vadd.f32 %v3579_v9, %v3491_v54  ;;  %v3404_v16 = vpop.f32.mrf.mxu0  ;;  %v3493_v58 = vpop.f32.mrf.mxu1 }
 0x4fd   : > { %v3983_v7 = vadd.f32 %v3982_v10, %v3952_v26  ;;  %v3405_v61 = vadd.f32 %v3404_v16, %v6401_v21 }
 0x4fe   : > { %v3668_v11 = vpop.f32.mrf.mxu3 }
 0x4ff   : > { %v3669_v2 = vadd.f32 %v3668_v11, %v3580_v42  ;;  %v3494_v27 = vadd.f32 %v3493_v58, %v3405_v61  ;;  %3443 = vmatmul.bf16.gmra.mxu0 %v5017_v12  ;;  %3532 = vmatmul.bf16.gmra.mxu1 %v5021_v28  ;;  %v3863_v12 = vpop.permute.xlu0 %3862 }
 0x500   : > { %3621 = vmatmul.bf16.gmra.mxu2 %v5025_v19 }
 0x501   : > { %v3729_v60 = vmax.f32 %v3669_v2, 0.0 }
 0x503   : > { %3710 = vmatmul.bf16.gmra.mxu3 %v5029_v4  ;;  %v3953_v23 = vmul.f32 %v3848_v22, %v3729_v60  ;;  %v3582_v24 = vpop.f32.mrf.mxu2  ;;  %v3868_v60 = vpop.permute.xlu1 %3867 }
 0x504   : > { %v3583_v29 = vadd.f32 %v3582_v24, %v3494_v27  ;;  %v3406_v30 = vpop.f32.mrf.mxu0  ;;  %v3495_v31 = vpop.f32.mrf.mxu1 }
 0x505   : > { %v3984_v18 = vadd.f32 %v3983_v7, %v3953_v23  ;;  %v3407_v3 = vadd.f32 %v3406_v30, %v6471_v53 }
 0x506   : > { %v3671_v25 = vpop.f32.mrf.mxu3 }
 0x507   : > { %v3672_v35 = vadd.f32 %v3671_v25, %v3583_v29  ;;  %v3496_v36 = vadd.f32 %v3495_v31, %v3407_v3 }
 0x509   : > { %v3730_v21 = vmax.f32 %v3672_v35, 0.0 }
 0x50b   : > { %v3954_v38 = vmul.f32 %v3853_v37, %v3730_v21  ;;  %v3584_v39 = vpop.f32.mrf.mxu2 }
 0x50c   : > { %v3585_v41 = vadd.f32 %v3584_v39, %v3496_v36  ;;  %v3409_v46 = vpop.f32.mrf.mxu0  ;;  %v3498_v50 = vpop.f32.mrf.mxu1 }
 0x50d   : > { %v3985_v40 = vadd.f32 %v3984_v18, %v3954_v38  ;;  %v3410_v51 = vadd.f32 %v3409_v46, %v6469_v52  ;;  %v3873_v36 = vpop.permute.xlu2 %3872 }
 0x50e   : > { %v3673_v10 = vpop.f32.mrf.mxu3 }
 0x50f   : > { %v3674_v54 = vadd.f32 %v3673_v10, %v3585_v41  ;;  %v3499_v45 = vadd.f32 %v3498_v50, %v3410_v51 }
 0x511   : > { %v3731_v55 = vmax.f32 %v3674_v54, 0.0  ;;  %v3878_v54 = vpop.permute.xlu0 %3877 }
 0x513   : > { %v3955_v62 = vmul.f32 %v3858_v57, %v3731_v55  ;;  %v3587_v1 = vpop.f32.mrf.mxu2 }
 0x514   : > { %v3588_v32 = vadd.f32 %v3587_v1, %v3499_v45  ;;  %v3411_v5 = vpop.f32.mrf.mxu0  ;;  %v3500_v6 = vpop.f32.mrf.mxu1 }
 0x515   : > { %v3986_v44 = vadd.f32 %v3985_v40, %v3955_v62  ;;  %v3412_v8 = vadd.f32 %v3411_v5, %v6446_v43  ;;  %v3883_v5 = vpop.permute.xlu1 %3882 }
 0x516   : > { %v3676_v53 = vpop.f32.mrf.mxu3 }
 0x517   : > { %v3677_v26 = vadd.f32 %v3676_v53, %v3588_v32  ;;  %v3501_v9 = vadd.f32 %v3500_v6, %v3412_v8 }
 0x519   : > { %v3732_v11 = vmax.f32 %v3677_v26, 0.0 }
 0x51b   : > { %v3956_v28 = vmul.f32 %v3863_v12, %v3732_v11  ;;  %v3589_v7 = vpop.f32.mrf.mxu2 }
 0x51c   : > { %v3590_v16 = vadd.f32 %v3589_v7, %v3501_v9  ;;  %v3414_v58 = vpop.f32.mrf.mxu0  ;;  %v3503_v19 = vpop.f32.mrf.mxu1 }
 0x51d   : > { %v3987_v42 = vadd.f32 %v3986_v44, %v3956_v28  ;;  %v3415_v4 = vadd.f32 %v3414_v58, %v6503_v14 }
 0x51e   : > { %v3678_v52 = vpop.f32.mrf.mxu3 }
 0x51f   : > { %v3679_v61 = vadd.f32 %v3678_v52, %v3590_v16  ;;  %v3504_v2 = vadd.f32 %v3503_v19, %v3415_v4 }
 0x521   : > { %v3733_v27 = vmax.f32 %v3679_v61, 0.0 }
 0x523   : > { %v3957_v22 = vmul.f32 %v3868_v60, %v3733_v27  ;;  %v3592_v23 = vpop.f32.mrf.mxu2 }
 0x524   : > { %v3593_v25 = vadd.f32 %v3592_v23, %v3504_v2  ;;  %v3416_v18 = vpop.f32.mrf.mxu0  ;;  %v3505_v29 = vpop.f32.mrf.mxu1 }
 0x525   : > { %v3988_v24 = vadd.f32 %v3987_v42, %v3957_v22  ;;  %v3417_v30 = vadd.f32 %v3416_v18, %v6501_v13 }
 0x526   : > { %v3681_v43 = vpop.f32.mrf.mxu3 }
 0x527   : > { %v3682_v31 = vadd.f32 %v3681_v43, %v3593_v25  ;;  %v3506_v3 = vadd.f32 %v3505_v29, %v3417_v30 }
 0x529   : > { %v3734_v35 = vmax.f32 %v3682_v31, 0.0 }
 0x52b   : > { %v3958_v21 = vmul.f32 %v3873_v36, %v3734_v35  ;;  %v3594_v37 = vpop.f32.mrf.mxu2 }
 0x52c   : > { %v3595_v39 = vadd.f32 %v3594_v37, %v3506_v3  ;;  %v3419_v10 = vpop.f32.mrf.mxu0  ;;  %v3508_v40 = vpop.f32.mrf.mxu1 }
 0x52d   : > { %v3989_v38 = vadd.f32 %v3988_v24, %v3958_v21  ;;  %v3420_v41 = vadd.f32 %v3419_v10, %v6461_v49 }
 0x52e   : > { %v3683_v14 = vpop.f32.mrf.mxu3 }
 0x52f   : > { %v3684_v46 = vadd.f32 %v3683_v14, %v3595_v39  ;;  %v3509_v50 = vadd.f32 %v3508_v40, %v3420_v41 }
 0x531   : > { %v3735_v51 = vmax.f32 %v3684_v46, 0.0 }
 0x533   : > { %v3959_v45 = vmul.f32 %v3878_v54, %v3735_v51  ;;  %v3597_v55 = vpop.f32.mrf.mxu2 }
 0x534   : > { %v3598_v62 = vadd.f32 %v3597_v55, %v3509_v50  ;;  %v3421_v1 = vpop.f32.mrf.mxu0  ;;  %v3510_v53 = vpop.f32.mrf.mxu1 }
 0x535   : > { %v3990_v57 = vadd.f32 %v3989_v38, %v3959_v45  ;;  %v3422_v30 = vadd.f32 %v3421_v1, %v6521_v34  ;;  %v3888_v38 = vpop.permute.xlu2 %3887  ;;  %v3893_v50 = vpop.permute.xlu0 %3892 }
 0x536   : > { %v3686_v13 = vpop.f32.mrf.mxu3 }
 0x537   : > { %v3687_v44 = vadd.f32 %v3686_v13, %v3598_v62  ;;  %v3511_v37 = vadd.f32 %v3510_v53, %v3422_v30 }
 0x539   : > { %v3736_v32 = vmax.f32 %v3687_v44, 0.0 }
 0x53b   : > { %v3960_v6 = vmul.f32 %v3883_v5, %v3736_v32  ;;  %v3599_v8 = vpop.f32.mrf.mxu2 }
 0x53c   : > { %v3424_v49 = vpop.f32.mrf.mxu0  ;;  %v3513_v11 = vpop.f32.mrf.mxu1  ;;  %v3600_v39 = vadd.f32 %v3599_v8, %v3511_v37 }
 0x53d   : > { %v6724_v9 = vadd.f32 %v3990_v57, %v3960_v6  ;;  %v3425_v31 = vadd.f32 %v3424_v49, %v6519_v33  ;;  %v3903_v6 = vpop.permute.xlu2 %3902 }
 0x53e   : > { %v3688_v26 = vpop.f32.mrf.mxu3 }
 0x53f   : > { %v3514_v10 = vadd.f32 %v3513_v11, %v3425_v31  ;;  %v3689_v34 = vadd.f32 %v3688_v26, %v3600_v39 }
 0x541   : > { %v3737_v32 = vmax.f32 %v3689_v34, 0.0 }
 0x543   : > { %v3602_v12 = vpop.f32.mrf.mxu2 }
 0x544   : > { %v3426_v7 = vpop.f32.mrf.mxu0  ;;  %v3515_v52 = vpop.f32.mrf.mxu1  ;;  %v3603_v41 = vadd.f32 %v3602_v12, %v3514_v10 }
 0x545   : > { %v3427_v14 = vadd.f32 %v3426_v7, %v6505_v15 }
 0x546   : > { %v3691_v28 = vpop.f32.mrf.mxu3 }
 0x547   : > { %v3516_v46 = vadd.f32 %v3515_v52, %v3427_v14  ;;  %v3692_v62 = vadd.f32 %v3691_v28, %v3603_v41  ;;  %v3961_v28 = vmul.f32 %v3888_v38, %v3737_v32 }
 0x549   : > { %v3738_v49 = vmax.f32 %v3692_v62, 0.0 }
 0x54b   : > { %v3604_v42 = vpop.f32.mrf.mxu2 }
 0x54c   : > { %v3429_v58 = vpop.f32.mrf.mxu0  ;;  %v3518_v19 = vpop.f32.mrf.mxu1  ;;  %v3605_v54 = vadd.f32 %v3604_v42, %v3516_v46 }
 0x54d   : > { %v3430_v40 = vadd.f32 %v3429_v58, %v6548_v0  ;;  %v3898_v0 = vpop.permute.xlu1 %3897 }
 0x54e   : > { %v3693_v16 = vpop.f32.mrf.mxu3 }
 0x54f   : > { %v3519_v33 = vadd.f32 %v3518_v19, %v3430_v40  ;;  %v3694_v5 = vadd.f32 %v3693_v16, %v3605_v54  ;;  %v3908_v16 = vpop.permute.xlu0 %3907 }
 0x551   : > { %v3739_v52 = vmax.f32 %v3694_v5, 0.0 }
 0x553   : > { %v3607_v4 = vpop.f32.mrf.mxu2 }
 0x554   : > { %v3431_v2 = vpop.f32.mrf.mxu0  ;;  %v3520_v27 = vpop.f32.mrf.mxu1  ;;  %v3608_v15 = vadd.f32 %v3607_v4, %v3519_v33 }
 0x555   : > { %v3432_v51 = vadd.f32 %v3431_v2, %v6546_v63 }
 0x556   : > { %v3696_v61 = vpop.f32.mrf.mxu3 }
 0x557   : > { %v3521_v53 = vadd.f32 %v3520_v27, %v3432_v51  ;;  %v3697_v11 = vadd.f32 %v3696_v61, %v3608_v15  ;;  %v3962_v27 = vmul.f32 %v3893_v50, %v3738_v49  ;;  %v3923_v33 = vpop.permute.xlu0 %3922 }
 0x55b   : > { %v3609_v60 = vpop.f32.mrf.mxu2 }
 0x55c   : > { %v3434_v23 = vpop.f32.mrf.mxu0  ;;  %v3523_v43 = vpop.f32.mrf.mxu1  ;;  %v3610_v8 = vadd.f32 %v3609_v60, %v3521_v53  ;;  %v3740_v60 = vmax.f32 %v3697_v11, 0.0 }
 0x55d   : > { %v3435_v13 = vadd.f32 %v3434_v23, %v6541_v56 }
 0x55e   : > { %v3698_v22 = vpop.f32.mrf.mxu3 }
 0x55f   : > { %v3524_v63 = vadd.f32 %v3523_v43, %v3435_v13  ;;  %v3699_v19 = vadd.f32 %v3698_v22, %v3610_v8 }
 0x563   : > { %v3612_v24 = vpop.f32.mrf.mxu2 }
 0x564   : > { %v3436_v18 = vpop.f32.mrf.mxu0  ;;  %v3525_v29 = vpop.f32.mrf.mxu1  ;;  %v3613_v12 = vadd.f32 %v3612_v24, %v3524_v63  ;;  %v3992_v24 = vadd.f32 %v6724_v9, %v3961_v28 }
 0x565   : > { %v3437_v44 = vadd.f32 %v3436_v18, %v6561_v20  ;;  %v3963_v18 = vmul.f32 %v3898_v0, %v3739_v52 }
 0x566   : > { %v3701_v25 = vpop.f32.mrf.mxu3  ;;  %v3993_v22 = vadd.f32 %v3992_v24, %v3962_v27 }
 0x567   : > { %v3526_v7 = vadd.f32 %v3525_v29, %v3437_v44  ;;  %v3702_v23 = vadd.f32 %v3701_v25, %v3613_v12  ;;  %v3741_v29 = vmax.f32 %v3699_v19, 0.0 }
 0x568   : > { %v3994_v39 = vadd.f32 %v3993_v22, %v3963_v18 }
 0x569   : > { %v3742_v37 = vmax.f32 %v3702_v23, 0.0  ;;  %v3965_v40 = vmul.f32 %v3908_v16, %v3741_v29 }
 0x56b   : > { %v3614_v3 = vpop.f32.mrf.mxu2 }
 0x56c   : > { %v3439_v36 = vpop.f32.mrf.mxu0  ;;  %v3528_v21 = vpop.f32.mrf.mxu1  ;;  %v3615_v20 = vadd.f32 %v3614_v3, %v3526_v7  ;;  %v3964_v3 = vmul.f32 %v3903_v6, %v3740_v60 }
 0x56d   : > { %v3440_v26 = vadd.f32 %v3439_v36, %v6559_v17  ;;  %v3913_v36 = vpop.permute.xlu1 %3912  ;;  %v3938_v7 = vpop.permute.xlu0 %3937 }
 0x56e   : > { %v3703_v35 = vpop.f32.mrf.mxu3  ;;  %v3995_v50 = vadd.f32 %v3994_v39, %v3964_v3  ;;  %v3966_v51 = vmul.f32 %v3913_v36, %v3742_v37 }
 0x56f   : > { %v3529_v4 = vadd.f32 %v3528_v21, %v3440_v26  ;;  %v3704_v30 = vadd.f32 %v3703_v35, %v3615_v20  ;;  %v3918_v21 = vpop.permute.xlu2 %3917 }
 0x571   : > { %v3743_v41 = vmax.f32 %v3704_v30, 0.0 }
 0x573   : > { %v3617_v45 = vpop.f32.mrf.mxu2  ;;  %v3967_v13 = vmul.f32 %v3918_v21, %v3743_v41 }
 0x574   : > { %v3441_v57 = vpop.f32.mrf.mxu0  ;;  %v3530_v1 = vpop.f32.mrf.mxu1  ;;  %v3618_v43 = vadd.f32 %v3617_v45, %v3529_v4  ;;  %v3996_v45 = vadd.f32 %v3995_v50, %v3965_v40 }
 0x575   : > { %v3442_v56 = vadd.f32 %v3441_v57, %v6551_v59  ;;  %v3928_v44 = vpop.permute.xlu1 %3927 }
 0x576   : > { %v3706_v55 = vpop.f32.mrf.mxu3  ;;  %v3997_v62 = vadd.f32 %v3996_v45, %v3966_v51 }
 0x577   : > { %v3531_v17 = vadd.f32 %v3530_v1, %v3442_v56  ;;  %v3707_v14 = vadd.f32 %v3706_v55, %v3618_v43  ;;  %v3933_v8 = vpop.permute.xlu2 %3932 }
 0x578   : > { %v3998_v32 = vadd.f32 %v3997_v62, %v3967_v13 }
 0x579   : > { %v3744_v34 = vmax.f32 %v3707_v14, 0.0 }
 0x57b   : > { %v3619_v42 = vpop.f32.mrf.mxu2  ;;  %v3968_v15 = vmul.f32 %v3923_v33, %v3744_v34 }
 0x57c   : > { %v3444_v2 = vpop.f32.mrf.mxu0  ;;  %v3533_v59 = vpop.f32.mrf.mxu1  ;;  %v3620_v31 = vadd.f32 %v3619_v42, %v3531_v17 }
 0x57d   : > { %v3445_v61 = vadd.f32 %v3444_v2, %v6584_v48  ;;  %v3999_v26 = vadd.f32 %v3998_v32, %v3968_v15  ;;  %v4013_v4 = vpop.permute.xlu1 %4012 }
 0x57e   : > { %v3708_v58 = vpop.f32.mrf.mxu3  ;;  %v4015_v16 = vperm.slane %v4013_v4, 0 }
 0x57f   : > { %v3534_v38 = vadd.f32 %v3533_v59, %v3445_v61  ;;  %v3709_v48 = vadd.f32 %v3708_v58, %v3620_v31 }
 0x581   : > { %v3745_v57 = vmax.f32 %v3709_v48, 0.0 }
 0x583   : > { %v3622_v25 = vpop.f32.mrf.mxu2  ;;  %v3969_v5 = vmul.f32 %v3928_v44, %v3745_v57 }
 0x584   : > { %v3623_v46 = vadd.f32 %v3622_v25, %v3534_v38  ;;  %v3446_v9 = vpop.f32.mrf.mxu0  ;;  %v3535_v55 = vpop.f32.mrf.mxu1 }
 0x585   : > { %v3447_v54 = vadd.f32 %v3446_v9, %v6582_v47  ;;  %v4000_v47 = vadd.f32 %v3999_v26, %v3969_v5 }
 0x586   : > { %v3711_v10 = vpop.f32.mrf.mxu3 }
 0x587   : > { %v3712_v35 = vadd.f32 %v3711_v10, %v3623_v46  ;;  %v3536_v53 = vadd.f32 %v3535_v55, %v3447_v54 }
 0x589   : > { %v3746_v1 = vmax.f32 %v3712_v35, 0.0 }
 0x58b   : > { %v3624_v0 = vpop.f32.mrf.mxu2  ;;  %v3970_v49 = vmul.f32 %v3933_v8, %v3746_v1 }
 0x58c   : > { %v3625_v6 = vadd.f32 %v3624_v0, %v3536_v53 }
 0x58d   : > { %v4001_v56 = vadd.f32 %v4000_v47, %v3970_v49 }
 0x58e   : > { %v3713_v63 = vpop.f32.mrf.mxu3 }
 0x58f   : > { %v3714_v11 = vadd.f32 %v3713_v63, %v3625_v6 }
 0x591   : > { %v3747_v12 = vmax.f32 %v3714_v11, 0.0 }
 0x593   : > { %v3971_v28 = vmul.f32 %v3938_v7, %v3747_v12 }
 0x595   : > { %v4002_v52 = vadd.f32 %v4001_v56, %v3971_v28 }
 0x597   : > { %v4003_v42 = vrot.slane %v4002_v52, 4 }
 0x599   : > { %v4004_v58 = vadd.f32 %v4003_v42, %v4002_v52 }
 0x59b   : > { %v4005_v19 = vrot.slane %v4004_v58, 2 }
 0x59d   : > { %v4006_v20 = vadd.f32 %v4005_v19, %v4004_v58 }
 0x59f   : > { %v4007_v2 = vrot.slane %v4006_v20, 1 }
 0x5a1   : > { %v4008_v27 = vadd.f32 %v4007_v2, %v4006_v20 }
 0x5a3   : > { %v4016_v60 = vadd.f32 %v4015_v16, %v4008_v27 }
 0x5a5   : > { %v5030_v23 = vmul.f32 -1.442695, %v4016_v60 }
 0x5a7   : > { %5333 = vpow2.f32 %v5030_v23 }
 0x5ad   : > { %v5334_v43 = vpop.eup %5333 }
 0x5ae   : > { %v4020_v17 = vadd.f32 1.0, %v5334_v43 }
 0x5b0   : > { %5335 = vrcp.f32 %v4020_v17  ;;  %v4032_v59 = vand.u32 2147483648, %v4020_v17  ;;  %v4030_v30 = vand.u32 2147483647, %v4020_v17  ;;  %vm4026_vm1 = vweird.f32 %v4020_v17 }
 0x5b2   : > { %v4033_v36 = vor.u32 1.1754944e-38, %v4032_v59  ;;  %vm4031_vm3 = vcmp.eq.f32.partialorder %v4030_v30, 8.507059e+37 }
 0x5b6   : > { %v5336_v61 = vpop.eup %5335 }
 0x5b7   : > { %v4022_v24 = vmul.f32 %v5336_v61, %v4020_v17  ;;  %vm4027_vm0 = vweird.f32 %v5336_v61 }
 0x5b8   : > { %vm4028_vm2 = vmor %vm4026_vm1, %vm4027_vm0 }
 0x5b9   : > { %v4023_v18 = vsub.f32 1.0, %v4022_v24 }
 0x5bb   : > { %v4024_v29 = vmul.f32 %v5336_v61, %v4023_v18 }
 0x5bd   : > { %v4025_v31 = vadd.f32 %v5336_v61, %v4024_v29 }
 0x5bf   : > { %v4029_v22 = vsel %vm4028_vm2, %v5336_v61, %v4025_v31 }
 0x5c0   : > { %v4034_v3 = vsel %vm4031_vm3, %v4033_v36, %v4029_v22 }
 0x5c1   : > { %4036 = vst [vmem:[#allocation7] sm:$0x1] %v4034_v3 }
 0x5c2 PF: > { %p5271_p2 = scmp.eq.s32.totalorder %s4122_s6, 1  ;;  %s4046_s15 = sshll.u32 %s6768_s7, 4  ;;  %s4047_s15 = int_to_ptr.hbm [resolvable:$true] %s4046_s15 }
 0x5c3   : > { %s5456_s19 = smov [#allocation7]  }
 0x5c4   : > { %s4044_s20 = sshll.u32 %s5456_s19, 4  ;;  %s4045_s20 = int_to_ptr.vmem [resolvable:$true] %s4044_s20 }
 0x5c5   : > { %5263 = dma.vmem_to_hbm [thread:$0]  (%p5271_p2), %s4045_s20, 16, %s4047_s15, [#allocation6]  }
 0x5c6   : > { %5424 = dma.done.wait (%p5271_p2), [#allocation6], 16  }
 0x5c7   : > { %5426 = vsyncadd (%p5271_p2), [#allocation6], 4294967280 }
 0x5c8 PF: > { %s23_s8 = sadd.s32 1, %s5449_s8   ;;  %s6771_s26 = smov %s5433_s27 }
 0x5c9   : > { %p20_p3 = scmp.ge.s32.totalorder %s23_s8, 4   ;;  %s6772_s27 = smov %s5437_s28 }
 0x5ca   : > { %s6773_s28 = smov %s5551_s14  ;;  %s6774_s29 = smov %s5445_s30 }
 0x5cb   : > { %s6775_s30 = smov %s6777_s9  ;;  %22 = sbr.rel (!%p20_p3) target bundleno = 8 (0x8), region = 97 }
 0x5d0   :  { %4060 = vsyncpa [#allocation5], 1 }
 0x5d1   :  { %4062 = vsyncpa [#allocation5 + $0x1], 1 }
 0x5d2   :  { %4063 = vsyncpa [#allocation6], 1 }
 0x5d3   :  { %4065 = vsyncpa [#allocation6 + $0x1], 1 }

</bundles_post_ra>
